<compile_context>
chip_gen: v5e
topology: v5e:2x2
jax: 0.10.0
libtpu: 0.0.40
codegen_flags: <defaults>
</compile_context>

<pallas_src>
import jax
import jax.numpy as jnp
from jax.experimental import pallas as pl
from jax.experimental.pallas import tpu as pltpu


def _round_up(n, m):
    return ((n + m - 1) // m) * m


def attn_net_kernel(x_ref, w1_ref, b1_ref, w2t_ref, b2_ref, a_ref):
    # fc1 on the MXU, f32 accumulation.
    h = jnp.dot(x_ref[...], w1_ref[...], preferred_element_type=jnp.float32)
    h = jnp.tanh(h + b1_ref[...])          # f32 on the EUP (free slot)

    w2t = w2t_ref[...]                     # (C, D_pad), f32, VMEM-resident
    if w2t.shape[0] == 1:
        # C == 1: a (TILE_N, D) x (D, 1) matmul would use 1/128..1/256 of the
        # MXU; do the projection as a VPU multiply + XLU lane reduce instead.
        a = jnp.sum(h * w2t, axis=-1, keepdims=True)
    else:
        a = jax.lax.dot_general(h, w2t, (((1,), (1,)), ((), ())),
                                preferred_element_type=jnp.float32)
    a_ref[...] = (a + b2_ref[...]).astype(a_ref.dtype)


def attn_net_forward(x, w1, b1, w2, b2, *, tile_n=1024,
                     compute_dtype=jnp.bfloat16):
    """Pallas forward of Attn_Net. Returns (A, x) like the PyTorch module."""
    N, L = x.shape
    D = w1.shape[1]
    C = w2.shape[1]

    # Pad the hidden dim to the 128-lane width (padded columns are
    # tanh(0 + 0) folded into zero rows of w2 only if bias is also padded
    # with 0 -> tanh(0) = 0 -> contributes 0 through zero w2 rows; exact).
    # No-op for the module default D=256.
    d_pad = _round_up(D, 128)
    if d_pad != D:
        w1 = jnp.pad(w1, ((0, 0), (0, d_pad - D)))
        b1 = jnp.pad(b1, ((0, 0), (0, d_pad - D)))
        w2 = jnp.pad(w2, ((0, d_pad - D), (0, 0)))

    # bf16 operands for the memory-bound fc1 stream (f32 MXU accumulation);
    # biases and the tiny fc2 weights stay f32.
    x_k = x.astype(compute_dtype)
    w1_k = w1.astype(compute_dtype)
    b1_k = b1.astype(jnp.float32)
    w2t_k = jnp.transpose(w2).astype(jnp.float32)     # (C, d_pad)
    b2_k = b2.astype(jnp.float32)

    # Tile the instance axis; keep tiles a multiple of 16 sublanes (covers
    # both the bf16 (16,128) and f32 (8,128) packing).
    tile_n = max(16, min(int(tile_n), _round_up(N, 16)))
    n_pad = _round_up(N, tile_n)
    if n_pad != N:
        x_k = jnp.pad(x_k, ((0, n_pad - N), (0, 0)))
    grid = (n_pad // tile_n,)

    bytes_accessed = (x_k.size * x_k.dtype.itemsize
                      + w1_k.size * w1_k.dtype.itemsize
                      + n_pad * C * 4)
    cost = pl.CostEstimate(
        flops=2 * n_pad * L * d_pad + 2 * n_pad * d_pad * C,
        transcendentals=n_pad * d_pad,
        bytes_accessed=bytes_accessed,
    )

    a = pl.pallas_call(
        attn_net_kernel,
        out_shape=jax.ShapeDtypeStruct((n_pad, C), jnp.float32),
        grid=grid,
        in_specs=[
            pl.BlockSpec((tile_n, L), lambda i: (i, 0)),    # streamed x tile
            pl.BlockSpec((L, d_pad), lambda i: (0, 0)),     # resident weights
            pl.BlockSpec((1, d_pad), lambda i: (0, 0)),
            pl.BlockSpec((C, d_pad), lambda i: (0, 0)),
            pl.BlockSpec((1, C), lambda i: (0, 0)),
        ],
        out_specs=pl.BlockSpec((tile_n, C), lambda i: (i, 0)),
        compiler_params=pltpu.CompilerParams(
            dimension_semantics=("parallel",),
            vmem_limit_bytes=32 * 1024 * 1024,
        ),
        cost_estimate=cost,
    )(x_k, w1_k, b1_k, w2t_k, b2_k)

    if n_pad != N:
        a = a[:N]
    # Module returns the attention scores AND the untouched input features.
    return a, x


def init_params(key, L, D, n_classes, dtype=jnp.float32):
    """Deterministic synthetic init (shapes match nn.Linear(L,D), nn.Linear(D,C)),
    stored transposed relative to PyTorch (out,in) -> (in,out)."""
    k1, k2, k3, k4 = jax.random.split(key, 4)
    w1 = jax.random.normal(k1, (L, D), dtype) * (1.0 / jnp.sqrt(L))
    b1 = jax.random.normal(k2, (1, D), dtype) * 0.01
    w2 = jax.random.normal(k3, (D, n_classes), dtype) * (1.0 / jnp.sqrt(D))
    b2 = jax.random.normal(k4, (1, n_classes), dtype) * 0.01
    return w1, b1, w2, b2


if __name__ == "__main__":
    # Module-default dims: L=1024 features, D=256 hidden, n_classes=1;
    # a small MIL bag of N=1000 instances (exercises the partial last tile
    # and a multi-step grid with tile_n=256).
    N, L, D, n_classes = 1000, 1024, 256, 1

    key = jax.random.PRNGKey(0)
    kx, kp = jax.random.split(key)
    x = jax.random.normal(kx, (N, L), jnp.float32)
    w1, b1, w2, b2 = init_params(kp, L, D, n_classes)

    # Default (bf16 fc1 operands, f32 accumulation) path; 4 grid steps.
    a, x_out = attn_net_forward(x, w1, b1, w2, b2, tile_n=256)
    jax.block_until_ready((a, x_out))

    # f32 path (exercises the non-packed sublane layout as well).
    a32, _ = attn_net_forward(x, w1, b1, w2, b2, compute_dtype=jnp.float32)
    jax.block_until_ready(a32)

    # Pure-JAX references.
    hp = jax.lax.Precision.HIGHEST
    h_f32 = jnp.tanh(jnp.dot(x, w1, precision=hp) + b1)
    a_ref_f32 = jnp.dot(h_f32, w2, precision=hp) + b2
    h_bf = jnp.tanh(
        jnp.dot(x.astype(jnp.bfloat16), w1.astype(jnp.bfloat16),
                preferred_element_type=jnp.float32) + b1)
    a_ref_bf = jnp.dot(h_bf, w2, precision=hp) + b2

    assert a.shape == (N, n_classes) and a32.shape == (N, n_classes)
    assert x_out.shape == (N, L)
    assert jnp.array_equal(x_out, x)
    # Kernel (bf16 operands) vs reference taking the same bf16 path: tight.
    assert jnp.allclose(a, a_ref_bf, atol=5e-3, rtol=5e-3), \
        float(jnp.max(jnp.abs(a - a_ref_bf)))
    # Kernel vs pure-f32 module semantics: loose (expected bf16 divergence).
    assert jnp.allclose(a, a_ref_f32, atol=5e-2, rtol=5e-2), \
        float(jnp.max(jnp.abs(a - a_ref_f32)))
    # f32-mode kernel vs f32 reference.
    assert jnp.allclose(a32, a_ref_f32, atol=2e-2, rtol=2e-2), \
        float(jnp.max(jnp.abs(a32 - a_ref_f32)))

    print("KERNEL_OK")
</pallas_src>

<mosaic_0001>
module attributes {stable_mosaic.version = 11 : i64} {
  func.func @attn_net_kernel(%arg0: i32, %arg1: memref<256x1024xbf16, #tpu.memory_space<vmem>>, %arg2: memref<1024x256xbf16, #tpu.memory_space<vmem>>, %arg3: memref<1x256xf32, #tpu.memory_space<vmem>>, %arg4: memref<1x256xf32, #tpu.memory_space<vmem>>, %arg5: memref<1x1xf32, #tpu.memory_space<vmem>>, %arg6: memref<256x1xf32, #tpu.memory_space<vmem>>) attributes {dimension_semantics = [#tpu.dimension_semantics<parallel>], iteration_bounds = array<i64: 4>, scalar_prefetch = 0 : i64, scratch_operands = 0 : i64, tpu.core_type = #tpu.core_type<tc>, window_params = [{transform_indices = @transform_0, window_bounds = array<i64: 256, 1024>}, {pipeline_mode = #tpu.pipeline_mode<synchronous>, transform_indices = @transform_1, window_bounds = array<i64: 1024, 256>}, {pipeline_mode = #tpu.pipeline_mode<synchronous>, transform_indices = @transform_2, window_bounds = array<i64: 1, 256>}, {pipeline_mode = #tpu.pipeline_mode<synchronous>, transform_indices = @transform_3, window_bounds = array<i64: 1, 256>}, {pipeline_mode = #tpu.pipeline_mode<synchronous>, transform_indices = @transform_4, window_bounds = array<i64: 1, 1>}, {transform_indices = @transform_5, window_bounds = array<i64: 256, 1>}]} {
    %c0 = arith.constant 0 : index
    %c0_0 = arith.constant 0 : index
    %0 = vector.load %arg1[%c0, %c0_0] : memref<256x1024xbf16, #tpu.memory_space<vmem>>, vector<256x1024xbf16>
    %c0_1 = arith.constant 0 : index
    %c0_2 = arith.constant 0 : index
    %1 = vector.load %arg2[%c0_1, %c0_2] : memref<1024x256xbf16, #tpu.memory_space<vmem>>, vector<1024x256xbf16>
    %cst = arith.constant dense<0.000000e+00> : vector<256x256xf32>
    %2 = tpu.matmul %0, %1, %cst {dimension_numbers = #tpu.dot_dimension_numbers<[1], [0], [0], [1], [0, 0, 1, 1], [], []>} : vector<256x1024xbf16>, vector<1024x256xbf16>, vector<256x256xf32> -> vector<256x256xf32>
    %c0_3 = arith.constant 0 : index
    %c0_4 = arith.constant 0 : index
    %3 = vector.load %arg3[%c0_3, %c0_4] : memref<1x256xf32, #tpu.memory_space<vmem>>, vector<1x256xf32>
    %4 = vector.broadcast %3 : vector<1x256xf32> to vector<256x256xf32>
    %5 = arith.addf %2, %4 : vector<256x256xf32>
    %6 = math.tanh %5 : vector<256x256xf32>
    %c0_5 = arith.constant 0 : index
    %c0_6 = arith.constant 0 : index
    %7 = vector.load %arg4[%c0_5, %c0_6] : memref<1x256xf32, #tpu.memory_space<vmem>>, vector<1x256xf32>
    %8 = vector.broadcast %7 : vector<1x256xf32> to vector<256x256xf32>
    %9 = arith.mulf %6, %8 : vector<256x256xf32>
    %cst_7 = arith.constant dense<0.000000e+00> : vector<256xf32>
    %10 = vector.multi_reduction <add>, %9, %cst_7 [1] : vector<256x256xf32> to vector<256xf32>
    %11 = vector.shape_cast %10 : vector<256xf32> to vector<256x1xf32>
    %c0_8 = arith.constant 0 : index
    %c0_9 = arith.constant 0 : index
    %12 = vector.load %arg5[%c0_8, %c0_9] : memref<1x1xf32, #tpu.memory_space<vmem>>, vector<1x1xf32>
    %13 = vector.broadcast %12 : vector<1x1xf32> to vector<256x1xf32>
    %14 = arith.addf %11, %13 : vector<256x1xf32>
    %c0_10 = arith.constant 0 : index
    %c0_11 = arith.constant 0 : index
    %15 = vector.load %arg6[%c0_10, %c0_11] : memref<256x1xf32, #tpu.memory_space<vmem>>, vector<256x1xf32>
    tpu.vector_store %arg6[%c0_10, %c0_11], %14 {strides = array<i32>} : memref<256x1xf32, #tpu.memory_space<vmem>>, vector<256x1xf32>,
    return
  }
  func.func @transform_0(%arg0: i32) -> (i32, i32) {
    %c0_i32 = arith.constant 0 : i32
    %c0_i32_0 = arith.constant 0 : i32
    return %arg0, %c0_i32 : i32, i32
  }
  func.func @transform_1(%arg0: i32) -> (i32, i32) {
    %c0_i32 = arith.constant 0 : i32
    %c0_i32_0 = arith.constant 0 : i32
    %c0_i32_1 = arith.constant 0 : i32
    return %c0_i32, %c0_i32_0 : i32, i32
  }
  func.func @transform_2(%arg0: i32) -> (i32, i32) {
    %c0_i32 = arith.constant 0 : i32
    %c0_i32_0 = arith.constant 0 : i32
    %c0_i32_1 = arith.constant 0 : i32
    return %c0_i32, %c0_i32_0 : i32, i32
  }
  func.func @transform_3(%arg0: i32) -> (i32, i32) {
    %c0_i32 = arith.constant 0 : i32
    %c0_i32_0 = arith.constant 0 : i32
    %c0_i32_1 = arith.constant 0 : i32
    return %c0_i32, %c0_i32_0 : i32, i32
  }
  func.func @transform_4(%arg0: i32) -> (i32, i32) {
    %c0_i32 = arith.constant 0 : i32
    %c0_i32_0 = arith.constant 0 : i32
    %c0_i32_1 = arith.constant 0 : i32
    return %c0_i32, %c0_i32_0 : i32, i32
  }
  func.func @transform_5(%arg0: i32) -> (i32, i32) {
    %c0_i32 = arith.constant 0 : i32
    %c0_i32_0 = arith.constant 0 : i32
    return %arg0, %c0_i32 : i32, i32
  }
}

</mosaic_0001>

<bundles_post_ra>
// kernel: tpu_custom_call.1
= control target key start
LH: loop header
LB: loop body
LE: loop exit
PB: predicated region body
PF: predicated region fallthrough
CT: control target
= control target key end

     0   :  { %s6789_s0 = inlined_call_operand.hbm [shape: bf16[1024,1024], index: 0, kind: input, shape index: {}]   ;;  %s6790_s1 = inlined_call_operand.hbm [shape: bf16[1024,256], index: 1, kind: input, shape index: {}]   ;;  %s6791_s2 = inlined_call_operand.hbm [shape: f32[1,256], index: 2, kind: input, shape index: {}]   ;;  %s6792_s3 = inlined_call_operand.hbm [shape: f32[1,256], index: 3, kind: input, shape index: {}]   ;;  %s6793_s4 = inlined_call_operand.<no memory space> [shape: f32[1,1], index: 4, kind: input, shape index: {}]   ;;  %s6794_s5 = inlined_call_operand.vmem [shape: f32[1024,1], index: 5, kind: output, shape index: {}]  }
   0x1   :  { %v10_v0 = vstv %s6793_s4 }
   0x2   :  { %11 = vst [vmem:[#allocation2] sm:$0x1] %v10_v0 }
   0x3   :  { %12 = vsyncpa [#allocation4], 0 }
   0x4   :  { %14 = vsyncpa [#allocation4 + $0x1], 0 }
   0x5   :  { %15 = vsyncpa [#allocation6], 0 }
   0x6   :  { %16 = vsyncpa [#allocation9], 0  ;;  %s5369_s20 = smov 0   ;;  %s5371_s21 = smov 0  }
   0x7   :  { %s5373_s22 = smov 0   ;;  %s5375_s23 = smov 0  }
   0x8 LB: > { %s3659_s4 = sadd.s32 4294967295, %s5327_s23   ;;  %p42_p0 = scmp.ne.s32.totalorder %s5319_s21, %s5315_s20  ;;  %s5327_s23 = sphi %s5375_s23, %s7175_s23   ;;  %s5323_s22 = sphi %s5373_s22, %s7174_s22   ;;  %s5319_s21 = sphi %s5371_s21, %s7173_s21   ;;  %s5315_s20 = sphi %s5369_s20, %s7172_s20  }
   0x9   : > { %p5391_p1 = scmp.eq.s32.totalorder %s3659_s4, 0  ;;  %p3661_p2 = scmp.ge.s32.totalorder %s5327_s23, 1 }
   0xa   : > { %p163_p3 = scmp.lt.s32.totalorder %s5327_s23, 5  ;;  %s174_s28 = sshll.u32 %s6790_s1, 4  ;;  %s175_s28 = int_to_ptr.hbm [resolvable:$true] %s174_s28 }
   0xb   : > { %p5399_p4 = por %p5391_p1, %p42_p0  ;;  %s5329_s30 = smov [#allocation5]  }
   0xc   : > { %p5406_p5 = pnand %p3661_p2, %p163_p3  ;;  %s176_s6 = sshll.u32 %s5329_s30, 4  ;;  %s177_s6 = int_to_ptr.vmem [resolvable:$true] %s176_s6 }
   0xd   : > { %s189_s10 = sshll.u32 %s6791_s2, 4  ;;  %s5330_s11 = smov 128   ;;  %s190_s10 = int_to_ptr.hbm [resolvable:$true] %s189_s10 }
   0xe   : > { %p4975_p6 = pneg %p5406_p5  ;;  %s5331_s12 = smov 8  }
   0xf   : > { %s5332_s13 = smov [#allocation7]   ;;  %s201_s17 = sshll.u32 %s6792_s3, 4  ;;  %s202_s17 = int_to_ptr.hbm [resolvable:$true] %s201_s17 }
  0x10   : > { %p5414_p7 = pnand %p4975_p6, %p5391_p1  ;;  %s191_s14 = sshll.u32 %s5332_s13, 4  ;;  %s192_s14 = int_to_ptr.vmem [resolvable:$true] %s191_s14 }
  0x11   : > { %s5333_s18 = smov [#allocation8]   ;;  %s5429_s20 = sadd.s32 1, %s5327_s23  }
  0x12   : > { %4978 = dma.hbm_to_vmem [thread:$0]  (!%p5414_p7), %s175_s28, 16384, %s177_s6, [#allocation6], %s5330_s11, %s5330_s11, %s5331_s12  }
  0x13   : > { %4981 = dma.hbm_to_vmem [thread:$0]  (!%p5414_p7), %s190_s10, 32, %s192_s14, [#allocation6]  }
  0x14   : > { %s203_s19 = sshll.u32 %s5333_s18, 4  ;;  %s26_s26 = ssub.s32 %s5327_s23, %s5429_s20  ;;  %s204_s19 = int_to_ptr.vmem [resolvable:$true] %s203_s19 }
  0x15   : > { %4984 = dma.hbm_to_vmem [thread:$0]  (!%p5414_p7), %s202_s17, 32, %s204_s19, [#allocation9]  }
  0x16   : > { %s29_s27 = sadd.s32 1, %s5323_s22  ;;  %p27_p8 = scmp.eq.s32.totalorder %s26_s26, 0 }
  0x17   : > { %p36_p9 = scmp.ne.s32.totalorder %s5323_s22, %s5319_s21  ;;  %p37_p10 = scmp.eq.s32.totalorder %s5327_s23, 0 }
  0x18   : > { %p4992_p11 = scmp.lt.s32.totalorder %s5327_s23, 4  ;;  %s217_s30 = sand.u32 1, %s5323_s22  }
  0x19   : > { %s5441_s28 = scalar_select %p27_p8, %s5323_s22, %s29_s27  }
  0x1a   : > { %p38_p12 = por %p37_p10, %p36_p9  ;;  %s3666_s6 = sshll.u32 %s217_s30, 10 }
  0x1b   : > { %s4704_s8 = sshll.u32 %s5327_s23, 10  ;;  %s221_s12 = scalar_lea.vmem [#allocation3], %s3666_s6 }
  0x1c   : > { %s227_s11 = scalar_lea.hbm %s6789_s0, %s4704_s8  ;;  %s230_s7 = sshll.u32 %s221_s12, 4  ;;  %s231_s7 = int_to_ptr.vmem [resolvable:$true] %s230_s7 }
  0x1d   : > { %s228_s13 = sshll.u32 %s227_s11, 4  ;;  %p5448_p13 = pnand %p4992_p11, %p38_p12  ;;  %s229_s13 = int_to_ptr.hbm [resolvable:$true] %s228_s13 }
  0x1e   : > { %s218_s15 = scalar_lea.sflag [#allocation4], %s217_s30  ;;  %s5255_s16 = sshra.s32 %s229_s13, 4  ;;  %s5256_s16 = int_to_ptr.hbm [resolvable:$true] %s5255_s16 }
  0x1f   : > { %s5257_s17 = scalar_lea.hbm %s5256_s16, 1024  ;;  %p5259_p2 = pneg %p5448_p13 }
  0x20   : > { %p5258_p0 = scmp.ne.s32.totalorder %s5256_s16, %s5257_s17  ;;  %s5262_s26 = scalar_lea.hbm %s6789_s0, 4096 }
  0x21   : > { %p5263_p7 = scmp.lt.s32.totalorder %s5256_s16, %s6789_s0  ;;  %p5264_p8 = scmp.lt.s32.totalorder %s5262_s26, %s5257_s17 }
  0x22   : > { %p5260_p3 = pnand %p5259_p2, %p5258_p0 }
  0x23   : > { %p5265_p9 = por %p5264_p8, %p5263_p7 }
  0x24   : > { %p5261_p6 = pneg %p5260_p3 }
  0x26   : > { %p5266_p10 = pnand %p5265_p9, %p5261_p6 }
  0x28   : > { %5269 = shalt.err (!%p5266_p10)
}
  0x29   : > { %s5334_s30 = smov 512   ;;  %s5335_s8 = smov 32  }
  0x2a   : > { %4988 = dma.hbm_to_vmem [thread:$0]  (!%p5448_p13), %s229_s13, 16384, %s231_s7, %s218_s15, %s5334_s30, %s5334_s30, %s5335_s8  }
  0x2b   : > { %242 = sbr.rel (%p5406_p5) target bundleno = 1374 (0x55e), region = 40 }
  0x30   : > { %s244_s9 = sand.u32 1, %s5319_s21  }
  0x31   : > { %s3671_s10 = sshll.u32 %s244_s9, 10  ;;  %s245_s11 = scalar_lea.sflag [#allocation4], %s244_s9 }
  0x32   : > { %s5465_s12 = scalar_lea.vmem [#allocation3], %s3671_s10 }
  0x33   : > { %5302 = dma.done.wait (%p5399_p4), %s245_s11, 16384  }
  0x34   : > { %5304 = vsyncadd (%p5399_p4), %s245_s11, 4294950912 }
  0x35   : > { %5306 = dma.done.wait (%p5391_p1), [#allocation6], 16416  }
  0x36   : > { %5308 = vsyncadd (%p5391_p1), [#allocation6], 4294950880 }
  0x37   : > { %5310 = dma.done.wait (%p5391_p1), [#allocation9], 32  }
  0x38   : > { %5312 = vsyncadd (%p5391_p1), [#allocation9], 4294967264  ;;  %v4247_v1 = vld [vmem:[#allocation5 + $0x70] sm:$0xf]  ;;  %v4848_v2 = vld [vmem:[#allocation5 + $0x74] sm:$0xf0] }
  0x39   : > { %v4311_v3 = vld [vmem:[#allocation5 + $0xf0] sm:$0xf]  ;;  %v4248_v4 = vor.u32 %v4848_v2, %v4247_v1  ;;  %v4864_v5 = vld [vmem:[#allocation5 + $0xf4] sm:$0xf0]  ;;  %v4239_v12 = vld [vmem:[#allocation5 + $0x60] sm:$0xf] }
  0x3a   : > { %v4375_v6 = vld [vmem:[#allocation5 + $0x170] sm:$0xf]  ;;  %v4880_v7 = vld [vmem:[#allocation5 + $0x174] sm:$0xf0]  ;;  %v4312_v8 = vor.u32 %v4864_v5, %v4311_v3  ;;  %v4846_v14 = vld [vmem:[#allocation5 + $0x64] sm:$0xf0] }
  0x3b   : > { %v4376_v9 = vor.u32 %v4880_v7, %v4375_v6  ;;  %v4439_v10 = vld [vmem:[#allocation5 + $0x1f0] sm:$0xf]  ;;  %v4896_v11 = vld [vmem:[#allocation5 + $0x1f4] sm:$0xf0]  ;;  %1840 = vmatpush.bf16.msra.mxu0 %v4248_v4  ;;  %v4303_v15 = vld [vmem:[#allocation5 + $0xe0] sm:$0xf]  ;;  %v4240_v17 = vor.u32 %v4846_v14, %v4239_v12 }
  0x3c   : > { %v4440_v13 = vor.u32 %v4896_v11, %v4439_v10  ;;  %v4862_v16 = vld [vmem:[#allocation5 + $0xe4] sm:$0xf0]  ;;  %1929 = vmatpush.bf16.msra.mxu1 %v4312_v8  ;;  %v4367_v19 = vld [vmem:[#allocation5 + $0x160] sm:$0xf]  ;;  %v4231_v24 = vld [vmem:[#allocation5 + $0x50] sm:$0xf] }
  0x3d   : > { %2018 = vmatpush.bf16.msra.mxu2 %v4376_v9  ;;  %v4304_v18 = vor.u32 %v4862_v16, %v4303_v15  ;;  %v4878_v20 = vld [vmem:[#allocation5 + $0x164] sm:$0xf0]  ;;  %v4431_v21 = vld [vmem:[#allocation5 + $0x1e0] sm:$0xf]  ;;  %v4844_v25 = vld [vmem:[#allocation5 + $0x54] sm:$0xf0] }
  0x3e   : > { %2107 = vmatpush.bf16.msra.mxu3 %v4440_v13  ;;  %v4368_v22 = vor.u32 %v4878_v20, %v4367_v19  ;;  %v4894_v23 = vld [vmem:[#allocation5 + $0x1e4] sm:$0xf0]  ;;  %v4295_v27 = vld [vmem:[#allocation5 + $0xd0] sm:$0xf]  ;;  %v4860_v28 = vld [vmem:[#allocation5 + $0xd4] sm:$0xf0]  ;;  %v4232_v30 = vor.u32 %v4844_v25, %v4231_v24 }
  0x3f   : > { %v4432_v26 = vor.u32 %v4894_v23, %v4431_v21  ;;  %v4359_v29 = vld [vmem:[#allocation5 + $0x150] sm:$0xf]  ;;  %1841 = vmatpush.bf16.msra.mxu0 %v4240_v17  ;;  %v4876_v31 = vld [vmem:[#allocation5 + $0x154] sm:$0xf0]  ;;  %v4296_v34 = vor.u32 %v4860_v28, %v4295_v27  ;;  %v4223_v36 = vld [vmem:[#allocation5 + $0x40] sm:$0xf] }
  0x40   : > { %v4423_v32 = vld [vmem:[#allocation5 + $0x1d0] sm:$0xf]  ;;  %v4892_v33 = vld [vmem:[#allocation5 + $0x1d4] sm:$0xf0]  ;;  %1930 = vmatpush.bf16.msra.mxu1 %v4304_v18  ;;  %v4360_v35 = vor.u32 %v4876_v31, %v4359_v29  ;;  %v4842_v37 = vld [vmem:[#allocation5 + $0x44] sm:$0xf0] }
  0x41   : > { %2019 = vmatpush.bf16.msra.mxu2 %v4368_v22  ;;  %v4287_v38 = vld [vmem:[#allocation5 + $0xc0] sm:$0xf]  ;;  %v4424_v39 = vor.u32 %v4892_v33, %v4423_v32  ;;  %v4858_v40 = vld [vmem:[#allocation5 + $0xc4] sm:$0xf0]  ;;  %v4224_v45 = vor.u32 %v4842_v37, %v4223_v36  ;;  %v4215_v48 = vld [vmem:[#allocation5 + $0x30] sm:$0xf] }
  0x42   : > { %2108 = vmatpush.bf16.msra.mxu3 %v4432_v26  ;;  %v4351_v41 = vld [vmem:[#allocation5 + $0x140] sm:$0xf]  ;;  %v4874_v42 = vld [vmem:[#allocation5 + $0x144] sm:$0xf0]  ;;  %v4288_v46 = vor.u32 %v4858_v40, %v4287_v38  ;;  %v4840_v49 = vld [vmem:[#allocation5 + $0x34] sm:$0xf0] }
  0x43   : > { %v4415_v43 = vld [vmem:[#allocation5 + $0x1c0] sm:$0xf]  ;;  %v4890_v44 = vld [vmem:[#allocation5 + $0x1c4] sm:$0xf0]  ;;  %1842 = vmatpush.bf16.msra.mxu0 %v4232_v30  ;;  %v4352_v47 = vor.u32 %v4874_v42, %v4351_v41  ;;  %v4279_v50 = vld [vmem:[#allocation5 + $0xb0] sm:$0xf]  ;;  %v4216_v57 = vor.u32 %v4840_v49, %v4215_v48 }
  0x44   : > { %1931 = vmatpush.bf16.msra.mxu1 %v4296_v34  ;;  %v4416_v51 = vor.u32 %v4890_v44, %v4415_v43  ;;  %v4856_v52 = vld [vmem:[#allocation5 + $0xb4] sm:$0xf0]  ;;  %v4343_v53 = vld [vmem:[#allocation5 + $0x130] sm:$0xf]  ;;  %v4207_v60 = vld [vmem:[#allocation5 + $0x20] sm:$0xf] }
  0x45   : > { %2020 = vmatpush.bf16.msra.mxu2 %v4360_v35  ;;  %v4872_v54 = vld [vmem:[#allocation5 + $0x134] sm:$0xf0]  ;;  %v4407_v55 = vld [vmem:[#allocation5 + $0x1b0] sm:$0xf]  ;;  %v4280_v58 = vor.u32 %v4856_v52, %v4279_v50  ;;  %v4838_v61 = vld [vmem:[#allocation5 + $0x24] sm:$0xf0] }
  0x46   : > { %2109 = vmatpush.bf16.msra.mxu3 %v4424_v39  ;;  %v4888_v56 = vld [vmem:[#allocation5 + $0x1b4] sm:$0xf0]  ;;  %v4344_v59 = vor.u32 %v4872_v54, %v4343_v53  ;;  %v4271_v62 = vld [vmem:[#allocation5 + $0xa0] sm:$0xf]  ;;  %v4854_v0 = vld [vmem:[#allocation5 + $0xa4] sm:$0xf0]  ;;  %v4208_v5 = vor.u32 %v4838_v61, %v4207_v60 }
  0x47   : > { %1843 = vmatpush.bf16.msra.mxu0 %v4224_v45  ;;  %v4408_v63 = vor.u32 %v4888_v56, %v4407_v55  ;;  %v4335_v1 = vld [vmem:[#allocation5 + $0x120] sm:$0xf]  ;;  %v4870_v2 = vld [vmem:[#allocation5 + $0x124] sm:$0xf0]  ;;  %v4272_v6 = vor.u32 %v4854_v0, %v4271_v62  ;;  %v4199_v8 = vld [vmem:[#allocation5 + $0x10] sm:$0xf] }
  0x48   : > { %1932 = vmatpush.bf16.msra.mxu1 %v4288_v46  ;;  %v4399_v3 = vld [vmem:[#allocation5 + $0x1a0] sm:$0xf]  ;;  %v4886_v4 = vld [vmem:[#allocation5 + $0x1a4] sm:$0xf0]  ;;  %v4336_v7 = vor.u32 %v4870_v2, %v4335_v1  ;;  %v4836_v9 = vld [vmem:[#allocation5 + $0x14] sm:$0xf0] }
  0x49   : > { %2021 = vmatpush.bf16.msra.mxu2 %v4352_v47  ;;  %v4263_v10 = vld [vmem:[#allocation5 + $0x90] sm:$0xf]  ;;  %v4400_v11 = vor.u32 %v4886_v4, %v4399_v3  ;;  %v4852_v12 = vld [vmem:[#allocation5 + $0x94] sm:$0xf0]  ;;  %v4191_v17 = vld [vmem:[#allocation5] sm:$0xf]  ;;  %v4200_v18 = vor.u32 %v4836_v9, %v4199_v8 }
  0x4a   : > { %2110 = vmatpush.bf16.msra.mxu3 %v4416_v51  ;;  %v4327_v13 = vld [vmem:[#allocation5 + $0x110] sm:$0xf]  ;;  %v4868_v14 = vld [vmem:[#allocation5 + $0x114] sm:$0xf0]  ;;  %v4834_v19 = vld [vmem:[#allocation5 + $0x4] sm:$0xf0]  ;;  %v4264_v22 = vor.u32 %v4852_v12, %v4263_v10 }
  0x4b   : > { %1844 = vmatpush.bf16.msra.mxu0 %v4216_v57  ;;  %v4391_v15 = vld [vmem:[#allocation5 + $0x190] sm:$0xf]  ;;  %v4884_v16 = vld [vmem:[#allocation5 + $0x194] sm:$0xf0]  ;;  %v4255_v20 = vld [vmem:[#allocation5 + $0x80] sm:$0xf]  ;;  %v4328_v23 = vor.u32 %v4868_v14, %v4327_v13  ;;  %v4192_v34 = vor.u32 %v4834_v19, %v4191_v17 }
  0x4c   : > { %1933 = vmatpush.bf16.msra.mxu1 %v4280_v58  ;;  %v4850_v21 = vld [vmem:[#allocation5 + $0x84] sm:$0xf0]  ;;  %v4319_v24 = vld [vmem:[#allocation5 + $0x100] sm:$0xf]  ;;  %v4392_v27 = vor.u32 %v4884_v16, %v4391_v15  ;;  %v4705_v31 = vld [vmem:[%s5465_s12 + $0x4] sm:$0xf] }
  0x4d   : > { %2022 = vmatpush.bf16.msra.mxu2 %v4344_v59  ;;  %v4866_v25 = vld [vmem:[#allocation5 + $0x104] sm:$0xf0]  ;;  %v4383_v26 = vld [vmem:[#allocation5 + $0x180] sm:$0xf]  ;;  %v4631_v32 = vld [vmem:[#allocation5 + $0x370] sm:$0xf]  ;;  %v4256_v38 = vor.u32 %v4850_v21, %v4255_v20 }
  0x4e   : > { %2111 = vmatpush.bf16.msra.mxu3 %v4408_v63  ;;  %v4882_v28 = vld [vmem:[#allocation5 + $0x184] sm:$0xf0]  ;;  %v3679_v29 = vld [vmem:[%s5465_s12] sm:$0xf]  ;;  %v4944_v33 = vld [vmem:[#allocation5 + $0x374] sm:$0xf0]  ;;  %v4320_v39 = vor.u32 %v4866_v25, %v4319_v24 }
  0x4f   : > { %1845 = vmatpush.bf16.msra.mxu0 %v4208_v5  ;;  %v4709_v30 = vld [vmem:[%s5465_s12 + $0x1c] sm:$0xf0]  ;;  %v3681_v35 = vld [vmem:[%s5465_s12 + $0x20] sm:$0xf0]  ;;  %v4695_v36 = vld [vmem:[#allocation5 + $0x3f0] sm:$0xf]  ;;  %v4384_v43 = vor.u32 %v4882_v28, %v4383_v26  ;;  %v4632_v45 = vor.u32 %v4944_v33, %v4631_v32 }
  0x50   : > { %1934 = vmatpush.bf16.msra.mxu1 %v4272_v6  ;;  %v4960_v37 = vld [vmem:[#allocation5 + $0x3f4] sm:$0xf0]  ;;  %v3687_v40 = vld [vmem:[%s5465_s12 + $0x8] sm:$0xf]  ;;  %v4706_v42 = vld [vmem:[%s5465_s12 + $0xc] sm:$0xf]  ;;  %v5487_v48 = vor.u32 %v4709_v30, %v3679_v29  ;;  %v5489_v52 = vor.u32 %v4705_v31, %v3681_v35 }
  0x51   : > { %2023 = vmatpush.bf16.msra.mxu2 %v4336_v7  ;;  %v4710_v41 = vld [vmem:[%s5465_s12 + $0x24] sm:$0xf0]  ;;  %v3689_v44 = vld [vmem:[%s5465_s12 + $0x28] sm:$0xf0]  ;;  %v4503_v46 = vld [vmem:[#allocation5 + $0x270] sm:$0xf]  ;;  %v4696_v49 = vor.u32 %v4960_v37, %v4695_v36 }
  0x52   : > { %2112 = vmatpush.bf16.msra.mxu3 %v4400_v11  ;;  %v4912_v47 = vld [vmem:[#allocation5 + $0x274] sm:$0xf0]  ;;  %v4567_v50 = vld [vmem:[#allocation5 + $0x2f0] sm:$0xf]  ;;  %v5491_v53 = vor.u32 %v4710_v41, %v3687_v40  ;;  %v5493_v54 = vor.u32 %v4706_v42, %v3689_v44  ;;  %v4623_v57 = vld [vmem:[#allocation5 + $0x360] sm:$0xf] }
  0x53   : > { %1846 = vmatpush.bf16.msra.mxu0 %v4200_v18  ;;  %v4928_v51 = vld [vmem:[#allocation5 + $0x2f4] sm:$0xf0]  ;;  %v4504_v55 = vor.u32 %v4912_v47, %v4503_v46  ;;  %v4942_v58 = vld [vmem:[#allocation5 + $0x364] sm:$0xf0]  ;;  %v4495_v59 = vld [vmem:[#allocation5 + $0x260] sm:$0xf] }
  0x54   : > { %1935 = vmatpush.bf16.msra.mxu1 %v4264_v22  ;;  %v4568_v56 = vor.u32 %v4928_v51, %v4567_v50  ;;  %v4624_v60 = vor.u32 %v4942_v58, %v4623_v57  ;;  %v4910_v61 = vld [vmem:[#allocation5 + $0x264] sm:$0xf0]  ;;  %v4687_v62 = vld [vmem:[#allocation5 + $0x3e0] sm:$0xf]  ;;  %v4713_v7 = vld [vmem:[%s5465_s12 + $0x44] sm:$0xf] }
  0x55   : > { %2024 = vmatpush.bf16.msra.mxu2 %v4328_v23  ;;  %v4958_v63 = vld [vmem:[#allocation5 + $0x3e4] sm:$0xf0]  ;;  %v4496_v0 = vor.u32 %v4910_v61, %v4495_v59  ;;  %v4559_v2 = vld [vmem:[#allocation5 + $0x2e0] sm:$0xf]  ;;  %v3713_v8 = vld [vmem:[%s5465_s12 + $0x60] sm:$0xf0] }
  0x56   : > { %2113 = vmatpush.bf16.msra.mxu3 %v4392_v27  ;;  %v4688_v1 = vor.u32 %v4958_v63, %v4687_v62  ;;  %v4926_v3 = vld [vmem:[#allocation5 + $0x2e4] sm:$0xf0]  ;;  %v3711_v5 = vld [vmem:[%s5465_s12 + $0x40] sm:$0xf]  ;;  %v4714_v11 = vld [vmem:[%s5465_s12 + $0x4c] sm:$0xf]  ;;  %v5509_v14 = vor.u32 %v4713_v7, %v3713_v8 }
  0x57   : > { %1847 = vmatpush.bf16.msra.mxu0 %v4192_v34  ;;  %v4560_v4 = vor.u32 %v4926_v3, %v4559_v2  ;;  %v4717_v6 = vld [vmem:[%s5465_s12 + $0x5c] sm:$0xf0]  ;;  %v3719_v9 = vld [vmem:[%s5465_s12 + $0x48] sm:$0xf]  ;;  %v3721_v12 = vld [vmem:[%s5465_s12 + $0x68] sm:$0xf0] }
  0x58   : > { %1936 = vmatpush.bf16.msra.mxu1 %v4256_v38  ;;  %v4718_v10 = vld [vmem:[%s5465_s12 + $0x64] sm:$0xf0]  ;;  %v5507_v13 = vor.u32 %v4717_v6, %v3711_v5  ;;  %v5513_v16 = vor.u32 %v4714_v11, %v3721_v12  ;;  %v3743_v17 = vld [vmem:[%s5465_s12 + $0x80] sm:$0xf]  ;;  %v4721_v19 = vld [vmem:[%s5465_s12 + $0x84] sm:$0xf] }
  0x59   : > { %2025 = vmatpush.bf16.msra.mxu2 %v4320_v39  ;;  %v5511_v15 = vor.u32 %v4718_v10, %v3719_v9  ;;  %v4725_v18 = vld [vmem:[%s5465_s12 + $0x9c] sm:$0xf0]  ;;  %v3745_v20 = vld [vmem:[%s5465_s12 + $0xa0] sm:$0xf0]  ;;  %v3751_v21 = vld [vmem:[%s5465_s12 + $0x88] sm:$0xf] }
  0x5a   : > { %2114 = vmatpush.bf16.msra.mxu3 %v4384_v43  ;;  %1848 = vmatmul.bf16.vlgmr.msra.gmra.mxu0 %v5487_v48  ;;  %v4726_v22 = vld [vmem:[%s5465_s12 + $0xa4] sm:$0xf0]  ;;  %v4722_v23 = vld [vmem:[%s5465_s12 + $0x8c] sm:$0xf]  ;;  %v5527_v25 = vor.u32 %v4725_v18, %v3743_v17  ;;  %v5529_v26 = vor.u32 %v4721_v19, %v3745_v20  ;;  %v4615_v29 = vld [vmem:[#allocation5 + $0x350] sm:$0xf] }
  0x5b   : > { %1937 = vmatmul.bf16.vlgmr.msra.gmra.mxu1 %v5489_v52  ;;  %2196 = vmatpush.bf16.msrb.mxu0 %v4504_v55  ;;  %v3753_v24 = vld [vmem:[%s5465_s12 + $0xa8] sm:$0xf0]  ;;  %v5531_v27 = vor.u32 %v4726_v22, %v3751_v21  ;;  %v4940_v30 = vld [vmem:[#allocation5 + $0x354] sm:$0xf0]  ;;  %v4487_v31 = vld [vmem:[#allocation5 + $0x250] sm:$0xf] }
  0x5c   : > { %2026 = vmatmul.bf16.vlgmr.msra.gmra.mxu2 %v5491_v53  ;;  %2285 = vmatpush.bf16.msrb.mxu1 %v4568_v56  ;;  %v5533_v28 = vor.u32 %v4722_v23, %v3753_v24  ;;  %v4616_v32 = vor.u32 %v4940_v30, %v4615_v29  ;;  %v4908_v33 = vld [vmem:[#allocation5 + $0x254] sm:$0xf0]  ;;  %v4679_v34 = vld [vmem:[#allocation5 + $0x3d0] sm:$0xf]  ;;  %v3775_v41 = vld [vmem:[%s5465_s12 + $0xc0] sm:$0xf] }
  0x5d   : > { %2374 = vmatpush.bf16.msrb.mxu2 %v4632_v45  ;;  %2115 = vmatmul.bf16.vlgmr.msra.gmra.mxu3 %v5493_v54  ;;  %v4956_v35 = vld [vmem:[#allocation5 + $0x3d4] sm:$0xf0]  ;;  %v4488_v36 = vor.u32 %v4908_v33, %v4487_v31  ;;  %v4551_v38 = vld [vmem:[#allocation5 + $0x2d0] sm:$0xf]  ;;  %v4733_v42 = vld [vmem:[%s5465_s12 + $0xdc] sm:$0xf0] }
  0x5e   : > { %2463 = vmatpush.bf16.msrb.mxu3 %v4696_v49  ;;  %v4680_v37 = vor.u32 %v4956_v35, %v4679_v34  ;;  %v4924_v39 = vld [vmem:[#allocation5 + $0x2d4] sm:$0xf0]  ;;  %v4729_v43 = vld [vmem:[%s5465_s12 + $0xc4] sm:$0xf]  ;;  %v3783_v45 = vld [vmem:[%s5465_s12 + $0xc8] sm:$0xf]  ;;  %v5547_v50 = vor.u32 %v4733_v42, %v3775_v41 }
  0x5f   : > { %2197 = vmatpush.bf16.msrb.mxu0 %v4496_v0  ;;  %v4552_v40 = vor.u32 %v4924_v39, %v4551_v38  ;;  %v3777_v44 = vld [vmem:[%s5465_s12 + $0xe0] sm:$0xf0]  ;;  %v4734_v46 = vld [vmem:[%s5465_s12 + $0xe4] sm:$0xf0]  ;;  %v4730_v47 = vld [vmem:[%s5465_s12 + $0xcc] sm:$0xf] }
  0x60   : > { %2286 = vmatpush.bf16.msrb.mxu1 %v4560_v4  ;;  %v3785_v49 = vld [vmem:[%s5465_s12 + $0xe8] sm:$0xf0]  ;;  %v5549_v51 = vor.u32 %v4729_v43, %v3777_v44  ;;  %v5551_v55 = vor.u32 %v4734_v46, %v3783_v45  ;;  %v3807_v57 = vld [vmem:[%s5465_s12 + $0x100] sm:$0xf]  ;;  %v4737_v59 = vld [vmem:[%s5465_s12 + $0x104] sm:$0xf] }
  0x61   : > { %2375 = vmatpush.bf16.msrb.mxu2 %v4624_v60  ;;  %v5553_v56 = vor.u32 %v4730_v47, %v3785_v49  ;;  %v4741_v58 = vld [vmem:[%s5465_s12 + $0x11c] sm:$0xf0]  ;;  %v3809_v60 = vld [vmem:[%s5465_s12 + $0x120] sm:$0xf0]  ;;  %v3815_v61 = vld [vmem:[%s5465_s12 + $0x108] sm:$0xf] }
  0x62   : > { %2464 = vmatpush.bf16.msrb.mxu3 %v4688_v1  ;;  %v4742_v62 = vld [vmem:[%s5465_s12 + $0x124] sm:$0xf0]  ;;  %v4738_v63 = vld [vmem:[%s5465_s12 + $0x10c] sm:$0xf]  ;;  %v5567_v1 = vor.u32 %v4741_v58, %v3807_v57  ;;  %v5569_v2 = vor.u32 %v4737_v59, %v3809_v60  ;;  %v4607_v5 = vld [vmem:[#allocation5 + $0x340] sm:$0xf] }
  0x63   : > { %2198 = vmatpush.bf16.msrb.mxu0 %v4488_v36  ;;  %v3817_v0 = vld [vmem:[%s5465_s12 + $0x128] sm:$0xf0]  ;;  %v5571_v3 = vor.u32 %v4742_v62, %v3815_v61  ;;  %v4938_v6 = vld [vmem:[#allocation5 + $0x344] sm:$0xf0]  ;;  %v4479_v7 = vld [vmem:[#allocation5 + $0x240] sm:$0xf] }
  0x64   : > { %2287 = vmatpush.bf16.msrb.mxu1 %v4552_v40  ;;  %6905 = vst [vmem:[#allocation13_spill] sm:$0xff] %v5567_v1  ;;  %v5573_v4 = vor.u32 %v4738_v63, %v3817_v0  ;;  %v4608_v8 = vor.u32 %v4938_v6, %v4607_v5  ;;  %v4906_v9 = vld [vmem:[#allocation5 + $0x244] sm:$0xf0]  ;;  %v4671_v10 = vld [vmem:[#allocation5 + $0x3c0] sm:$0xf]  ;;  %s3675_s24 = sshll.u32 %s3659_s4, 5 }
  0x65   : > { %2376 = vmatpush.bf16.msrb.mxu2 %v4616_v32  ;;  %6906 = vst [vmem:[#allocation14_spill] sm:$0xff] %v5569_v2  ;;  %v4954_v11 = vld [vmem:[#allocation5 + $0x3c4] sm:$0xf0]  ;;  %v4480_v12 = vor.u32 %v4906_v9, %v4479_v7  ;;  %v4543_v18 = vld [vmem:[#allocation5 + $0x2c0] sm:$0xf]  ;;  %p293_p1 = scmp.lt.s32.totalorder %s3675_s24, 127 }
  0x66   : > { %2465 = vmatpush.bf16.msrb.mxu3 %v4680_v37  ;;  %6907 = vst [vmem:[#allocation15_spill] sm:$0xff] %v5571_v3  ;;  %v4672_v17 = vor.u32 %v4954_v11, %v4671_v10  ;;  %v4922_v19 = vld [vmem:[#allocation5 + $0x2c4] sm:$0xf0]  ;;  %v3839_v21 = vld [vmem:[%s5465_s12 + $0x140] sm:$0xf]  ;;  %vm3530_vm0 = vcmask 7168  }
  0x67   : > { %6908 = vst [vmem:[#allocation16_spill] sm:$0xff] %v5573_v4  ;;  %v4544_v20 = vor.u32 %v4922_v19, %v4543_v18  ;;  %2199 = vmatpush.bf16.msrb.mxu0 %v4480_v12  ;;  %v4749_v22 = vld [vmem:[%s5465_s12 + $0x15c] sm:$0xf0]  ;;  %v4745_v23 = vld [vmem:[%s5465_s12 + $0x144] sm:$0xf]  ;;  %s7177_s24 = smov (!%p293_p1, %s3675_s24), 127 }
  0x68   : > { %v3841_v24 = vld [vmem:[%s5465_s12 + $0x160] sm:$0xf0]  ;;  %v3847_v29 = vld [vmem:[%s5465_s12 + $0x148] sm:$0xf]  ;;  %v4746_v31 = vld [vmem:[%s5465_s12 + $0x14c] sm:$0xf]  ;;  %v5587_v33 = vor.u32 %v4749_v22, %v3839_v21 }
  0x69   : > { %2377 = vmatpush.bf16.msrb.mxu2 %v4608_v8  ;;  %2288 = vmatpush.bf16.msrb.mxu1 %v4544_v20  ;;  %v4750_v30 = vld [vmem:[%s5465_s12 + $0x164] sm:$0xf0]  ;;  %v3849_v32 = vld [vmem:[%s5465_s12 + $0x168] sm:$0xf0]  ;;  %v5589_v34 = vor.u32 %v4745_v23, %v3841_v24  ;;  %v3871_v37 = vld [vmem:[%s5465_s12 + $0x180] sm:$0xf] }
  0x6a   : > { %1853 = vmatmul.bf16.gmra.mxu0 %v5507_v13  ;;  %2466 = vmatpush.bf16.msrb.mxu3 %v4672_v17  ;;  %6909 = vst [vmem:[#allocation17_spill] sm:$0xff] %v5587_v33  ;;  %v5591_v35 = vor.u32 %v4750_v30, %v3847_v29  ;;  %v5593_v36 = vor.u32 %v4746_v31, %v3849_v32  ;;  %v4757_v38 = vld [vmem:[%s5465_s12 + $0x19c] sm:$0xf0]  ;;  %v4753_v39 = vld [vmem:[%s5465_s12 + $0x184] sm:$0xf]  ;;  %s3676_s23 = sshll.u32 %s7177_s24, 3 }
  0x6b   : > { %1942 = vmatmul.bf16.gmra.mxu1 %v5509_v14  ;;  %6910 = vst [vmem:[#allocation18_spill] sm:$0xff] %v5589_v34  ;;  %v3873_v40 = vld [vmem:[%s5465_s12 + $0x1a0] sm:$0xf0]  ;;  %v3879_v41 = vld [vmem:[%s5465_s12 + $0x188] sm:$0xf]  ;;  %v5607_v45 = vor.u32 %v4757_v38, %v3871_v37  ;;  %s6615_s29 = scalar_lea.vmem %s6794_s5, %s3676_s23 }
  0x6c   : > { %2031 = vmatmul.bf16.gmra.mxu2 %v5511_v15  ;;  %6911 = vst [vmem:[#allocation19_spill] sm:$0xff] %v5591_v35  ;;  %v4758_v42 = vld [vmem:[%s5465_s12 + $0x1a4] sm:$0xf0]  ;;  %v4754_v43 = vld [vmem:[%s5465_s12 + $0x18c] sm:$0xf]  ;;  %v5609_v46 = vor.u32 %v4753_v39, %v3873_v40 }
  0x6d   : > { %2120 = vmatmul.bf16.gmra.mxu3 %v5513_v16  ;;  %6912 = vst [vmem:[#allocation20_spill] sm:$0xff] %v5593_v36  ;;  %v3881_v44 = vld [vmem:[%s5465_s12 + $0x1a8] sm:$0xf0]  ;;  %v5611_v47 = vor.u32 %v4758_v42, %v3879_v41  ;;  %v4599_v57 = vld [vmem:[#allocation5 + $0x330] sm:$0xf] }
  0x6e   : > { %6913 = vst [vmem:[#allocation21_spill] sm:$0xff] %v5607_v45  ;;  %v5613_v49 = vor.u32 %v4754_v43, %v3881_v44  ;;  %v4936_v58 = vld [vmem:[#allocation5 + $0x334] sm:$0xf0]  ;;  %v4471_v59 = vld [vmem:[#allocation5 + $0x230] sm:$0xf] }
  0x6f   : > { %6914 = vst [vmem:[#allocation22_spill] sm:$0xff] %v5609_v46  ;;  %v4600_v60 = vor.u32 %v4936_v58, %v4599_v57  ;;  %v4904_v61 = vld [vmem:[#allocation5 + $0x234] sm:$0xf0]  ;;  %v4663_v62 = vld [vmem:[#allocation5 + $0x3b0] sm:$0xf] }
  0x70   : > { %6915 = vst [vmem:[#allocation23_spill] sm:$0xff] %v5611_v47  ;;  %v4952_v63 = vld [vmem:[#allocation5 + $0x3b4] sm:$0xf0]  ;;  %v4472_v0 = vor.u32 %v4904_v61, %v4471_v59  ;;  %v4535_v6 = vld [vmem:[#allocation5 + $0x2b0] sm:$0xf] }
  0x71   : > { %6916 = vst [vmem:[#allocation24_spill] sm:$0xff] %v5613_v49  ;;  %v4664_v5 = vor.u32 %v4952_v63, %v4663_v62  ;;  %2378 = vmatpush.bf16.msrb.mxu2 %v4600_v60  ;;  %v4920_v7 = vld [vmem:[#allocation5 + $0x2b4] sm:$0xf0]  ;;  %v3903_v9 = vld [vmem:[%s5465_s12 + $0x1c0] sm:$0xf] }
  0x72   : > { %2200 = vmatpush.bf16.msrb.mxu0 %v4472_v0  ;;  %v4536_v8 = vor.u32 %v4920_v7, %v4535_v6  ;;  %v4765_v10 = vld [vmem:[%s5465_s12 + $0x1dc] sm:$0xf0]  ;;  %v4761_v11 = vld [vmem:[%s5465_s12 + $0x1c4] sm:$0xf]  ;;  %v3911_v17 = vld [vmem:[%s5465_s12 + $0x1c8] sm:$0xf] }
  0x73   : > { %2467 = vmatpush.bf16.msrb.mxu3 %v4664_v5  ;;  %v3905_v12 = vld [vmem:[%s5465_s12 + $0x1e0] sm:$0xf0]  ;;  %v4766_v18 = vld [vmem:[%s5465_s12 + $0x1e4] sm:$0xf0]  ;;  %v4762_v19 = vld [vmem:[%s5465_s12 + $0x1cc] sm:$0xf]  ;;  %v5627_v21 = vor.u32 %v4765_v10, %v3903_v9 }
  0x74   : > { %2289 = vmatpush.bf16.msrb.mxu1 %v4536_v8  ;;  %v3913_v20 = vld [vmem:[%s5465_s12 + $0x1e8] sm:$0xf0]  ;;  %v5629_v22 = vor.u32 %v4761_v11, %v3905_v12  ;;  %v5631_v23 = vor.u32 %v4766_v18, %v3911_v17  ;;  %v554_v29 = vld [vmem:[#allocation7] sm:$0x3]  ;;  %v4769_v37 = vld [vmem:[%s5465_s12 + $0x204] sm:$0xf] }
  0x75   : > { %6917 = vst [vmem:[#allocation25_spill] sm:$0xff] %v5627_v21  ;;  %v5633_v24 = vor.u32 %v4762_v19, %v3913_v20  ;;  %v5639_v30 = vperm.slane %v554_v29, 0  ;;  %v3935_v31 = vld [vmem:[%s5465_s12 + $0x200] sm:$0xf]  ;;  %v3937_v38 = vld [vmem:[%s5465_s12 + $0x220] sm:$0xf0] }
  0x76   : > { %6918 = vst [vmem:[#allocation26_spill] sm:$0xff] %v5629_v22  ;;  %v4773_v32 = vld [vmem:[%s5465_s12 + $0x21c] sm:$0xf0]  ;;  %v3943_v39 = vld [vmem:[%s5465_s12 + $0x208] sm:$0xf]  ;;  %v5651_v57 = vor.u32 %v4769_v37, %v3937_v38 }
  0x77   : > { %6919 = vst [vmem:[#allocation27_spill] sm:$0xff] %v5631_v23  ;;  %v4774_v40 = vld [vmem:[%s5465_s12 + $0x224] sm:$0xf0]  ;;  %v4770_v41 = vld [vmem:[%s5465_s12 + $0x20c] sm:$0xf]  ;;  %v5649_v43 = vor.u32 %v4773_v32, %v3935_v31 }
  0x78   : > { %6920 = vst [vmem:[#allocation28_spill] sm:$0xff] %v5633_v24  ;;  %v3945_v42 = vld [vmem:[%s5465_s12 + $0x228] sm:$0xf0]  ;;  %v5653_v58 = vor.u32 %v4774_v40, %v3943_v39  ;;  %v4591_v63 = vld [vmem:[#allocation5 + $0x320] sm:$0xf] }
  0x79   : > { %6921 = vst [vmem:[#allocation29_spill] sm:$0xff] %v5649_v43  ;;  %v5656_v61 = vor.u32 %v4770_v41, %v3945_v42  ;;  %v4934_v0 = vld [vmem:[#allocation5 + $0x324] sm:$0xf0]  ;;  %v4463_v5 = vld [vmem:[#allocation5 + $0x220] sm:$0xf] }
  0x7a   : > { %1858 = vmatmul.bf16.gmra.mxu0 %v5527_v25  ;;  %6922 = vst [vmem:[#allocation30_spill] sm:$0xff] %v5651_v57  ;;  %v4592_v6 = vor.u32 %v4934_v0, %v4591_v63  ;;  %v4902_v7 = vld [vmem:[#allocation5 + $0x224] sm:$0xf0]  ;;  %v4655_v8 = vld [vmem:[#allocation5 + $0x3a0] sm:$0xf] }
  0x7b   : > { %1947 = vmatmul.bf16.gmra.mxu1 %v5529_v26  ;;  %6923 = vst [vmem:[#allocation31_spill] sm:$0xff] %v5653_v58  ;;  %v4950_v9 = vld [vmem:[#allocation5 + $0x3a4] sm:$0xf0]  ;;  %v4464_v11 = vor.u32 %v4902_v7, %v4463_v5  ;;  %v4527_v32 = vld [vmem:[#allocation5 + $0x2a0] sm:$0xf] }
  0x7c   : > { %2036 = vmatmul.bf16.gmra.mxu2 %v5531_v27  ;;  %6924 = vst [vmem:[#allocation32_spill] sm:$0xff] %v5656_v61  ;;  %v4656_v12 = vor.u32 %v4950_v9, %v4655_v8  ;;  %v4918_v37 = vld [vmem:[#allocation5 + $0x2a4] sm:$0xf0]  ;;  %v3967_v40 = vld [vmem:[%s5465_s12 + $0x240] sm:$0xf] }
  0x7d   : > { %2125 = vmatmul.bf16.gmra.mxu3 %v5533_v28  ;;  %2379 = vmatpush.bf16.msrb.mxu2 %v4592_v6  ;;  %v4528_v39 = vor.u32 %v4918_v37, %v4527_v32  ;;  %v4781_v41 = vld [vmem:[%s5465_s12 + $0x25c] sm:$0xf0]  ;;  %v4777_v42 = vld [vmem:[%s5465_s12 + $0x244] sm:$0xf]  ;;  %v3977_v63 = vld [vmem:[%s5465_s12 + $0x268] sm:$0xf0] }
  0x7e   : > { %2201 = vmatpush.bf16.msrb.mxu0 %v4464_v11  ;;  %2468 = vmatpush.bf16.msrb.mxu3 %v4656_v12  ;;  %v5673_v5 = vor.u32 %v4781_v41, %v3967_v40 }
  0x7f   : > { %2290 = vmatpush.bf16.msrb.mxu1 %v4528_v39 }
  0x80   : > { %6925 = vst [vmem:[#allocation33_spill] sm:$0xff] %v5673_v5 }
  0x8a   : > { %1863 = vmatmul.bf16.gmra.mxu0 %v5547_v50 }
  0x8b   : > { %1952 = vmatmul.bf16.gmra.mxu1 %v5549_v51 }
  0x8c   : > { %2041 = vmatmul.bf16.gmra.mxu2 %v5551_v55 }
  0x8d   : > { %2130 = vmatmul.bf16.gmra.mxu3 %v5553_v56 }
  0x9a   : > { %1868 = vmatmul.bf16.gmra.mxu0 %v5567_v1 }
  0x9b   : > { %1957 = vmatmul.bf16.gmra.mxu1 %v5569_v2 }
  0x9c   : > { %2046 = vmatmul.bf16.gmra.mxu2 %v5571_v3 }
  0x9d   : > { %2135 = vmatmul.bf16.gmra.mxu3 %v5573_v4 }
  0xaa   : > { %1873 = vmatmul.bf16.gmra.mxu0 %v5587_v33 }
  0xab   : > { %1962 = vmatmul.bf16.gmra.mxu1 %v5589_v34 }
  0xac   : > { %2051 = vmatmul.bf16.gmra.mxu2 %v5591_v35 }
  0xad   : > { %2140 = vmatmul.bf16.gmra.mxu3 %v5593_v36 }
  0xba   : > { %1878 = vmatmul.bf16.gmra.mxu0 %v5607_v45 }
  0xbb   : > { %1967 = vmatmul.bf16.gmra.mxu1 %v5609_v46 }
  0xbc   : > { %2056 = vmatmul.bf16.gmra.mxu2 %v5611_v47 }
  0xbd   : > { %2145 = vmatmul.bf16.gmra.mxu3 %v5613_v49 }
  0xca   : > { %1883 = vmatmul.bf16.gmra.mxu0 %v5627_v21 }
  0xcb   : > { %1972 = vmatmul.bf16.gmra.mxu1 %v5629_v22 }
  0xcc   : > { %2061 = vmatmul.bf16.gmra.mxu2 %v5631_v23 }
  0xcd   : > { %2150 = vmatmul.bf16.gmra.mxu3 %v5633_v24 }
  0xd7   : > { %v1849_v44 = vpop.f32.mrf.mxu0 }
  0xd8   : > { %v1850_v59 = vadd.f32 %v1849_v44, %v5639_v30  ;;  %v1938_v60 = vpop.f32.mrf.mxu1  ;;  %v3969_v44 = vld [vmem:[%s5465_s12 + $0x260] sm:$0xf0] }
  0xd9   : > { %v5675_v9 = vor.u32 %v4777_v42, %v3969_v44  ;;  %v3999_v42 = vld [vmem:[%s5465_s12 + $0x280] sm:$0xf] }
  0xda   : > { %v1939_v62 = vadd.f32 %v1938_v60, %v1850_v59  ;;  %1888 = vmatmul.bf16.gmra.mxu0 %v5649_v43  ;;  %v3975_v59 = vld [vmem:[%s5465_s12 + $0x248] sm:$0xf]  ;;  %v4789_v44 = vld [vmem:[%s5465_s12 + $0x29c] sm:$0xf0] }
  0xdb   : > { %1977 = vmatmul.bf16.gmra.mxu1 %v5651_v57  ;;  %v4782_v60 = vld [vmem:[%s5465_s12 + $0x264] sm:$0xf0]  ;;  %6926 = vst [vmem:[#allocation34_spill] sm:$0xff] %v5675_v9 }
  0xdc   : > { %2066 = vmatmul.bf16.gmra.mxu2 %v5653_v58 }
  0xdd   : > { %2155 = vmatmul.bf16.gmra.mxu3 %v5656_v61 }
  0xdf   : > { %v2027_v10 = vpop.f32.mrf.mxu2  ;;  %v1851_v19 = vpop.f32.mrf.mxu0 }
  0xe0   : > { %v2028_v17 = vadd.f32 %v2027_v10, %v1939_v62  ;;  %v2116_v18 = vpop.f32.mrf.mxu3  ;;  %v1852_v20 = vadd.f32 %v1851_v19, %v5639_v30  ;;  %v1940_v29 = vpop.f32.mrf.mxu1  ;;  %v4778_v62 = vld [vmem:[%s5465_s12 + $0x24c] sm:$0xf]  ;;  %v5677_v10 = vor.u32 %v4782_v60, %v3975_v59  ;;  %v4785_v59 = vld [vmem:[%s5465_s12 + $0x284] sm:$0xf] }
  0xe1   : > { %v4001_v60 = vld [vmem:[%s5465_s12 + $0x2a0] sm:$0xf0] }
  0xe2   : > { %v5663_v31 = vadd.f32 %v2116_v18, %v2028_v17  ;;  %v1941_v38 = vadd.f32 %v1940_v29, %v1852_v20  ;;  %6927 = vst [vmem:[#allocation35_spill] sm:$0xff] %v5677_v10  ;;  %v5680_v17 = vor.u32 %v4778_v62, %v3977_v63  ;;  %v4007_v62 = vld [vmem:[%s5465_s12 + $0x288] sm:$0xf] }
  0xe3   : > { %v4790_v63 = vld [vmem:[%s5465_s12 + $0x2a4] sm:$0xf0] }
  0xe4   : > { %6928 = vst [vmem:[#allocation36_spill] sm:$0xff] %v5680_v17 }
  0xe7   : > { %v2029_v0 = vpop.f32.mrf.mxu2  ;;  %v1854_v8 = vpop.f32.mrf.mxu0 }
  0xe8   : > { %v2030_v6 = vadd.f32 %v2029_v0, %v1941_v38  ;;  %v2118_v7 = vpop.f32.mrf.mxu3  ;;  %v1855_v11 = vadd.f32 %v1854_v8, %v5639_v30  ;;  %v1943_v12 = vpop.f32.mrf.mxu1  ;;  %v4786_v0 = vld [vmem:[%s5465_s12 + $0x28c] sm:$0xf]  ;;  %v5699_v8 = vor.u32 %v4789_v44, %v3999_v42  ;;  %v4932_v42 = vld [vmem:[#allocation5 + $0x314] sm:$0xf0]  ;;  %v4455_v44 = vld [vmem:[#allocation5 + $0x210] sm:$0xf] }
  0xea   : > { %v5682_v18 = vadd.f32 %v2118_v7, %v2030_v6  ;;  %v1944_v19 = vadd.f32 %v1943_v12, %v1855_v11  ;;  %1893 = vmatmul.bf16.gmra.mxu0 %v5673_v5  ;;  %v4009_v6 = vld [vmem:[%s5465_s12 + $0x2a8] sm:$0xf0]  ;;  %6929 = vst [vmem:[#allocation37_spill] sm:$0xff] %v5699_v8 }
  0xeb   : > { %1982 = vmatmul.bf16.gmra.mxu1 %v5675_v9 }
  0xec   : > { %2071 = vmatmul.bf16.gmra.mxu2 %v5677_v10 }
  0xed   : > { %2160 = vmatmul.bf16.gmra.mxu3 %v5680_v17 }
  0xef   : > { %v2032_v20 = vpop.f32.mrf.mxu2  ;;  %v1856_v37 = vpop.f32.mrf.mxu0 }
  0xf0   : > { %v2033_v29 = vadd.f32 %v2032_v20, %v1944_v19  ;;  %v2121_v32 = vpop.f32.mrf.mxu3  ;;  %v1857_v38 = vadd.f32 %v1856_v37, %v5639_v30  ;;  %v1945_v39 = vpop.f32.mrf.mxu1  ;;  %v5701_v20 = vor.u32 %v4785_v59, %v4001_v60  ;;  %v5703_v37 = vor.u32 %v4790_v63, %v4007_v62  ;;  %v4900_v60 = vld [vmem:[#allocation5 + $0x214] sm:$0xf0]  ;;  %v4647_v62 = vld [vmem:[#allocation5 + $0x390] sm:$0xf] }
  0xf1   : > { %v4948_v63 = vld [vmem:[#allocation5 + $0x394] sm:$0xf0] }
  0xf2   : > { %v5689_v40 = vadd.f32 %v2121_v32, %v2033_v29  ;;  %v1946_v41 = vadd.f32 %v1945_v39, %v1857_v38  ;;  %6930 = vst [vmem:[#allocation38_spill] sm:$0xff] %v5701_v20  ;;  %v5706_v38 = vor.u32 %v4786_v0, %v4009_v6  ;;  %v4456_v6 = vor.u32 %v4900_v60, %v4455_v44  ;;  %v4916_v44 = vld [vmem:[#allocation5 + $0x294] sm:$0xf0] }
  0xf3   : > { %6931 = vst [vmem:[#allocation39_spill] sm:$0xff] %v5703_v37 }
  0xf4   : > { %6932 = vst [vmem:[#allocation40_spill] sm:$0xff] %v5706_v38  ;;  %2202 = vmatpush.bf16.msrb.mxu0 %v4456_v6 }
  0xf7   : > { %v2034_v7 = vpop.f32.mrf.mxu2  ;;  %v1859_v19 = vpop.f32.mrf.mxu0 }
  0xf8   : > { %v2035_v11 = vadd.f32 %v2034_v7, %v1946_v41  ;;  %v2123_v12 = vpop.f32.mrf.mxu3  ;;  %v1860_v29 = vadd.f32 %v1859_v19, %v5639_v30  ;;  %v1948_v32 = vpop.f32.mrf.mxu1  ;;  %v4583_v41 = vld [vmem:[#allocation5 + $0x310] sm:$0xf]  ;;  %v4648_v7 = vor.u32 %v4948_v63, %v4647_v62  ;;  %v4797_v63 = vld [vmem:[%s5465_s12 + $0x2dc] sm:$0xf0] }
  0xf9   : > { %v4584_v59 = vor.u32 %v4932_v42, %v4583_v41  ;;  %v4519_v42 = vld [vmem:[#allocation5 + $0x290] sm:$0xf] }
  0xfa   : > { %v5708_v39 = vadd.f32 %v2123_v12, %v2035_v11  ;;  %v1949_v17 = vadd.f32 %v1948_v32, %v1860_v29  ;;  %1898 = vmatmul.bf16.gmra.mxu0 %v5699_v8  ;;  %2469 = vmatpush.bf16.msrb.mxu3 %v4648_v7  ;;  %v4520_v62 = vor.u32 %v4916_v44, %v4519_v42 }
  0xfb   : > { %1987 = vmatmul.bf16.gmra.mxu1 %v5701_v20  ;;  %2380 = vmatpush.bf16.msrb.mxu2 %v4584_v59  ;;  %v4798_v20 = vld [vmem:[%s5465_s12 + $0x2e4] sm:$0xf0]  ;;  %v4794_v59 = vld [vmem:[%s5465_s12 + $0x2cc] sm:$0xf] }
  0xfc   : > { %2076 = vmatmul.bf16.gmra.mxu2 %v5703_v37  ;;  %v4039_v37 = vld [vmem:[%s5465_s12 + $0x2c8] sm:$0xf]  ;;  %2291 = vmatpush.bf16.msrb.mxu1 %v4520_v62 }
  0xfd   : > { %2165 = vmatmul.bf16.gmra.mxu3 %v5706_v38  ;;  %v4033_v38 = vld [vmem:[%s5465_s12 + $0x2e0] sm:$0xf0]  ;;  %v5729_v9 = vor.u32 %v4798_v20, %v4039_v37 }
  0xff   : > { %v2037_v0 = vpop.f32.mrf.mxu2  ;;  %v1861_v19 = vpop.f32.mrf.mxu0  ;;  %6935 = vst [vmem:[#allocation43_spill] sm:$0xff] %v5729_v9 }
 0x100   : > { %v2038_v11 = vadd.f32 %v2037_v0, %v1949_v17  ;;  %v2126_v12 = vpop.f32.mrf.mxu3  ;;  %v1862_v29 = vadd.f32 %v1861_v19, %v5639_v30  ;;  %v1950_v32 = vpop.f32.mrf.mxu1  ;;  %v4031_v17 = vld [vmem:[%s5465_s12 + $0x2c0] sm:$0xf]  ;;  %v4793_v0 = vld [vmem:[%s5465_s12 + $0x2c4] sm:$0xf]  ;;  %v4041_v19 = vld [vmem:[%s5465_s12 + $0x2e8] sm:$0xf0] }
 0x101   : > { %v5725_v10 = vor.u32 %v4797_v63, %v4031_v17  ;;  %v5732_v42 = vor.u32 %v4794_v59, %v4041_v19  ;;  %v4063_v59 = vld [vmem:[%s5465_s12 + $0x300] sm:$0xf] }
 0x102   : > { %v5715_v41 = vadd.f32 %v2126_v12, %v2038_v11  ;;  %v1951_v60 = vadd.f32 %v1950_v32, %v1862_v29  ;;  %v5727_v12 = vor.u32 %v4793_v0, %v4033_v38  ;;  %v4805_v19 = vld [vmem:[%s5465_s12 + $0x31c] sm:$0xf0] }
 0x103   : > { %6933 = vst [vmem:[#allocation41_spill] sm:$0xff] %v5725_v10 }
 0x104   : > { %6934 = vst [vmem:[#allocation42_spill] sm:$0xff] %v5727_v12 }
 0x105   : > { %6936 = vst [vmem:[#allocation44_spill] sm:$0xff] %v5732_v42 }
 0x107   : > { %v2039_v8 = vpop.f32.mrf.mxu2  ;;  %v1864_v11 = vpop.f32.mrf.mxu0 }
 0x108   : > { %v2040_v6 = vadd.f32 %v2039_v8, %v1951_v60  ;;  %v2128_v7 = vpop.f32.mrf.mxu3  ;;  %v1865_v29 = vadd.f32 %v1864_v11, %v5639_v30  ;;  %v1953_v32 = vpop.f32.mrf.mxu1  ;;  %v4071_v11 = vld [vmem:[%s5465_s12 + $0x308] sm:$0xf] }
 0x10a   : > { %v5734_v44 = vadd.f32 %v2128_v7, %v2040_v6  ;;  %v1954_v62 = vadd.f32 %v1953_v32, %v1865_v29  ;;  %1903 = vmatmul.bf16.gmra.mxu0 %v5725_v10  ;;  %v4801_v6 = vld [vmem:[%s5465_s12 + $0x304] sm:$0xf]  ;;  %v4806_v29 = vld [vmem:[%s5465_s12 + $0x324] sm:$0xf0]  ;;  %v4802_v32 = vld [vmem:[%s5465_s12 + $0x30c] sm:$0xf] }
 0x10b   : > { %1992 = vmatmul.bf16.gmra.mxu1 %v5727_v12  ;;  %v4065_v7 = vld [vmem:[%s5465_s12 + $0x320] sm:$0xf0]  ;;  %v5751_v12 = vor.u32 %v4805_v19, %v4063_v59  ;;  %v4447_v59 = vld [vmem:[#allocation5 + $0x200] sm:$0xf] }
 0x10c   : > { %2081 = vmatmul.bf16.gmra.mxu2 %v5729_v9  ;;  %v4073_v9 = vld [vmem:[%s5465_s12 + $0x328] sm:$0xf0]  ;;  %v5753_v5 = vor.u32 %v4801_v6, %v4065_v7  ;;  %v4898_v6 = vld [vmem:[#allocation5 + $0x204] sm:$0xf0] }
 0x10d   : > { %2170 = vmatmul.bf16.gmra.mxu3 %v5732_v42  ;;  %6937 = vst [vmem:[#allocation45_spill] sm:$0xff] %v5751_v12  ;;  %v4946_v7 = vld [vmem:[#allocation5 + $0x384] sm:$0xf0] }
 0x10e   : > { %6938 = vst [vmem:[#allocation46_spill] sm:$0xff] %v5753_v5 }
 0x10f   : > { %v2042_v8 = vpop.f32.mrf.mxu2  ;;  %v1866_v38 = vpop.f32.mrf.mxu0 }
 0x110   : > { %v2043_v20 = vadd.f32 %v2042_v8, %v1954_v62  ;;  %v2131_v37 = vpop.f32.mrf.mxu3  ;;  %v1867_v60 = vadd.f32 %v1866_v38, %v5639_v30  ;;  %v1955_v17 = vpop.f32.mrf.mxu1  ;;  %v5755_v38 = vor.u32 %v4806_v29, %v4071_v11  ;;  %v4448_v11 = vor.u32 %v4898_v6, %v4447_v59  ;;  %v4914_v59 = vld [vmem:[#allocation5 + $0x284] sm:$0xf0] }
 0x112   : > { %v5741_v63 = vadd.f32 %v2131_v37, %v2043_v20  ;;  %v1956_v0 = vadd.f32 %v1955_v17, %v1867_v60  ;;  %6939 = vst [vmem:[#allocation47_spill] sm:$0xff] %v5755_v38  ;;  %v5758_v60 = vor.u32 %v4802_v32, %v4073_v9  ;;  %2203 = vmatpush.bf16.msrb.mxu0 %v4448_v11 }
 0x114   : > { %6940 = vst [vmem:[#allocation48_spill] sm:$0xff] %v5758_v60 }
 0x117   : > { %v2044_v42 = vpop.f32.mrf.mxu2  ;;  %v1869_v10 = vpop.f32.mrf.mxu0 }
 0x118   : > { %v2045_v62 = vadd.f32 %v2044_v42, %v1956_v0  ;;  %v2133_v8 = vpop.f32.mrf.mxu3  ;;  %v1870_v20 = vadd.f32 %v1869_v10, %v5639_v30  ;;  %v1958_v37 = vpop.f32.mrf.mxu1  ;;  %v4575_v42 = vld [vmem:[#allocation5 + $0x300] sm:$0xf]  ;;  %v4930_v0 = vld [vmem:[#allocation5 + $0x304] sm:$0xf0] }
 0x119   : > { %v4576_v19 = vor.u32 %v4930_v0, %v4575_v42  ;;  %v4639_v10 = vld [vmem:[#allocation5 + $0x380] sm:$0xf] }
 0x11a   : > { %v5760_v17 = vadd.f32 %v2133_v8, %v2045_v62  ;;  %v1959_v61 = vadd.f32 %v1958_v37, %v1870_v20  ;;  %1908 = vmatmul.bf16.gmra.mxu0 %v5751_v12  ;;  %v4640_v29 = vor.u32 %v4946_v7, %v4639_v10  ;;  %v4511_v0 = vld [vmem:[#allocation5 + $0x280] sm:$0xf] }
 0x11b   : > { %1997 = vmatmul.bf16.gmra.mxu1 %v5753_v5  ;;  %2381 = vmatpush.bf16.msrb.mxu2 %v4576_v19  ;;  %v4512_v10 = vor.u32 %v4914_v59, %v4511_v0  ;;  %v4813_v7 = vld [vmem:[%s5465_s12 + $0x35c] sm:$0xf0]  ;;  %v4814_v5 = vld [vmem:[%s5465_s12 + $0x364] sm:$0xf0]  ;;  %v4810_v19 = vld [vmem:[%s5465_s12 + $0x34c] sm:$0xf] }
 0x11c   : > { %2086 = vmatmul.bf16.gmra.mxu2 %v5755_v38  ;;  %2470 = vmatpush.bf16.msrb.mxu3 %v4640_v29  ;;  %v4103_v38 = vld [vmem:[%s5465_s12 + $0x348] sm:$0xf] }
 0x11d   : > { %2175 = vmatmul.bf16.gmra.mxu3 %v5758_v60  ;;  %v4097_v60 = vld [vmem:[%s5465_s12 + $0x360] sm:$0xf0]  ;;  %2292 = vmatpush.bf16.msrb.mxu1 %v4512_v10  ;;  %v5781_v57 = vor.u32 %v4814_v5, %v4103_v38 }
 0x11f   : > { %v2047_v9 = vpop.f32.mrf.mxu2  ;;  %v1871_v8 = vpop.f32.mrf.mxu0  ;;  %6943 = vst [vmem:[#allocation51_spill] sm:$0xff] %v5781_v57 }
 0x120   : > { %v2048_v32 = vadd.f32 %v2047_v9, %v1959_v61  ;;  %v2136_v62 = vpop.f32.mrf.mxu3  ;;  %v1872_v20 = vadd.f32 %v1871_v8, %v5639_v30  ;;  %v1960_v37 = vpop.f32.mrf.mxu1  ;;  %v4095_v61 = vld [vmem:[%s5465_s12 + $0x340] sm:$0xf]  ;;  %v4809_v9 = vld [vmem:[%s5465_s12 + $0x344] sm:$0xf]  ;;  %v4105_v8 = vld [vmem:[%s5465_s12 + $0x368] sm:$0xf0] }
 0x121   : > { %v5777_v58 = vor.u32 %v4813_v7, %v4095_v61  ;;  %v5784_v0 = vor.u32 %v4810_v19, %v4105_v8  ;;  %v4127_v19 = vld [vmem:[%s5465_s12 + $0x380] sm:$0xf] }
 0x122   : > { %v5767_v42 = vadd.f32 %v2136_v62, %v2048_v32  ;;  %v1961_v6 = vadd.f32 %v1960_v37, %v1872_v20  ;;  %v5779_v62 = vor.u32 %v4809_v9, %v4097_v60  ;;  %v4821_v8 = vld [vmem:[%s5465_s12 + $0x39c] sm:$0xf0] }
 0x123   : > { %6941 = vst [vmem:[#allocation49_spill] sm:$0xff] %v5777_v58 }
 0x124   : > { %6942 = vst [vmem:[#allocation50_spill] sm:$0xff] %v5779_v62 }
 0x125   : > { %6944 = vst [vmem:[#allocation52_spill] sm:$0xff] %v5784_v0 }
 0x127   : > { %v2049_v12 = vpop.f32.mrf.mxu2  ;;  %v1874_v32 = vpop.f32.mrf.mxu0 }
 0x128   : > { %v2050_v11 = vadd.f32 %v2049_v12, %v1961_v6  ;;  %v2138_v29 = vpop.f32.mrf.mxu3  ;;  %v1875_v20 = vadd.f32 %v1874_v32, %v5639_v30  ;;  %v1963_v37 = vpop.f32.mrf.mxu1  ;;  %v4135_v32 = vld [vmem:[%s5465_s12 + $0x388] sm:$0xf] }
 0x12a   : > { %v5786_v59 = vadd.f32 %v2138_v29, %v2050_v11  ;;  %v1964_v10 = vadd.f32 %v1963_v37, %v1875_v20  ;;  %1913 = vmatmul.bf16.gmra.mxu0 %v5777_v58  ;;  %v4817_v11 = vld [vmem:[%s5465_s12 + $0x384] sm:$0xf]  ;;  %v4822_v20 = vld [vmem:[%s5465_s12 + $0x3a4] sm:$0xf0]  ;;  %v4818_v37 = vld [vmem:[%s5465_s12 + $0x38c] sm:$0xf] }
 0x12b   : > { %2002 = vmatmul.bf16.gmra.mxu1 %v5779_v62  ;;  %v4129_v29 = vld [vmem:[%s5465_s12 + $0x3a0] sm:$0xf0]  ;;  %v5803_v62 = vor.u32 %v4821_v8, %v4127_v19  ;;  %v4847_v19 = vld [vmem:[#allocation5 + $0x74] sm:$0xf] }
 0x12c   : > { %2091 = vmatmul.bf16.gmra.mxu2 %v5781_v57  ;;  %v4137_v57 = vld [vmem:[%s5465_s12 + $0x3a8] sm:$0xf0]  ;;  %v5805_v43 = vor.u32 %v4817_v11, %v4129_v29  ;;  %v4249_v11 = vld [vmem:[#allocation5 + $0x78] sm:$0xf0] }
 0x12d   : > { %2180 = vmatmul.bf16.gmra.mxu3 %v5784_v0  ;;  %6945 = vst [vmem:[#allocation53_spill] sm:$0xff] %v5803_v62  ;;  %v4441_v29 = vld [vmem:[#allocation5 + $0x1f8] sm:$0xf0] }
 0x12e   : > { %6946 = vst [vmem:[#allocation54_spill] sm:$0xff] %v5805_v43 }
 0x12f   : > { %v2052_v5 = vpop.f32.mrf.mxu2  ;;  %v1876_v60 = vpop.f32.mrf.mxu0 }
 0x130   : > { %v2053_v12 = vadd.f32 %v2052_v5, %v1964_v10  ;;  %v2141_v38 = vpop.f32.mrf.mxu3  ;;  %v1877_v6 = vadd.f32 %v1876_v60, %v5639_v30  ;;  %v1965_v61 = vpop.f32.mrf.mxu1  ;;  %v5807_v60 = vor.u32 %v4822_v20, %v4135_v32  ;;  %v4252_v32 = vor.u32 %v4847_v19, %v4249_v11  ;;  %v4313_v19 = vld [vmem:[#allocation5 + $0xf8] sm:$0xf0] }
 0x132   : > { %v5793_v7 = vadd.f32 %v2141_v38, %v2053_v12  ;;  %v1966_v9 = vadd.f32 %v1965_v61, %v1877_v6  ;;  %6947 = vst [vmem:[#allocation55_spill] sm:$0xff] %v5807_v60  ;;  %v5810_v6 = vor.u32 %v4818_v37, %v4137_v57  ;;  %2552 = vmatpush.bf16.msra.mxu0 %v4252_v32 }
 0x134   : > { %6948 = vst [vmem:[#allocation56_spill] sm:$0xff] %v5810_v6 }
 0x137   : > { %v2054_v0 = vpop.f32.mrf.mxu2  ;;  %v1879_v58 = vpop.f32.mrf.mxu0 }
 0x138   : > { %v2055_v10 = vadd.f32 %v2054_v0, %v1966_v9  ;;  %v2143_v5 = vpop.f32.mrf.mxu3  ;;  %v1880_v12 = vadd.f32 %v1879_v58, %v5639_v30  ;;  %v1968_v38 = vpop.f32.mrf.mxu1  ;;  %v4879_v0 = vld [vmem:[#allocation5 + $0x174] sm:$0xf]  ;;  %v4377_v9 = vld [vmem:[#allocation5 + $0x178] sm:$0xf0] }
 0x139   : > { %v4380_v8 = vor.u32 %v4879_v0, %v4377_v9  ;;  %v4895_v58 = vld [vmem:[#allocation5 + $0x1f4] sm:$0xf] }
 0x13a   : > { %v5812_v61 = vadd.f32 %v2143_v5, %v2055_v10  ;;  %v1969_v24 = vadd.f32 %v1968_v38, %v1880_v12  ;;  %1918 = vmatmul.bf16.gmra.mxu0 %v5803_v62  ;;  %v4444_v20 = vor.u32 %v4895_v58, %v4441_v29  ;;  %v4863_v9 = vld [vmem:[#allocation5 + $0xf4] sm:$0xf]  ;;  %v4829_v29 = vld [vmem:[%s5465_s12 + $0x3dc] sm:$0xf0] }
 0x13b   : > { %2007 = vmatmul.bf16.gmra.mxu1 %v5805_v43  ;;  %2730 = vmatpush.bf16.msra.mxu2 %v4380_v8  ;;  %v4316_v58 = vor.u32 %v4863_v9, %v4313_v19  ;;  %v4830_v43 = vld [vmem:[%s5465_s12 + $0x3e4] sm:$0xf0]  ;;  %v4826_v8 = vld [vmem:[%s5465_s12 + $0x3cc] sm:$0xf] }
 0x13c   : > { %2096 = vmatmul.bf16.gmra.mxu2 %v5807_v60  ;;  %2819 = vmatpush.bf16.msra.mxu3 %v4444_v20  ;;  %v4167_v60 = vld [vmem:[%s5465_s12 + $0x3c8] sm:$0xf] }
 0x13d   : > { %2185 = vmatmul.bf16.gmra.mxu3 %v5810_v6  ;;  %v4161_v6 = vld [vmem:[%s5465_s12 + $0x3e0] sm:$0xf0]  ;;  %2641 = vmatpush.bf16.msra.mxu1 %v4316_v58  ;;  %v5833_v22 = vor.u32 %v4830_v43, %v4167_v60 }
 0x13f   : > { %v2057_v57 = vpop.f32.mrf.mxu2  ;;  %v1881_v5 = vpop.f32.mrf.mxu0  ;;  %6951 = vst [vmem:[#allocation59_spill] sm:$0xff] %v5833_v22 }
 0x140   : > { %v2058_v37 = vadd.f32 %v2057_v57, %v1969_v24  ;;  %v2146_v10 = vpop.f32.mrf.mxu3  ;;  %v1882_v12 = vadd.f32 %v1881_v5, %v5639_v30  ;;  %v1970_v38 = vpop.f32.mrf.mxu1  ;;  %v4159_v24 = vld [vmem:[%s5465_s12 + $0x3c0] sm:$0xf]  ;;  %v4825_v57 = vld [vmem:[%s5465_s12 + $0x3c4] sm:$0xf]  ;;  %v4169_v5 = vld [vmem:[%s5465_s12 + $0x3e8] sm:$0xf0] }
 0x141   : > { %v5829_v23 = vor.u32 %v4829_v29, %v4159_v24  ;;  %v5836_v9 = vor.u32 %v4826_v8, %v4169_v5  ;;  %v3695_v8 = vld [vmem:[%s5465_s12 + $0x10] sm:$0xf] }
 0x142   : > { %v5819_v0 = vadd.f32 %v2146_v10, %v2058_v37  ;;  %v1971_v11 = vadd.f32 %v1970_v38, %v1882_v12  ;;  %v5831_v10 = vor.u32 %v4825_v57, %v4161_v6  ;;  %v4711_v5 = vld [vmem:[%s5465_s12 + $0x2c] sm:$0xf0] }
 0x143   : > { %6949 = vst [vmem:[#allocation57_spill] sm:$0xff] %v5829_v23 }
 0x144   : > { %6950 = vst [vmem:[#allocation58_spill] sm:$0xff] %v5831_v10 }
 0x145   : > { %6952 = vst [vmem:[#allocation60_spill] sm:$0xff] %v5836_v9 }
 0x147   : > { %v2059_v62 = vpop.f32.mrf.mxu2  ;;  %v1884_v37 = vpop.f32.mrf.mxu0 }
 0x148   : > { %v2060_v32 = vadd.f32 %v2059_v62, %v1971_v11  ;;  %v2148_v20 = vpop.f32.mrf.mxu3  ;;  %v1885_v12 = vadd.f32 %v1884_v37, %v5639_v30  ;;  %v1973_v38 = vpop.f32.mrf.mxu1  ;;  %v3703_v37 = vld [vmem:[%s5465_s12 + $0x18] sm:$0xf] }
 0x14a   : > { %v5838_v19 = vadd.f32 %v2148_v20, %v2060_v32  ;;  %v1974_v58 = vadd.f32 %v1973_v38, %v1885_v12  ;;  %1923 = vmatmul.bf16.gmra.mxu0 %v5829_v23  ;;  %v4707_v32 = vld [vmem:[%s5465_s12 + $0x14] sm:$0xf]  ;;  %v4712_v12 = vld [vmem:[%s5465_s12 + $0x34] sm:$0xf0]  ;;  %v4708_v38 = vld [vmem:[%s5465_s12 + $0x1c] sm:$0xf] }
 0x14b   : > { %2012 = vmatmul.bf16.gmra.mxu1 %v5831_v10  ;;  %v3697_v20 = vld [vmem:[%s5465_s12 + $0x30] sm:$0xf0]  ;;  %v5855_v10 = vor.u32 %v4711_v5, %v3695_v8  ;;  %v4845_v8 = vld [vmem:[#allocation5 + $0x64] sm:$0xf] }
 0x14c   : > { %2101 = vmatmul.bf16.gmra.mxu2 %v5833_v22  ;;  %v3705_v22 = vld [vmem:[%s5465_s12 + $0x38] sm:$0xf0]  ;;  %v5857_v21 = vor.u32 %v4707_v32, %v3697_v20  ;;  %v4241_v32 = vld [vmem:[#allocation5 + $0x68] sm:$0xf0] }
 0x14d   : > { %2190 = vmatmul.bf16.gmra.mxu3 %v5836_v9  ;;  %6953 = vst [vmem:[#allocation61_spill] sm:$0xff] %v5855_v10  ;;  %v4433_v20 = vld [vmem:[#allocation5 + $0x1e8] sm:$0xf0] }
 0x14e   : > { %6954 = vst [vmem:[#allocation62_spill] sm:$0xff] %v5857_v21 }
 0x14f   : > { %v2062_v43 = vpop.f32.mrf.mxu2  ;;  %v1886_v6 = vpop.f32.mrf.mxu0 }
 0x150   : > { %v2063_v62 = vadd.f32 %v2062_v43, %v1974_v58  ;;  %v2151_v60 = vpop.f32.mrf.mxu3  ;;  %v1887_v11 = vadd.f32 %v1886_v6, %v5639_v30  ;;  %v1975_v24 = vpop.f32.mrf.mxu1  ;;  %v5859_v6 = vor.u32 %v4712_v12, %v3703_v37  ;;  %v4244_v37 = vor.u32 %v4845_v8, %v4241_v32  ;;  %v4305_v8 = vld [vmem:[#allocation5 + $0xe8] sm:$0xf0] }
 0x152   : > { %v5845_v29 = vadd.f32 %v2151_v60, %v2063_v62  ;;  %v1976_v57 = vadd.f32 %v1975_v24, %v1887_v11  ;;  %6955 = vst [vmem:[#allocation63_spill] sm:$0xff] %v5859_v6  ;;  %v5862_v11 = vor.u32 %v4708_v38, %v3705_v22  ;;  %2553 = vmatpush.bf16.msra.mxu0 %v4244_v37 }
 0x154   : > { %6956 = vst [vmem:[#allocation64_spill] sm:$0xff] %v5862_v11 }
 0x157   : > { %v2064_v9 = vpop.f32.mrf.mxu2  ;;  %v1889_v23 = vpop.f32.mrf.mxu0 }
 0x158   : > { %v2065_v58 = vadd.f32 %v2064_v9, %v1976_v57  ;;  %v2153_v43 = vpop.f32.mrf.mxu3  ;;  %v1890_v62 = vadd.f32 %v1889_v23, %v5639_v30  ;;  %v1978_v60 = vpop.f32.mrf.mxu1  ;;  %v4877_v9 = vld [vmem:[#allocation5 + $0x164] sm:$0xf]  ;;  %v4369_v57 = vld [vmem:[#allocation5 + $0x168] sm:$0xf0] }
 0x159   : > { %v4372_v5 = vor.u32 %v4877_v9, %v4369_v57  ;;  %v4893_v23 = vld [vmem:[#allocation5 + $0x1e4] sm:$0xf] }
 0x15a   : > { %v5864_v24 = vadd.f32 %v2153_v43, %v2065_v58  ;;  %v1979_v49 = vadd.f32 %v1978_v60, %v1890_v62  ;;  %2204 = vmatmul.bf16.vlgmr.msrb.gmra.mxu0 %v5855_v10  ;;  %v4436_v12 = vor.u32 %v4893_v23, %v4433_v20  ;;  %v4861_v57 = vld [vmem:[#allocation5 + $0xe4] sm:$0xf]  ;;  %v4719_v20 = vld [vmem:[%s5465_s12 + $0x6c] sm:$0xf0] }
 0x15b   : > { %2293 = vmatmul.bf16.vlgmr.msrb.gmra.mxu1 %v5857_v21  ;;  %2731 = vmatpush.bf16.msra.mxu2 %v4372_v5  ;;  %v4308_v23 = vor.u32 %v4861_v57, %v4305_v8  ;;  %v4720_v21 = vld [vmem:[%s5465_s12 + $0x74] sm:$0xf0]  ;;  %v4716_v5 = vld [vmem:[%s5465_s12 + $0x5c] sm:$0xf] }
 0x15c   : > { %2382 = vmatmul.bf16.vlgmr.msrb.gmra.mxu2 %v5859_v6  ;;  %2820 = vmatpush.bf16.msra.mxu3 %v4436_v12  ;;  %v3735_v6 = vld [vmem:[%s5465_s12 + $0x58] sm:$0xf] }
 0x15d   : > { %2471 = vmatmul.bf16.vlgmr.msrb.gmra.mxu3 %v5862_v11  ;;  %v3729_v11 = vld [vmem:[%s5465_s12 + $0x70] sm:$0xf0]  ;;  %2642 = vmatpush.bf16.msra.mxu1 %v4308_v23  ;;  %v5885_v46 = vor.u32 %v4720_v21, %v3735_v6 }
 0x15f   : > { %v2067_v22 = vpop.f32.mrf.mxu2  ;;  %v1891_v43 = vpop.f32.mrf.mxu0  ;;  %6959 = vst [vmem:[#allocation67_spill] sm:$0xff] %v5885_v46 }
 0x160   : > { %v2068_v38 = vadd.f32 %v2067_v22, %v1979_v49  ;;  %v2156_v58 = vpop.f32.mrf.mxu3  ;;  %v1892_v62 = vadd.f32 %v1891_v43, %v5639_v30  ;;  %v1980_v60 = vpop.f32.mrf.mxu1  ;;  %v3727_v49 = vld [vmem:[%s5465_s12 + $0x50] sm:$0xf]  ;;  %v4715_v22 = vld [vmem:[%s5465_s12 + $0x54] sm:$0xf]  ;;  %v3737_v43 = vld [vmem:[%s5465_s12 + $0x78] sm:$0xf0] }
 0x161   : > { %v5881_v47 = vor.u32 %v4719_v20, %v3727_v49  ;;  %v5888_v57 = vor.u32 %v4716_v5, %v3737_v43  ;;  %v3759_v5 = vld [vmem:[%s5465_s12 + $0x90] sm:$0xf] }
 0x162   : > { %v5871_v9 = vadd.f32 %v2156_v58, %v2068_v38  ;;  %v1981_v32 = vadd.f32 %v1980_v60, %v1892_v62  ;;  %v5883_v58 = vor.u32 %v4715_v22, %v3729_v11  ;;  %v4727_v43 = vld [vmem:[%s5465_s12 + $0xac] sm:$0xf0] }
 0x163   : > { %6957 = vst [vmem:[#allocation65_spill] sm:$0xff] %v5881_v47 }
 0x164   : > { %6958 = vst [vmem:[#allocation66_spill] sm:$0xff] %v5883_v58 }
 0x165   : > { %6960 = vst [vmem:[#allocation68_spill] sm:$0xff] %v5888_v57 }
 0x167   : > { %v2069_v10 = vpop.f32.mrf.mxu2  ;;  %v1894_v38 = vpop.f32.mrf.mxu0 }
 0x168   : > { %v2070_v37 = vadd.f32 %v2069_v10, %v1981_v32  ;;  %v2158_v12 = vpop.f32.mrf.mxu3  ;;  %v1895_v62 = vadd.f32 %v1894_v38, %v5639_v30  ;;  %v1983_v60 = vpop.f32.mrf.mxu1  ;;  %v3767_v38 = vld [vmem:[%s5465_s12 + $0x98] sm:$0xf] }
 0x16a   : > { %v5890_v8 = vadd.f32 %v2158_v12, %v2070_v37  ;;  %v1984_v23 = vadd.f32 %v1983_v60, %v1895_v62  ;;  %2209 = vmatmul.bf16.gmra.mxu0 %v5881_v47  ;;  %v4723_v37 = vld [vmem:[%s5465_s12 + $0x94] sm:$0xf]  ;;  %v4728_v62 = vld [vmem:[%s5465_s12 + $0xb4] sm:$0xf0]  ;;  %v4724_v60 = vld [vmem:[%s5465_s12 + $0x9c] sm:$0xf] }
 0x16b   : > { %2298 = vmatmul.bf16.gmra.mxu1 %v5883_v58  ;;  %v3761_v12 = vld [vmem:[%s5465_s12 + $0xb0] sm:$0xf0]  ;;  %v5907_v58 = vor.u32 %v4727_v43, %v3759_v5 }
 0x16c   : > { %2387 = vmatmul.bf16.gmra.mxu2 %v5885_v46  ;;  %v3769_v46 = vld [vmem:[%s5465_s12 + $0xb8] sm:$0xf0]  ;;  %v5909_v45 = vor.u32 %v4723_v37, %v3761_v12  ;;  %v4843_v5 = vld [vmem:[#allocation5 + $0x54] sm:$0xf] }
 0x16d   : > { %2476 = vmatmul.bf16.gmra.mxu3 %v5888_v57  ;;  %6961 = vst [vmem:[#allocation69_spill] sm:$0xff] %v5907_v58  ;;  %v4233_v37 = vld [vmem:[#allocation5 + $0x58] sm:$0xf0] }
 0x16e   : > { %6962 = vst [vmem:[#allocation70_spill] sm:$0xff] %v5909_v45  ;;  %v4425_v12 = vld [vmem:[#allocation5 + $0x1d8] sm:$0xf0] }
 0x16f   : > { %v2072_v21 = vpop.f32.mrf.mxu2  ;;  %v1896_v11 = vpop.f32.mrf.mxu0 }
 0x170   : > { %v2073_v10 = vadd.f32 %v2072_v21, %v1984_v23  ;;  %v2161_v6 = vpop.f32.mrf.mxu3  ;;  %v1897_v32 = vadd.f32 %v1896_v11, %v5639_v30  ;;  %v1985_v49 = vpop.f32.mrf.mxu1  ;;  %v5911_v11 = vor.u32 %v4728_v62, %v3767_v38  ;;  %v4236_v38 = vor.u32 %v4843_v5, %v4233_v37  ;;  %v4297_v5 = vld [vmem:[#allocation5 + $0xd8] sm:$0xf0] }
 0x172   : > { %v5897_v20 = vadd.f32 %v2161_v6, %v2073_v10  ;;  %v1986_v22 = vadd.f32 %v1985_v49, %v1897_v32  ;;  %6963 = vst [vmem:[#allocation71_spill] sm:$0xff] %v5911_v11  ;;  %v5914_v32 = vor.u32 %v4724_v60, %v3769_v46  ;;  %2554 = vmatpush.bf16.msra.mxu0 %v4236_v38 }
 0x174   : > { %6964 = vst [vmem:[#allocation72_spill] sm:$0xff] %v5914_v32 }
 0x177   : > { %v2074_v57 = vpop.f32.mrf.mxu2  ;;  %v1899_v47 = vpop.f32.mrf.mxu0 }
 0x178   : > { %v2075_v23 = vadd.f32 %v2074_v57, %v1986_v22  ;;  %v2163_v21 = vpop.f32.mrf.mxu3  ;;  %v1900_v10 = vadd.f32 %v1899_v47, %v5639_v30  ;;  %v1988_v6 = vpop.f32.mrf.mxu1  ;;  %v4875_v57 = vld [vmem:[#allocation5 + $0x154] sm:$0xf]  ;;  %v4361_v22 = vld [vmem:[#allocation5 + $0x158] sm:$0xf0] }
 0x179   : > { %v4364_v43 = vor.u32 %v4875_v57, %v4361_v22  ;;  %v4891_v47 = vld [vmem:[#allocation5 + $0x1d4] sm:$0xf] }
 0x17a   : > { %v5916_v49 = vadd.f32 %v2163_v21, %v2075_v23  ;;  %v1989_v36 = vadd.f32 %v1988_v6, %v1900_v10  ;;  %2214 = vmatmul.bf16.gmra.mxu0 %v5907_v58  ;;  %v4428_v62 = vor.u32 %v4891_v47, %v4425_v12  ;;  %v4859_v22 = vld [vmem:[#allocation5 + $0xd4] sm:$0xf]  ;;  %v4735_v12 = vld [vmem:[%s5465_s12 + $0xec] sm:$0xf0] }
 0x17b   : > { %2303 = vmatmul.bf16.gmra.mxu1 %v5909_v45  ;;  %2732 = vmatpush.bf16.msra.mxu2 %v4364_v43  ;;  %v4300_v47 = vor.u32 %v4859_v22, %v4297_v5  ;;  %v4736_v45 = vld [vmem:[%s5465_s12 + $0xf4] sm:$0xf0]  ;;  %v4732_v43 = vld [vmem:[%s5465_s12 + $0xdc] sm:$0xf] }
 0x17c   : > { %2392 = vmatmul.bf16.gmra.mxu2 %v5911_v11  ;;  %2821 = vmatpush.bf16.msra.mxu3 %v4428_v62  ;;  %v3799_v11 = vld [vmem:[%s5465_s12 + $0xd8] sm:$0xf] }
 0x17d   : > { %2481 = vmatmul.bf16.gmra.mxu3 %v5914_v32  ;;  %v3793_v32 = vld [vmem:[%s5465_s12 + $0xf0] sm:$0xf0]  ;;  %2643 = vmatpush.bf16.msra.mxu1 %v4300_v47  ;;  %v5937_v34 = vor.u32 %v4736_v45, %v3799_v11 }
 0x17f   : > { %v2077_v46 = vpop.f32.mrf.mxu2  ;;  %v1901_v21 = vpop.f32.mrf.mxu0  ;;  %6967 = vst [vmem:[#allocation75_spill] sm:$0xff] %v5937_v34 }
 0x180   : > { %v2078_v60 = vadd.f32 %v2077_v46, %v1989_v36  ;;  %v2166_v23 = vpop.f32.mrf.mxu3  ;;  %v1902_v10 = vadd.f32 %v1901_v21, %v5639_v30  ;;  %v1990_v6 = vpop.f32.mrf.mxu1  ;;  %v3791_v36 = vld [vmem:[%s5465_s12 + $0xd0] sm:$0xf]  ;;  %v4731_v46 = vld [vmem:[%s5465_s12 + $0xd4] sm:$0xf]  ;;  %v3801_v21 = vld [vmem:[%s5465_s12 + $0xf8] sm:$0xf0] }
 0x181   : > { %v5933_v35 = vor.u32 %v4735_v12, %v3791_v36  ;;  %v5940_v22 = vor.u32 %v4732_v43, %v3801_v21  ;;  %v3823_v43 = vld [vmem:[%s5465_s12 + $0x110] sm:$0xf] }
 0x182   : > { %v5923_v57 = vadd.f32 %v2166_v23, %v2078_v60  ;;  %v1991_v37 = vadd.f32 %v1990_v6, %v1902_v10  ;;  %v5935_v23 = vor.u32 %v4731_v46, %v3793_v32  ;;  %v4743_v21 = vld [vmem:[%s5465_s12 + $0x12c] sm:$0xf0] }
 0x183   : > { %6965 = vst [vmem:[#allocation73_spill] sm:$0xff] %v5933_v35 }
 0x184   : > { %6966 = vst [vmem:[#allocation74_spill] sm:$0xff] %v5935_v23 }
 0x185   : > { %6968 = vst [vmem:[#allocation76_spill] sm:$0xff] %v5940_v22 }
 0x187   : > { %v2079_v58 = vpop.f32.mrf.mxu2  ;;  %v1904_v60 = vpop.f32.mrf.mxu0 }
 0x188   : > { %v2080_v38 = vadd.f32 %v2079_v58, %v1991_v37  ;;  %v2168_v62 = vpop.f32.mrf.mxu3  ;;  %v1905_v10 = vadd.f32 %v1904_v60, %v5639_v30  ;;  %v1993_v6 = vpop.f32.mrf.mxu1  ;;  %v3831_v60 = vld [vmem:[%s5465_s12 + $0x118] sm:$0xf] }
 0x18a   : > { %v5942_v5 = vadd.f32 %v2168_v62, %v2080_v38  ;;  %v1994_v47 = vadd.f32 %v1993_v6, %v1905_v10  ;;  %2219 = vmatmul.bf16.gmra.mxu0 %v5933_v35  ;;  %v4739_v38 = vld [vmem:[%s5465_s12 + $0x114] sm:$0xf]  ;;  %v4744_v10 = vld [vmem:[%s5465_s12 + $0x134] sm:$0xf0]  ;;  %v4740_v6 = vld [vmem:[%s5465_s12 + $0x11c] sm:$0xf] }
 0x18b   : > { %2308 = vmatmul.bf16.gmra.mxu1 %v5935_v23  ;;  %v3825_v62 = vld [vmem:[%s5465_s12 + $0x130] sm:$0xf0]  ;;  %v5959_v23 = vor.u32 %v4743_v21, %v3823_v43  ;;  %v4841_v43 = vld [vmem:[#allocation5 + $0x44] sm:$0xf] }
 0x18c   : > { %2397 = vmatmul.bf16.gmra.mxu2 %v5937_v34  ;;  %v3833_v34 = vld [vmem:[%s5465_s12 + $0x138] sm:$0xf0]  ;;  %v5961_v33 = vor.u32 %v4739_v38, %v3825_v62  ;;  %v4225_v38 = vld [vmem:[#allocation5 + $0x48] sm:$0xf0] }
 0x18d   : > { %2486 = vmatmul.bf16.gmra.mxu3 %v5940_v22  ;;  %6969 = vst [vmem:[#allocation77_spill] sm:$0xff] %v5959_v23  ;;  %v4417_v62 = vld [vmem:[#allocation5 + $0x1c8] sm:$0xf0] }
 0x18e   : > { %6970 = vst [vmem:[#allocation78_spill] sm:$0xff] %v5961_v33 }
 0x18f   : > { %v2082_v45 = vpop.f32.mrf.mxu2  ;;  %v1906_v32 = vpop.f32.mrf.mxu0 }
 0x190   : > { %v2083_v58 = vadd.f32 %v2082_v45, %v1994_v47  ;;  %v2171_v11 = vpop.f32.mrf.mxu3  ;;  %v1907_v37 = vadd.f32 %v1906_v32, %v5639_v30  ;;  %v1995_v36 = vpop.f32.mrf.mxu1  ;;  %v5963_v32 = vor.u32 %v4744_v10, %v3831_v60  ;;  %v4228_v60 = vor.u32 %v4841_v43, %v4225_v38  ;;  %v4289_v43 = vld [vmem:[#allocation5 + $0xc8] sm:$0xf0] }
 0x192   : > { %v5949_v12 = vadd.f32 %v2171_v11, %v2083_v58  ;;  %v1996_v46 = vadd.f32 %v1995_v36, %v1907_v37  ;;  %6971 = vst [vmem:[#allocation79_spill] sm:$0xff] %v5963_v32  ;;  %v5966_v37 = vor.u32 %v4740_v6, %v3833_v34  ;;  %2555 = vmatpush.bf16.msra.mxu0 %v4228_v60 }
 0x194   : > { %6972 = vst [vmem:[#allocation80_spill] sm:$0xff] %v5966_v37 }
 0x197   : > { %v2084_v22 = vpop.f32.mrf.mxu2  ;;  %v1909_v35 = vpop.f32.mrf.mxu0 }
 0x198   : > { %v2085_v47 = vadd.f32 %v2084_v22, %v1996_v46  ;;  %v2173_v45 = vpop.f32.mrf.mxu3  ;;  %v1910_v58 = vadd.f32 %v1909_v35, %v5639_v30  ;;  %v1998_v11 = vpop.f32.mrf.mxu1  ;;  %v4873_v22 = vld [vmem:[#allocation5 + $0x144] sm:$0xf]  ;;  %v4353_v46 = vld [vmem:[#allocation5 + $0x148] sm:$0xf0] }
 0x199   : > { %v4356_v21 = vor.u32 %v4873_v22, %v4353_v46  ;;  %v4889_v35 = vld [vmem:[#allocation5 + $0x1c4] sm:$0xf] }
 0x19a   : > { %v5968_v36 = vadd.f32 %v2173_v45, %v2085_v47  ;;  %v1999_v4 = vadd.f32 %v1998_v11, %v1910_v58  ;;  %2224 = vmatmul.bf16.gmra.mxu0 %v5959_v23  ;;  %v4420_v10 = vor.u32 %v4889_v35, %v4417_v62  ;;  %v4857_v46 = vld [vmem:[#allocation5 + $0xc4] sm:$0xf]  ;;  %v4751_v62 = vld [vmem:[%s5465_s12 + $0x16c] sm:$0xf0] }
 0x19b   : > { %2313 = vmatmul.bf16.gmra.mxu1 %v5961_v33  ;;  %2733 = vmatpush.bf16.msra.mxu2 %v4356_v21  ;;  %v4292_v35 = vor.u32 %v4857_v46, %v4289_v43  ;;  %v4752_v33 = vld [vmem:[%s5465_s12 + $0x174] sm:$0xf0]  ;;  %v4748_v21 = vld [vmem:[%s5465_s12 + $0x15c] sm:$0xf] }
 0x19c   : > { %2402 = vmatmul.bf16.gmra.mxu2 %v5963_v32  ;;  %2822 = vmatpush.bf16.msra.mxu3 %v4420_v10  ;;  %v3863_v32 = vld [vmem:[%s5465_s12 + $0x158] sm:$0xf] }
 0x19d   : > { %2491 = vmatmul.bf16.gmra.mxu3 %v5966_v37  ;;  %v3857_v37 = vld [vmem:[%s5465_s12 + $0x170] sm:$0xf0]  ;;  %2644 = vmatpush.bf16.msra.mxu1 %v4292_v35  ;;  %v5989_v2 = vor.u32 %v4752_v33, %v3863_v32 }
 0x19f   : > { %v2087_v34 = vpop.f32.mrf.mxu2  ;;  %v1911_v45 = vpop.f32.mrf.mxu0  ;;  %6975 = vst [vmem:[#allocation83_spill] sm:$0xff] %v5989_v2 }
 0x1a0   : > { %v2088_v6 = vadd.f32 %v2087_v34, %v1999_v4  ;;  %v2176_v47 = vpop.f32.mrf.mxu3  ;;  %v1912_v58 = vadd.f32 %v1911_v45, %v5639_v30  ;;  %v2000_v11 = vpop.f32.mrf.mxu1  ;;  %v3855_v4 = vld [vmem:[%s5465_s12 + $0x150] sm:$0xf]  ;;  %v4747_v34 = vld [vmem:[%s5465_s12 + $0x154] sm:$0xf]  ;;  %v3865_v45 = vld [vmem:[%s5465_s12 + $0x178] sm:$0xf0] }
 0x1a1   : > { %v5985_v3 = vor.u32 %v4751_v62, %v3855_v4  ;;  %v5992_v46 = vor.u32 %v4748_v21, %v3865_v45  ;;  %v3887_v21 = vld [vmem:[%s5465_s12 + $0x190] sm:$0xf] }
 0x1a2   : > { %v5975_v22 = vadd.f32 %v2176_v47, %v2088_v6  ;;  %v2001_v38 = vadd.f32 %v2000_v11, %v1912_v58  ;;  %v5987_v47 = vor.u32 %v4747_v34, %v3857_v37  ;;  %v4759_v45 = vld [vmem:[%s5465_s12 + $0x1ac] sm:$0xf0] }
 0x1a3   : > { %6973 = vst [vmem:[#allocation81_spill] sm:$0xff] %v5985_v3 }
 0x1a4   : > { %6974 = vst [vmem:[#allocation82_spill] sm:$0xff] %v5987_v47 }
 0x1a5   : > { %6976 = vst [vmem:[#allocation84_spill] sm:$0xff] %v5992_v46 }
 0x1a7   : > { %v2089_v23 = vpop.f32.mrf.mxu2  ;;  %v1914_v6 = vpop.f32.mrf.mxu0 }
 0x1a8   : > { %v2090_v60 = vadd.f32 %v2089_v23, %v2001_v38  ;;  %v2178_v10 = vpop.f32.mrf.mxu3  ;;  %v1915_v58 = vadd.f32 %v1914_v6, %v5639_v30  ;;  %v2003_v11 = vpop.f32.mrf.mxu1  ;;  %v3895_v6 = vld [vmem:[%s5465_s12 + $0x198] sm:$0xf] }
 0x1aa   : > { %v5994_v43 = vadd.f32 %v2178_v10, %v2090_v60  ;;  %v2004_v35 = vadd.f32 %v2003_v11, %v1915_v58  ;;  %2229 = vmatmul.bf16.gmra.mxu0 %v5985_v3  ;;  %v4755_v60 = vld [vmem:[%s5465_s12 + $0x194] sm:$0xf]  ;;  %v4760_v58 = vld [vmem:[%s5465_s12 + $0x1b4] sm:$0xf0]  ;;  %v4756_v11 = vld [vmem:[%s5465_s12 + $0x19c] sm:$0xf] }
 0x1ab   : > { %2318 = vmatmul.bf16.gmra.mxu1 %v5987_v47  ;;  %v3889_v10 = vld [vmem:[%s5465_s12 + $0x1b0] sm:$0xf0]  ;;  %v6011_v47 = vor.u32 %v4759_v45, %v3887_v21 }
 0x1ac   : > { %6977 = vst [vmem:[#allocation85_spill] sm:$0xff] %v5994_v43  ;;  %2407 = vmatmul.bf16.gmra.mxu2 %v5989_v2  ;;  %v3897_v2 = vld [vmem:[%s5465_s12 + $0x1b8] sm:$0xf0]  ;;  %v6013_v43 = vor.u32 %v4755_v60, %v3889_v10  ;;  %v4839_v21 = vld [vmem:[#allocation5 + $0x34] sm:$0xf] }
 0x1ad   : > { %2496 = vmatmul.bf16.gmra.mxu3 %v5992_v46  ;;  %6979 = vst [vmem:[#allocation87_spill] sm:$0xff] %v6011_v47  ;;  %v4217_v60 = vld [vmem:[#allocation5 + $0x38] sm:$0xf0] }
 0x1ae   : > { %6980 = vst [vmem:[#allocation88_spill] sm:$0xff] %v6013_v43 }
 0x1af   : > { %v2092_v33 = vpop.f32.mrf.mxu2  ;;  %v1916_v37 = vpop.f32.mrf.mxu0 }
 0x1b0   : > { %v2093_v23 = vadd.f32 %v2092_v33, %v2004_v35  ;;  %v2181_v32 = vpop.f32.mrf.mxu3  ;;  %v1917_v38 = vadd.f32 %v1916_v37, %v5639_v30  ;;  %v2005_v4 = vpop.f32.mrf.mxu1  ;;  %v6015_v37 = vor.u32 %v4760_v58, %v3895_v6  ;;  %v4220_v6 = vor.u32 %v4839_v21, %v4217_v60  ;;  %v4767_v21 = vld [vmem:[%s5465_s12 + $0x1ec] sm:$0xf0]  ;;  %v4763_v60 = vld [vmem:[%s5465_s12 + $0x1d4] sm:$0xf] }
 0x1b2   : > { %v6001_v62 = vadd.f32 %v2181_v32, %v2093_v23  ;;  %v2006_v34 = vadd.f32 %v2005_v4, %v1917_v38  ;;  %6981 = vst [vmem:[#allocation89_spill] sm:$0xff] %v6015_v37  ;;  %v6018_v38 = vor.u32 %v4756_v11, %v3897_v2  ;;  %v4409_v2 = vld [vmem:[#allocation5 + $0x1b8] sm:$0xf0]  ;;  %2556 = vmatpush.bf16.msra.mxu0 %v4220_v6 }
 0x1b4   : > { %6978 = vst [vmem:[#allocation86_spill] sm:$0xff] %v6001_v62 }
 0x1b5   : > { %6982 = vst [vmem:[#allocation90_spill] sm:$0xff] %v6018_v38 }
 0x1b7   : > { %v2094_v46 = vpop.f32.mrf.mxu2  ;;  %v1919_v3 = vpop.f32.mrf.mxu0 }
 0x1b8   : > { %v2095_v35 = vadd.f32 %v2094_v46, %v2006_v34  ;;  %v2183_v33 = vpop.f32.mrf.mxu3  ;;  %v1920_v23 = vadd.f32 %v1919_v3, %v5639_v30  ;;  %v2008_v32 = vpop.f32.mrf.mxu1  ;;  %v4871_v46 = vld [vmem:[#allocation5 + $0x134] sm:$0xf]  ;;  %v4345_v34 = vld [vmem:[#allocation5 + $0x138] sm:$0xf0] }
 0x1b9   : > { %v4348_v45 = vor.u32 %v4871_v46, %v4345_v34  ;;  %v4887_v3 = vld [vmem:[#allocation5 + $0x1b4] sm:$0xf] }
 0x1ba   : > { %v6020_v4 = vadd.f32 %v2183_v33, %v2095_v35  ;;  %v2009_v62 = vadd.f32 %v2008_v32, %v1920_v23  ;;  %2234 = vmatmul.bf16.gmra.mxu0 %v6011_v47  ;;  %v4412_v58 = vor.u32 %v4887_v3, %v4409_v2  ;;  %v4855_v3 = vld [vmem:[#allocation5 + $0xb4] sm:$0xf]  ;;  %v3929_v47 = vld [vmem:[%s5465_s12 + $0x1f8] sm:$0xf0] }
 0x1bb   : > { %2323 = vmatmul.bf16.gmra.mxu1 %v6013_v43  ;;  %2734 = vmatpush.bf16.msra.mxu2 %v4348_v45  ;;  %v3921_v2 = vld [vmem:[%s5465_s12 + $0x1f0] sm:$0xf0]  ;;  %v4764_v45 = vld [vmem:[%s5465_s12 + $0x1dc] sm:$0xf] }
 0x1bc   : > { %6983 = vst [vmem:[#allocation91_spill] sm:$0xff] %v6020_v4  ;;  %2412 = vmatmul.bf16.gmra.mxu2 %v6015_v37  ;;  %2823 = vmatpush.bf16.msra.mxu3 %v4412_v58  ;;  %v4768_v37 = vld [vmem:[%s5465_s12 + $0x1f4] sm:$0xf0]  ;;  %v6044_v1 = vor.u32 %v4764_v45, %v3929_v47  ;;  %v3953_v45 = vld [vmem:[%s5465_s12 + $0x230] sm:$0xf0] }
 0x1bd   : > { %2501 = vmatmul.bf16.gmra.mxu3 %v6018_v38  ;;  %v3919_v38 = vld [vmem:[%s5465_s12 + $0x1d0] sm:$0xf] }
 0x1be   : > { %6988 = vst [vmem:[#allocation96_spill] sm:$0xff] %v6044_v1 }
 0x1bf   : > { %v2097_v10 = vpop.f32.mrf.mxu2  ;;  %v1921_v33 = vpop.f32.mrf.mxu0 }
 0x1c0   : > { %v2098_v11 = vadd.f32 %v2097_v10, %v2009_v62  ;;  %v2186_v35 = vpop.f32.mrf.mxu3  ;;  %v1922_v23 = vadd.f32 %v1921_v33, %v5639_v30  ;;  %v2010_v32 = vpop.f32.mrf.mxu1  ;;  %v4281_v62 = vld [vmem:[#allocation5 + $0xb8] sm:$0xf0]  ;;  %v3927_v10 = vld [vmem:[%s5465_s12 + $0x1d8] sm:$0xf]  ;;  %v6037_v33 = vor.u32 %v4767_v21, %v3919_v38 }
 0x1c1   : > { %v4284_v43 = vor.u32 %v4855_v3, %v4281_v62  ;;  %v3951_v62 = vld [vmem:[%s5465_s12 + $0x210] sm:$0xf] }
 0x1c2   : > { %v6027_v46 = vadd.f32 %v2186_v35, %v2098_v11  ;;  %v2011_v34 = vadd.f32 %v2010_v32, %v1922_v23  ;;  %6985 = vst [vmem:[#allocation93_spill] sm:$0xff] %v6037_v33  ;;  %v6039_v35 = vor.u32 %v4763_v60, %v3921_v2  ;;  %v6041_v23 = vor.u32 %v4768_v37, %v3927_v10  ;;  %v4775_v2 = vld [vmem:[%s5465_s12 + $0x22c] sm:$0xf0]  ;;  %v4771_v10 = vld [vmem:[%s5465_s12 + $0x214] sm:$0xf] }
 0x1c3   : > { %2645 = vmatpush.bf16.msra.mxu1 %v4284_v43 }
 0x1c4   : > { %6984 = vst [vmem:[#allocation92_spill] sm:$0xff] %v6027_v46 }
 0x1c5   : > { %6986 = vst [vmem:[#allocation94_spill] sm:$0xff] %v6039_v35 }
 0x1c6   : > { %6987 = vst [vmem:[#allocation95_spill] sm:$0xff] %v6041_v23 }
 0x1c7   : > { %v2099_v4 = vpop.f32.mrf.mxu2  ;;  %v1924_v11 = vpop.f32.mrf.mxu0 }
 0x1c8   : > { %v2100_v6 = vadd.f32 %v2099_v4, %v2011_v34  ;;  %v2188_v58 = vpop.f32.mrf.mxu3  ;;  %v1925_v32 = vadd.f32 %v1924_v11, %v5639_v30  ;;  %v2013_v46 = vpop.f32.mrf.mxu1  ;;  %v4772_v11 = vld [vmem:[%s5465_s12 + $0x21c] sm:$0xf] }
 0x1ca   : > { %v6046_v3 = vadd.f32 %v2188_v58, %v2100_v6  ;;  %v2014_v38 = vadd.f32 %v2013_v46, %v1925_v32  ;;  %2239 = vmatmul.bf16.gmra.mxu0 %v6037_v33  ;;  %v3959_v6 = vld [vmem:[%s5465_s12 + $0x218] sm:$0xf]  ;;  %v3961_v32 = vld [vmem:[%s5465_s12 + $0x238] sm:$0xf0]  ;;  %v6065_v33 = vor.u32 %v4771_v10, %v3953_v45  ;;  %v4209_v10 = vld [vmem:[#allocation5 + $0x28] sm:$0xf0] }
 0x1cb   : > { %2328 = vmatmul.bf16.gmra.mxu1 %v6039_v35  ;;  %v4776_v58 = vld [vmem:[%s5465_s12 + $0x234] sm:$0xf0] }
 0x1cc   : > { %2417 = vmatmul.bf16.gmra.mxu2 %v6041_v23  ;;  %v6063_v23 = vor.u32 %v4775_v2, %v3951_v62  ;;  %6990 = vst [vmem:[#allocation98_spill] sm:$0xff] %v6065_v33  ;;  %v4837_v62 = vld [vmem:[#allocation5 + $0x24] sm:$0xf] }
 0x1cd   : > { %2506 = vmatmul.bf16.gmra.mxu3 %v6044_v1 }
 0x1ce   : > { %6989 = vst [vmem:[#allocation97_spill] sm:$0xff] %v6063_v23 }
 0x1cf   : > { %v2102_v47 = vpop.f32.mrf.mxu2  ;;  %v1926_v4 = vpop.f32.mrf.mxu0 }
 0x1d0   : > { %v2103_v43 = vadd.f32 %v2102_v47, %v2014_v38  ;;  %v2191_v37 = vpop.f32.mrf.mxu3  ;;  %v1927_v34 = vadd.f32 %v1926_v4, %v5639_v30  ;;  %v2015_v46 = vpop.f32.mrf.mxu1  ;;  %v6067_v30 = vor.u32 %v4776_v58, %v3959_v6  ;;  %v6070_v4 = vor.u32 %v4772_v11, %v3961_v32 }
 0x1d1   : > { %v4212_v6 = vor.u32 %v4837_v62, %v4209_v10  ;;  %v4783_v62 = vld [vmem:[%s5465_s12 + $0x26c] sm:$0xf0]  ;;  %v4779_v10 = vld [vmem:[%s5465_s12 + $0x254] sm:$0xf] }
 0x1d2   : > { %v6053_v21 = vadd.f32 %v2191_v37, %v2103_v43  ;;  %v2016_v60 = vadd.f32 %v2015_v46, %v1927_v34  ;;  %6991 = vst [vmem:[#allocation99_spill] sm:$0xff] %v6067_v30 }
 0x1d3   : > { %6992 = vst [vmem:[#allocation100_spill] sm:$0xff] %v6070_v4  ;;  %2557 = vmatpush.bf16.msra.mxu0 %v4212_v6 }
 0x1d7   : > { %v2104_v1 = vpop.f32.mrf.mxu2  ;;  %v2205_v35 = vpop.f32.mrf.mxu0 }
 0x1d8   : > { %v2105_v38 = vadd.f32 %v2104_v1, %v2016_v60  ;;  %v2193_v47 = vpop.f32.mrf.mxu3  ;;  %v2206_v43 = vadd.f32 %v2205_v35, %v5663_v31  ;;  %v2294_v37 = vpop.f32.mrf.mxu1  ;;  %v4869_v1 = vld [vmem:[#allocation5 + $0x124] sm:$0xf]  ;;  %v4337_v60 = vld [vmem:[#allocation5 + $0x128] sm:$0xf0] }
 0x1d9   : > { %v4340_v2 = vor.u32 %v4869_v1, %v4337_v60  ;;  %v4885_v31 = vld [vmem:[#allocation5 + $0x1a4] sm:$0xf]  ;;  %v4401_v35 = vld [vmem:[#allocation5 + $0x1a8] sm:$0xf0]  ;;  %v3983_v60 = vld [vmem:[%s5465_s12 + $0x250] sm:$0xf] }
 0x1da   : > { %v6072_v34 = vadd.f32 %v2193_v47, %v2105_v38  ;;  %v2295_v46 = vadd.f32 %v2294_v37, %v2206_v43  ;;  %2244 = vmatmul.bf16.gmra.mxu0 %v6063_v23  ;;  %v4404_v58 = vor.u32 %v4885_v31, %v4401_v35  ;;  %v4853_v31 = vld [vmem:[#allocation5 + $0xa4] sm:$0xf]  ;;  %v3985_v35 = vld [vmem:[%s5465_s12 + $0x270] sm:$0xf0] }
 0x1db   : > { %2333 = vmatmul.bf16.gmra.mxu1 %v6065_v33  ;;  %2735 = vmatpush.bf16.msra.mxu2 %v4340_v2  ;;  %v4780_v2 = vld [vmem:[%s5465_s12 + $0x25c] sm:$0xf] }
 0x1dc   : > { %2422 = vmatmul.bf16.gmra.mxu2 %v6067_v30  ;;  %2824 = vmatpush.bf16.msra.mxu3 %v4404_v58  ;;  %v3993_v33 = vld [vmem:[%s5465_s12 + $0x278] sm:$0xf0] }
 0x1dd   : > { %2511 = vmatmul.bf16.gmra.mxu3 %v6070_v4  ;;  %v4784_v4 = vld [vmem:[%s5465_s12 + $0x274] sm:$0xf0] }
 0x1df   : > { %v2383_v45 = vpop.f32.mrf.mxu2  ;;  %v2207_v38 = vpop.f32.mrf.mxu0 }
 0x1e0   : > { %v2384_v11 = vadd.f32 %v2383_v45, %v2295_v46  ;;  %v2472_v32 = vpop.f32.mrf.mxu3  ;;  %v2208_v47 = vadd.f32 %v2207_v38, %v5682_v18  ;;  %v2296_v43 = vpop.f32.mrf.mxu1  ;;  %v4273_v46 = vld [vmem:[#allocation5 + $0xa8] sm:$0xf0]  ;;  %v3991_v45 = vld [vmem:[%s5465_s12 + $0x258] sm:$0xf]  ;;  %v6089_v18 = vor.u32 %v4783_v62, %v3983_v60 }
 0x1e1   : > { %v4276_v30 = vor.u32 %v4853_v31, %v4273_v46  ;;  %v6093_v38 = vor.u32 %v4784_v4, %v3991_v45  ;;  %v4015_v46 = vld [vmem:[%s5465_s12 + $0x290] sm:$0xf]  ;;  %v4787_v45 = vld [vmem:[%s5465_s12 + $0x294] sm:$0xf] }
 0x1e2   : > { %v6079_v37 = vadd.f32 %v2472_v32, %v2384_v11  ;;  %v2297_v1 = vadd.f32 %v2296_v43, %v2208_v47  ;;  %v6091_v32 = vor.u32 %v4779_v10, %v3985_v35  ;;  %v4791_v35 = vld [vmem:[%s5465_s12 + $0x2ac] sm:$0xf0] }
 0x1e3   : > { %2646 = vmatpush.bf16.msra.mxu1 %v4276_v30  ;;  %6995 = vst [vmem:[#allocation103_spill] sm:$0xff] %v6093_v38 }
 0x1e4   : > { %6993 = vst [vmem:[#allocation101_spill] sm:$0xff] %v6079_v37  ;;  %v6096_v37 = vor.u32 %v4780_v2, %v3993_v33  ;;  %v4017_v2 = vld [vmem:[%s5465_s12 + $0x2b0] sm:$0xf0] }
 0x1e5   : > { %6994 = vst [vmem:[#allocation102_spill] sm:$0xff] %v6091_v32 }
 0x1e6   : > { %6996 = vst [vmem:[#allocation104_spill] sm:$0xff] %v6096_v37 }
 0x1e7   : > { %v2385_v23 = vpop.f32.mrf.mxu2  ;;  %v2210_v11 = vpop.f32.mrf.mxu0 }
 0x1e8   : > { %v2386_v6 = vadd.f32 %v2385_v23, %v2297_v1  ;;  %v2474_v58 = vpop.f32.mrf.mxu3  ;;  %v2211_v47 = vadd.f32 %v2210_v11, %v5689_v40  ;;  %v2299_v43 = vpop.f32.mrf.mxu1  ;;  %v4788_v11 = vld [vmem:[%s5465_s12 + $0x29c] sm:$0xf] }
 0x1ea   : > { %v6098_v31 = vadd.f32 %v2474_v58, %v2386_v6  ;;  %v2300_v60 = vadd.f32 %v2299_v43, %v2211_v47  ;;  %2249 = vmatmul.bf16.gmra.mxu0 %v6089_v18  ;;  %v4023_v6 = vld [vmem:[%s5465_s12 + $0x298] sm:$0xf]  ;;  %v4025_v47 = vld [vmem:[%s5465_s12 + $0x2b8] sm:$0xf0] }
 0x1eb   : > { %2338 = vmatmul.bf16.gmra.mxu1 %v6091_v32  ;;  %v4792_v58 = vld [vmem:[%s5465_s12 + $0x2b4] sm:$0xf0]  ;;  %v6117_v32 = vor.u32 %v4787_v45, %v4017_v2  ;;  %v4201_v2 = vld [vmem:[#allocation5 + $0x18] sm:$0xf0] }
 0x1ec   : > { %2427 = vmatmul.bf16.gmra.mxu2 %v6093_v38 }
 0x1ed   : > { %2516 = vmatmul.bf16.gmra.mxu3 %v6096_v37  ;;  %v6115_v37 = vor.u32 %v4791_v35, %v4015_v46  ;;  %6998 = vst [vmem:[#allocation106_spill] sm:$0xff] %v6117_v32  ;;  %v4329_v46 = vld [vmem:[#allocation5 + $0x118] sm:$0xf0]  ;;  %v4835_v35 = vld [vmem:[#allocation5 + $0x14] sm:$0xf] }
 0x1ef   : > { %v2388_v40 = vpop.f32.mrf.mxu2  ;;  %v2212_v30 = vpop.f32.mrf.mxu0  ;;  %6997 = vst [vmem:[#allocation105_spill] sm:$0xff] %v6115_v37 }
 0x1f0   : > { %v2389_v33 = vadd.f32 %v2388_v40, %v2300_v60  ;;  %v2477_v23 = vpop.f32.mrf.mxu3  ;;  %v2213_v4 = vadd.f32 %v2212_v30, %v5708_v39  ;;  %v2301_v1 = vpop.f32.mrf.mxu1  ;;  %v6119_v39 = vor.u32 %v4792_v58, %v4023_v6  ;;  %v6122_v30 = vor.u32 %v4788_v11, %v4025_v47 }
 0x1f1   : > { %v4204_v58 = vor.u32 %v4835_v35, %v4201_v2  ;;  %v4799_v35 = vld [vmem:[%s5465_s12 + $0x2ec] sm:$0xf0]  ;;  %v4795_v2 = vld [vmem:[%s5465_s12 + $0x2d4] sm:$0xf] }
 0x1f2   : > { %v6105_v62 = vadd.f32 %v2477_v23, %v2389_v33  ;;  %v2302_v10 = vadd.f32 %v2301_v1, %v2213_v4  ;;  %6999 = vst [vmem:[#allocation107_spill] sm:$0xff] %v6119_v39 }
 0x1f3   : > { %7000 = vst [vmem:[#allocation108_spill] sm:$0xff] %v6122_v30  ;;  %2558 = vmatpush.bf16.msra.mxu0 %v4204_v58 }
 0x1f7   : > { %v2390_v43 = vpop.f32.mrf.mxu2  ;;  %v2215_v38 = vpop.f32.mrf.mxu0 }
 0x1f8   : > { %v2391_v60 = vadd.f32 %v2390_v43, %v2302_v10  ;;  %v2479_v40 = vpop.f32.mrf.mxu3  ;;  %v2216_v33 = vadd.f32 %v2215_v38, %v5715_v41  ;;  %v2304_v23 = vpop.f32.mrf.mxu1  ;;  %v4867_v10 = vld [vmem:[#allocation5 + $0x114] sm:$0xf]  ;;  %v4393_v38 = vld [vmem:[#allocation5 + $0x198] sm:$0xf0] }
 0x1f9   : > { %v4332_v45 = vor.u32 %v4867_v10, %v4329_v46  ;;  %v4883_v41 = vld [vmem:[#allocation5 + $0x194] sm:$0xf]  ;;  %v4047_v46 = vld [vmem:[%s5465_s12 + $0x2d0] sm:$0xf] }
 0x1fa   : > { %v6124_v4 = vadd.f32 %v2479_v40, %v2391_v60  ;;  %v2305_v1 = vadd.f32 %v2304_v23, %v2216_v33  ;;  %2254 = vmatmul.bf16.gmra.mxu0 %v6115_v37  ;;  %v4396_v11 = vor.u32 %v4883_v41, %v4393_v38  ;;  %v4851_v41 = vld [vmem:[#allocation5 + $0x94] sm:$0xf] }
 0x1fb   : > { %2343 = vmatmul.bf16.gmra.mxu1 %v6117_v32  ;;  %2736 = vmatpush.bf16.msra.mxu2 %v4332_v45  ;;  %v4049_v38 = vld [vmem:[%s5465_s12 + $0x2f0] sm:$0xf0]  ;;  %v4796_v45 = vld [vmem:[%s5465_s12 + $0x2dc] sm:$0xf] }
 0x1fc   : > { %2432 = vmatmul.bf16.gmra.mxu2 %v6119_v39  ;;  %2825 = vmatpush.bf16.msra.mxu3 %v4396_v11  ;;  %v4057_v32 = vld [vmem:[%s5465_s12 + $0x2f8] sm:$0xf0] }
 0x1fd   : > { %2521 = vmatmul.bf16.gmra.mxu3 %v6122_v30  ;;  %v4800_v30 = vld [vmem:[%s5465_s12 + $0x2f4] sm:$0xf0] }
 0x1ff   : > { %v2393_v6 = vpop.f32.mrf.mxu2  ;;  %v2217_v60 = vpop.f32.mrf.mxu0 }
 0x200   : > { %v2394_v47 = vadd.f32 %v2393_v6, %v2305_v1  ;;  %v2482_v43 = vpop.f32.mrf.mxu3  ;;  %v2218_v40 = vadd.f32 %v2217_v60, %v5734_v44  ;;  %v2306_v33 = vpop.f32.mrf.mxu1  ;;  %v4265_v1 = vld [vmem:[#allocation5 + $0x98] sm:$0xf0]  ;;  %v4055_v6 = vld [vmem:[%s5465_s12 + $0x2d8] sm:$0xf]  ;;  %v6141_v44 = vor.u32 %v4799_v35, %v4047_v46 }
 0x201   : > { %v4268_v39 = vor.u32 %v4851_v41, %v4265_v1  ;;  %v6145_v60 = vor.u32 %v4800_v30, %v4055_v6  ;;  %v4079_v1 = vld [vmem:[%s5465_s12 + $0x310] sm:$0xf]  ;;  %v4803_v6 = vld [vmem:[%s5465_s12 + $0x314] sm:$0xf] }
 0x202   : > { %v6131_v23 = vadd.f32 %v2482_v43, %v2394_v47  ;;  %v2307_v10 = vadd.f32 %v2306_v33, %v2218_v40  ;;  %v6143_v43 = vor.u32 %v4795_v2, %v4049_v38  ;;  %v4807_v38 = vld [vmem:[%s5465_s12 + $0x32c] sm:$0xf0] }
 0x203   : > { %2647 = vmatpush.bf16.msra.mxu1 %v4268_v39  ;;  %7003 = vst [vmem:[#allocation111_spill] sm:$0xff] %v6145_v60 }
 0x204   : > { %7001 = vst [vmem:[#allocation109_spill] sm:$0xff] %v6131_v23  ;;  %v6148_v23 = vor.u32 %v4796_v45, %v4057_v32  ;;  %v4081_v45 = vld [vmem:[%s5465_s12 + $0x330] sm:$0xf0] }
 0x205   : > { %7002 = vst [vmem:[#allocation110_spill] sm:$0xff] %v6143_v43 }
 0x206   : > { %7004 = vst [vmem:[#allocation112_spill] sm:$0xff] %v6148_v23 }
 0x207   : > { %v2395_v37 = vpop.f32.mrf.mxu2  ;;  %v2220_v47 = vpop.f32.mrf.mxu0 }
 0x208   : > { %v2396_v58 = vadd.f32 %v2395_v37, %v2307_v10  ;;  %v2484_v11 = vpop.f32.mrf.mxu3  ;;  %v2221_v40 = vadd.f32 %v2220_v47, %v5741_v63  ;;  %v2309_v33 = vpop.f32.mrf.mxu1  ;;  %v4804_v47 = vld [vmem:[%s5465_s12 + $0x31c] sm:$0xf] }
 0x20a   : > { %v6150_v41 = vadd.f32 %v2484_v11, %v2396_v58  ;;  %v2310_v46 = vadd.f32 %v2309_v33, %v2221_v40  ;;  %2259 = vmatmul.bf16.gmra.mxu0 %v6141_v44  ;;  %v4087_v58 = vld [vmem:[%s5465_s12 + $0x318] sm:$0xf]  ;;  %v4089_v40 = vld [vmem:[%s5465_s12 + $0x338] sm:$0xf0] }
 0x20b   : > { %2348 = vmatmul.bf16.gmra.mxu1 %v6143_v43  ;;  %v4808_v11 = vld [vmem:[%s5465_s12 + $0x334] sm:$0xf0]  ;;  %v6169_v43 = vor.u32 %v4803_v6, %v4081_v45  ;;  %v4193_v45 = vld [vmem:[#allocation5 + $0x8] sm:$0xf0] }
 0x20c   : > { %2437 = vmatmul.bf16.gmra.mxu2 %v6145_v60 }
 0x20d   : > { %2526 = vmatmul.bf16.gmra.mxu3 %v6148_v23  ;;  %v6167_v23 = vor.u32 %v4807_v38, %v4079_v1  ;;  %7006 = vst [vmem:[#allocation114_spill] sm:$0xff] %v6169_v43  ;;  %v4321_v1 = vld [vmem:[#allocation5 + $0x108] sm:$0xf0]  ;;  %v4833_v38 = vld [vmem:[#allocation5 + $0x4] sm:$0xf] }
 0x20f   : > { %v2398_v63 = vpop.f32.mrf.mxu2  ;;  %v2222_v39 = vpop.f32.mrf.mxu0  ;;  %7005 = vst [vmem:[#allocation113_spill] sm:$0xff] %v6167_v23 }
 0x210   : > { %v2399_v37 = vadd.f32 %v2398_v63, %v2310_v46  ;;  %v2487_v32 = vpop.f32.mrf.mxu3  ;;  %v2223_v30 = vadd.f32 %v2222_v39, %v5760_v17  ;;  %v2311_v10 = vpop.f32.mrf.mxu1  ;;  %v6171_v17 = vor.u32 %v4808_v11, %v4087_v58  ;;  %v6174_v39 = vor.u32 %v4804_v47, %v4089_v40 }
 0x211   : > { %v4196_v11 = vor.u32 %v4833_v38, %v4193_v45  ;;  %v4815_v38 = vld [vmem:[%s5465_s12 + $0x36c] sm:$0xf0]  ;;  %v4811_v45 = vld [vmem:[%s5465_s12 + $0x354] sm:$0xf] }
 0x212   : > { %v6157_v35 = vadd.f32 %v2487_v32, %v2399_v37  ;;  %v2312_v2 = vadd.f32 %v2311_v10, %v2223_v30  ;;  %7007 = vst [vmem:[#allocation115_spill] sm:$0xff] %v6171_v17 }
 0x213   : > { %7008 = vst [vmem:[#allocation116_spill] sm:$0xff] %v6174_v39  ;;  %2559 = vmatpush.bf16.msra.mxu0 %v4196_v11 }
 0x217   : > { %v2400_v33 = vpop.f32.mrf.mxu2  ;;  %v2225_v60 = vpop.f32.mrf.mxu0 }
 0x218   : > { %v2401_v46 = vadd.f32 %v2400_v33, %v2312_v2  ;;  %v2489_v63 = vpop.f32.mrf.mxu3  ;;  %v2226_v37 = vadd.f32 %v2225_v60, %v5767_v42  ;;  %v2314_v32 = vpop.f32.mrf.mxu1  ;;  %v4865_v2 = vld [vmem:[#allocation5 + $0x104] sm:$0xf]  ;;  %v4385_v60 = vld [vmem:[#allocation5 + $0x188] sm:$0xf0] }
 0x219   : > { %v4324_v6 = vor.u32 %v4865_v2, %v4321_v1  ;;  %v4881_v42 = vld [vmem:[#allocation5 + $0x184] sm:$0xf]  ;;  %v4111_v1 = vld [vmem:[%s5465_s12 + $0x350] sm:$0xf] }
 0x21a   : > { %v6176_v30 = vadd.f32 %v2489_v63, %v2401_v46  ;;  %v2315_v10 = vadd.f32 %v2314_v32, %v2226_v37  ;;  %2264 = vmatmul.bf16.gmra.mxu0 %v6167_v23  ;;  %v4388_v47 = vor.u32 %v4881_v42, %v4385_v60  ;;  %v4849_v42 = vld [vmem:[#allocation5 + $0x84] sm:$0xf]  ;;  %v4113_v60 = vld [vmem:[%s5465_s12 + $0x370] sm:$0xf0] }
 0x21b   : > { %2353 = vmatmul.bf16.gmra.mxu1 %v6169_v43  ;;  %2737 = vmatpush.bf16.msra.mxu2 %v4324_v6  ;;  %v4812_v6 = vld [vmem:[%s5465_s12 + $0x35c] sm:$0xf] }
 0x21c   : > { %2442 = vmatmul.bf16.gmra.mxu2 %v6171_v17  ;;  %2826 = vmatpush.bf16.msra.mxu3 %v4388_v47  ;;  %v4121_v43 = vld [vmem:[%s5465_s12 + $0x378] sm:$0xf0] }
 0x21d   : > { %2531 = vmatmul.bf16.gmra.mxu3 %v6174_v39  ;;  %v4816_v39 = vld [vmem:[%s5465_s12 + $0x374] sm:$0xf0] }
 0x21f   : > { %v2403_v58 = vpop.f32.mrf.mxu2  ;;  %v2227_v46 = vpop.f32.mrf.mxu0 }
 0x220   : > { %v2404_v40 = vadd.f32 %v2403_v58, %v2315_v10  ;;  %v2492_v33 = vpop.f32.mrf.mxu3  ;;  %v2228_v63 = vadd.f32 %v2227_v46, %v5786_v59  ;;  %v2316_v37 = vpop.f32.mrf.mxu1  ;;  %v4257_v10 = vld [vmem:[#allocation5 + $0x88] sm:$0xf0]  ;;  %v4119_v58 = vld [vmem:[%s5465_s12 + $0x358] sm:$0xf]  ;;  %v6193_v59 = vor.u32 %v4815_v38, %v4111_v1 }
 0x221   : > { %v4260_v17 = vor.u32 %v4849_v42, %v4257_v10  ;;  %v6197_v46 = vor.u32 %v4816_v39, %v4119_v58  ;;  %v4143_v10 = vld [vmem:[%s5465_s12 + $0x390] sm:$0xf]  ;;  %v4819_v58 = vld [vmem:[%s5465_s12 + $0x394] sm:$0xf] }
 0x222   : > { %v6183_v32 = vadd.f32 %v2492_v33, %v2404_v40  ;;  %v2317_v2 = vadd.f32 %v2316_v37, %v2228_v63  ;;  %v6195_v33 = vor.u32 %v4811_v45, %v4113_v60  ;;  %v4823_v60 = vld [vmem:[%s5465_s12 + $0x3ac] sm:$0xf0] }
 0x223   : > { %2648 = vmatpush.bf16.msra.mxu1 %v4260_v17  ;;  %7011 = vst [vmem:[#allocation119_spill] sm:$0xff] %v6197_v46 }
 0x224   : > { %7009 = vst [vmem:[#allocation117_spill] sm:$0xff] %v6183_v32  ;;  %v6200_v32 = vor.u32 %v4812_v6, %v4121_v43  ;;  %v4145_v6 = vld [vmem:[%s5465_s12 + $0x3b0] sm:$0xf0] }
 0x225   : > { %7010 = vst [vmem:[#allocation118_spill] sm:$0xff] %v6195_v33 }
 0x226   : > { %7012 = vst [vmem:[#allocation120_spill] sm:$0xff] %v6200_v32 }
 0x227   : > { %v2405_v23 = vpop.f32.mrf.mxu2  ;;  %v2230_v40 = vpop.f32.mrf.mxu0 }
 0x228   : > { %v2406_v11 = vadd.f32 %v2405_v23, %v2317_v2  ;;  %v2494_v47 = vpop.f32.mrf.mxu3  ;;  %v2231_v63 = vadd.f32 %v2230_v40, %v5793_v7  ;;  %v2319_v37 = vpop.f32.mrf.mxu1  ;;  %v4820_v40 = vld [vmem:[%s5465_s12 + $0x39c] sm:$0xf] }
 0x22a   : > { %v6202_v42 = vadd.f32 %v2494_v47, %v2406_v11  ;;  %v2320_v1 = vadd.f32 %v2319_v37, %v2231_v63  ;;  %2269 = vmatmul.bf16.gmra.mxu0 %v6193_v59  ;;  %v4151_v11 = vld [vmem:[%s5465_s12 + $0x398] sm:$0xf]  ;;  %v4153_v63 = vld [vmem:[%s5465_s12 + $0x3b8] sm:$0xf0] }
 0x22b   : > { %2358 = vmatmul.bf16.gmra.mxu1 %v6195_v33  ;;  %v4824_v47 = vld [vmem:[%s5465_s12 + $0x3b4] sm:$0xf0]  ;;  %v6221_v33 = vor.u32 %v4819_v58, %v4145_v6  ;;  %v4505_v6 = vld [vmem:[#allocation5 + $0x278] sm:$0xf0] }
 0x22c   : > { %2447 = vmatmul.bf16.gmra.mxu2 %v6197_v46 }
 0x22d   : > { %2536 = vmatmul.bf16.gmra.mxu3 %v6200_v32  ;;  %v6219_v32 = vor.u32 %v4823_v60, %v4143_v10  ;;  %7014 = vst [vmem:[#allocation122_spill] sm:$0xff] %v6221_v33  ;;  %v4633_v10 = vld [vmem:[#allocation5 + $0x378] sm:$0xf0]  ;;  %v4911_v60 = vld [vmem:[#allocation5 + $0x274] sm:$0xf] }
 0x22f   : > { %v2408_v7 = vpop.f32.mrf.mxu2  ;;  %v2232_v17 = vpop.f32.mrf.mxu0  ;;  %7013 = vst [vmem:[#allocation121_spill] sm:$0xff] %v6219_v32 }
 0x230   : > { %v2409_v23 = vadd.f32 %v2408_v7, %v2320_v1  ;;  %v2497_v43 = vpop.f32.mrf.mxu3  ;;  %v2233_v39 = vadd.f32 %v2232_v17, %v5812_v61  ;;  %v2321_v2 = vpop.f32.mrf.mxu1  ;;  %v6223_v61 = vor.u32 %v4824_v47, %v4151_v11  ;;  %v6226_v17 = vor.u32 %v4820_v40, %v4153_v63 }
 0x231   : > { %v4508_v47 = vor.u32 %v4911_v60, %v4505_v6  ;;  %v4831_v60 = vld [vmem:[%s5465_s12 + $0x3ec] sm:$0xf0]  ;;  %v4827_v6 = vld [vmem:[%s5465_s12 + $0x3d4] sm:$0xf] }
 0x232   : > { %v6209_v38 = vadd.f32 %v2497_v43, %v2409_v23  ;;  %v2322_v45 = vadd.f32 %v2321_v2, %v2233_v39  ;;  %7015 = vst [vmem:[#allocation123_spill] sm:$0xff] %v6223_v61 }
 0x233   : > { %7016 = vst [vmem:[#allocation124_spill] sm:$0xff] %v6226_v17  ;;  %2908 = vmatpush.bf16.msrb.mxu0 %v4508_v47 }
 0x237   : > { %v2410_v37 = vpop.f32.mrf.mxu2  ;;  %v2235_v46 = vpop.f32.mrf.mxu0 }
 0x238   : > { %v2411_v1 = vadd.f32 %v2410_v37, %v2322_v45  ;;  %v2499_v7 = vpop.f32.mrf.mxu3  ;;  %v2236_v23 = vadd.f32 %v2235_v46, %v5819_v0  ;;  %v2324_v43 = vpop.f32.mrf.mxu1  ;;  %v4943_v45 = vld [vmem:[#allocation5 + $0x374] sm:$0xf]  ;;  %v4697_v46 = vld [vmem:[#allocation5 + $0x3f8] sm:$0xf0] }
 0x239   : > { %v4636_v58 = vor.u32 %v4943_v45, %v4633_v10  ;;  %v4959_v0 = vld [vmem:[#allocation5 + $0x3f4] sm:$0xf]  ;;  %v4175_v10 = vld [vmem:[%s5465_s12 + $0x3d0] sm:$0xf] }
 0x23a   : > { %v6228_v39 = vadd.f32 %v2499_v7, %v2411_v1  ;;  %v2325_v2 = vadd.f32 %v2324_v43, %v2236_v23  ;;  %2274 = vmatmul.bf16.gmra.mxu0 %v6219_v32  ;;  %v4700_v40 = vor.u32 %v4959_v0, %v4697_v46  ;;  %v4927_v0 = vld [vmem:[#allocation5 + $0x2f4] sm:$0xf] }
 0x23b   : > { %2363 = vmatmul.bf16.gmra.mxu1 %v6221_v33  ;;  %3086 = vmatpush.bf16.msrb.mxu2 %v4636_v58  ;;  %v4177_v46 = vld [vmem:[%s5465_s12 + $0x3f0] sm:$0xf0]  ;;  %v4828_v58 = vld [vmem:[%s5465_s12 + $0x3dc] sm:$0xf] }
 0x23c   : > { %7017 = vst [vmem:[#allocation125_spill] sm:$0xff] %v6228_v39  ;;  %2452 = vmatmul.bf16.gmra.mxu2 %v6223_v61  ;;  %3175 = vmatpush.bf16.msrb.mxu3 %v4700_v40  ;;  %v4185_v33 = vld [vmem:[%s5465_s12 + $0x3f8] sm:$0xf0] }
 0x23d   : > { %2541 = vmatmul.bf16.gmra.mxu3 %v6226_v17  ;;  %v4832_v17 = vld [vmem:[%s5465_s12 + $0x3f4] sm:$0xf0] }
 0x23f   : > { %v2413_v11 = vpop.f32.mrf.mxu2  ;;  %v2237_v1 = vpop.f32.mrf.mxu0 }
 0x240   : > { %v2414_v63 = vadd.f32 %v2413_v11, %v2325_v2  ;;  %v2502_v37 = vpop.f32.mrf.mxu3  ;;  %v2238_v7 = vadd.f32 %v2237_v1, %v5838_v19  ;;  %v2326_v23 = vpop.f32.mrf.mxu1  ;;  %v4569_v2 = vld [vmem:[#allocation5 + $0x2f8] sm:$0xf0]  ;;  %v4183_v11 = vld [vmem:[%s5465_s12 + $0x3d8] sm:$0xf]  ;;  %v6245_v19 = vor.u32 %v4831_v60, %v4175_v10 }
 0x241   : > { %v4572_v61 = vor.u32 %v4927_v0, %v4569_v2  ;;  %v6249_v1 = vor.u32 %v4832_v17, %v4183_v11 }
 0x242   : > { %v6235_v43 = vadd.f32 %v2502_v37, %v2414_v63  ;;  %v2327_v45 = vadd.f32 %v2326_v23, %v2238_v7  ;;  %v6247_v37 = vor.u32 %v4827_v6, %v4177_v46 }
 0x243   : > { %2997 = vmatpush.bf16.msrb.mxu1 %v4572_v61 }
 0x244   : > { %7018 = vst [vmem:[#allocation126_spill] sm:$0xff] %v6235_v43  ;;  %v6252_v43 = vor.u32 %v4828_v58, %v4185_v33 }
 0x247   : > { %v2415_v32 = vpop.f32.mrf.mxu2  ;;  %v2240_v63 = vpop.f32.mrf.mxu0 }
 0x248   : > { %v2416_v47 = vadd.f32 %v2415_v32, %v2327_v45  ;;  %v2504_v40 = vpop.f32.mrf.mxu3  ;;  %v2241_v7 = vadd.f32 %v2240_v63, %v5845_v29  ;;  %v2329_v23 = vpop.f32.mrf.mxu1 }
 0x24a   : > { %v6254_v39 = vadd.f32 %v2504_v40, %v2416_v47  ;;  %v2330_v0 = vadd.f32 %v2329_v23, %v2241_v7  ;;  %2279 = vmatmul.bf16.gmra.mxu0 %v6245_v19  ;;  %v4625_v7 = vld [vmem:[#allocation5 + $0x368] sm:$0xf0]  ;;  %v4909_v23 = vld [vmem:[#allocation5 + $0x264] sm:$0xf] }
 0x24b   : > { %2368 = vmatmul.bf16.gmra.mxu1 %v6247_v37 }
 0x24c   : > { %2457 = vmatmul.bf16.gmra.mxu2 %v6249_v1 }
 0x24d   : > { %2546 = vmatmul.bf16.gmra.mxu3 %v6252_v43 }
 0x24f   : > { %v2418_v32 = vpop.f32.mrf.mxu2  ;;  %v2242_v45 = vpop.f32.mrf.mxu0 }
 0x250   : > { %v2419_v61 = vadd.f32 %v2418_v32, %v2330_v0  ;;  %v2507_v17 = vpop.f32.mrf.mxu3  ;;  %v2243_v29 = vadd.f32 %v2242_v45, %v5864_v24  ;;  %v2331_v10 = vpop.f32.mrf.mxu1  ;;  %v4941_v24 = vld [vmem:[#allocation5 + $0x364] sm:$0xf]  ;;  %v4497_v32 = vld [vmem:[#allocation5 + $0x268] sm:$0xf0] }
 0x251   : > { %v4628_v0 = vor.u32 %v4941_v24, %v4625_v7  ;;  %v4500_v45 = vor.u32 %v4909_v23, %v4497_v32 }
 0x252   : > { %v6261_v33 = vadd.f32 %v2507_v17, %v2419_v61  ;;  %v2332_v60 = vadd.f32 %v2331_v10, %v2243_v29  ;;  %v4957_v61 = vld [vmem:[#allocation5 + $0x3e4] sm:$0xf]  ;;  %v4689_v17 = vld [vmem:[#allocation5 + $0x3e8] sm:$0xf0] }
 0x253   : > { %v4692_v29 = vor.u32 %v4957_v61, %v4689_v17  ;;  %3087 = vmatpush.bf16.msrb.mxu2 %v4628_v0  ;;  %2909 = vmatpush.bf16.msrb.mxu0 %v4500_v45 }
 0x255   : > { %3176 = vmatpush.bf16.msrb.mxu3 %v4692_v29 }
 0x257   : > { %v2420_v6 = vpop.f32.mrf.mxu2  ;;  %v2245_v11 = vpop.f32.mrf.mxu0 }
 0x258   : > { %v2421_v2 = vadd.f32 %v2420_v6, %v2332_v60  ;;  %v2509_v46 = vpop.f32.mrf.mxu3  ;;  %v2246_v58 = vadd.f32 %v2245_v11, %v5871_v9  ;;  %v2334_v47 = vpop.f32.mrf.mxu1 }
 0x25a   : > { %v6264_v40 = vadd.f32 %v2509_v46, %v2421_v2  ;;  %v2335_v63 = vadd.f32 %v2334_v47, %v2246_v58  ;;  %2560 = vmatmul.bf16.vlgmr.msra.gmra.mxu0 %v5487_v48  ;;  %v4925_v2 = vld [vmem:[#allocation5 + $0x2e4] sm:$0xf]  ;;  %v4561_v46 = vld [vmem:[#allocation5 + $0x2e8] sm:$0xf0] }
 0x25b   : > { %2649 = vmatmul.bf16.vlgmr.msra.gmra.mxu1 %v5489_v52  ;;  %v4564_v11 = vor.u32 %v4925_v2, %v4561_v46  ;;  %v4907_v2 = vld [vmem:[#allocation5 + $0x254] sm:$0xf] }
 0x25c   : > { %2738 = vmatmul.bf16.vlgmr.msra.gmra.mxu2 %v5491_v53 }
 0x25d   : > { %2827 = vmatmul.bf16.vlgmr.msra.gmra.mxu3 %v5493_v54  ;;  %2998 = vmatpush.bf16.msrb.mxu1 %v4564_v11  ;;  %v4489_v11 = vld [vmem:[#allocation5 + $0x258] sm:$0xf0] }
 0x25f   : > { %v2423_v9 = vpop.f32.mrf.mxu2  ;;  %v2247_v6 = vpop.f32.mrf.mxu0 }
 0x260   : > { %v2424_v10 = vadd.f32 %v2423_v9, %v2335_v63  ;;  %v2512_v60 = vpop.f32.mrf.mxu3  ;;  %v2248_v48 = vadd.f32 %v2247_v6, %v5890_v8  ;;  %v2336_v52 = vpop.f32.mrf.mxu1 }
 0x262   : > { %v6271_v53 = vadd.f32 %v2512_v60, %v2424_v10  ;;  %v2337_v54 = vadd.f32 %v2336_v52, %v2248_v48 }
 0x267   : > { %v2425_v58 = vpop.f32.mrf.mxu2  ;;  %v2250_v7 = vpop.f32.mrf.mxu0 }
 0x268   : > { %v2426_v47 = vadd.f32 %v2425_v58, %v2337_v54  ;;  %v2514_v24 = vpop.f32.mrf.mxu3  ;;  %v2251_v63 = vadd.f32 %v2250_v7, %v5897_v20  ;;  %v2339_v23 = vpop.f32.mrf.mxu1  ;;  %v4617_v54 = vld [vmem:[#allocation5 + $0x358] sm:$0xf0]  ;;  %v4955_v58 = vld [vmem:[#allocation5 + $0x3d4] sm:$0xf] }
 0x26a   : > { %v6274_v0 = vadd.f32 %v2514_v24, %v2426_v47  ;;  %v2340_v8 = vadd.f32 %v2339_v23, %v2251_v63  ;;  %2565 = vmatmul.bf16.gmra.mxu0 %v5507_v13  ;;  %v4681_v47 = vld [vmem:[#allocation5 + $0x3d8] sm:$0xf0]  ;;  %v4492_v24 = vor.u32 %v4907_v2, %v4489_v11 }
 0x26b   : > { %2654 = vmatmul.bf16.gmra.mxu1 %v5509_v14  ;;  %v4684_v7 = vor.u32 %v4955_v58, %v4681_v47 }
 0x26c   : > { %2743 = vmatmul.bf16.gmra.mxu2 %v5511_v15  ;;  %2910 = vmatpush.bf16.msrb.mxu0 %v4492_v24  ;;  %v7023_v24 = vld [vmem:[#allocation14_spill] sm:$0xff] }
 0x26d   : > { %2832 = vmatmul.bf16.gmra.mxu3 %v5513_v16 }
 0x26e   : > { %3177 = vmatpush.bf16.msrb.mxu3 %v4684_v7  ;;  %v7024_v7 = vld [vmem:[#allocation15_spill] sm:$0xff] }
 0x26f   : > { %v2428_v32 = vpop.f32.mrf.mxu2  ;;  %v2252_v9 = vpop.f32.mrf.mxu0 }
 0x270   : > { %v2429_v61 = vadd.f32 %v2428_v32, %v2340_v8  ;;  %v2517_v17 = vpop.f32.mrf.mxu3  ;;  %v2253_v45 = vadd.f32 %v2252_v9, %v5916_v49  ;;  %v2341_v29 = vpop.f32.mrf.mxu1  ;;  %v4939_v49 = vld [vmem:[#allocation5 + $0x354] sm:$0xf] }
 0x271   : > { %v4620_v46 = vor.u32 %v4939_v49, %v4617_v54  ;;  %v4923_v32 = vld [vmem:[#allocation5 + $0x2d4] sm:$0xf] }
 0x272   : > { %v6281_v20 = vadd.f32 %v2517_v17, %v2429_v61  ;;  %v2342_v10 = vadd.f32 %v2341_v29, %v2253_v45  ;;  %v4553_v61 = vld [vmem:[#allocation5 + $0x2d8] sm:$0xf0] }
 0x273   : > { %3088 = vmatpush.bf16.msrb.mxu2 %v4620_v46  ;;  %v4556_v17 = vor.u32 %v4923_v32, %v4553_v61  ;;  %v4673_v32 = vld [vmem:[#allocation5 + $0x3c8] sm:$0xf0] }
 0x275   : > { %2999 = vmatpush.bf16.msrb.mxu1 %v4556_v17 }
 0x277   : > { %v2430_v60 = vpop.f32.mrf.mxu2  ;;  %v2255_v13 = vpop.f32.mrf.mxu0 }
 0x278   : > { %v2431_v6 = vadd.f32 %v2430_v60, %v2342_v10  ;;  %v2519_v48 = vpop.f32.mrf.mxu3  ;;  %v2256_v14 = vadd.f32 %v2255_v13, %v5923_v57  ;;  %v2344_v52 = vpop.f32.mrf.mxu1 }
 0x27a   : > { %v6284_v15 = vadd.f32 %v2519_v48, %v2431_v6  ;;  %v2345_v16 = vadd.f32 %v2344_v52, %v2256_v14  ;;  %2570 = vmatmul.bf16.gmra.mxu0 %v5527_v25 }
 0x27b   : > { %2659 = vmatmul.bf16.gmra.mxu1 %v5529_v26 }
 0x27c   : > { %2748 = vmatmul.bf16.gmra.mxu2 %v5531_v27 }
 0x27d   : > { %2837 = vmatmul.bf16.gmra.mxu3 %v5533_v28 }
 0x27f   : > { %v2433_v57 = vpop.f32.mrf.mxu2  ;;  %v2257_v8 = vpop.f32.mrf.mxu0 }
 0x280   : > { %v2434_v63 = vadd.f32 %v2433_v57, %v2345_v16  ;;  %v2522_v23 = vpop.f32.mrf.mxu3  ;;  %v2258_v25 = vadd.f32 %v2257_v8, %v5942_v5  ;;  %v2346_v26 = vpop.f32.mrf.mxu1  ;;  %v7022_v57 = vld [vmem:[#allocation13_spill] sm:$0xff] }
 0x281   : > { %v4905_v8 = vld [vmem:[#allocation5 + $0x244] sm:$0xf] }
 0x282   : > { %v6291_v27 = vadd.f32 %v2522_v23, %v2434_v63  ;;  %v2347_v28 = vadd.f32 %v2346_v26, %v2258_v25  ;;  %v4937_v63 = vld [vmem:[#allocation5 + $0x344] sm:$0xf]  ;;  %v4609_v23 = vld [vmem:[#allocation5 + $0x348] sm:$0xf0] }
 0x283   : > { %v4612_v25 = vor.u32 %v4937_v63, %v4609_v23  ;;  %v4481_v26 = vld [vmem:[#allocation5 + $0x248] sm:$0xf0] }
 0x284   : > { %v4484_v61 = vor.u32 %v4905_v8, %v4481_v26 }
 0x285   : > { %3089 = vmatpush.bf16.msrb.mxu2 %v4612_v25  ;;  %v7034_v25 = vld [vmem:[#allocation91_spill] sm:$0xff] }
 0x286   : > { %2911 = vmatpush.bf16.msrb.mxu0 %v4484_v61 }
 0x287   : > { %v2435_v9 = vpop.f32.mrf.mxu2  ;;  %v2260_v10 = vpop.f32.mrf.mxu0 }
 0x288   : > { %v2436_v45 = vadd.f32 %v2435_v9, %v2347_v28  ;;  %v2524_v29 = vpop.f32.mrf.mxu3  ;;  %v2261_v60 = vadd.f32 %v2260_v10, %v5949_v12  ;;  %v2349_v6 = vpop.f32.mrf.mxu1  ;;  %v4953_v28 = vld [vmem:[#allocation5 + $0x3c4] sm:$0xf] }
 0x289   : > { %v4676_v17 = vor.u32 %v4953_v28, %v4673_v32  ;;  %v7026_v10 = vld [vmem:[#allocation85_spill] sm:$0xff] }
 0x28a   : > { %v6294_v48 = vadd.f32 %v2524_v29, %v2436_v45  ;;  %v2350_v5 = vadd.f32 %v2349_v6, %v2261_v60  ;;  %2575 = vmatmul.bf16.gmra.mxu0 %v5547_v50 }
 0x28b   : > { %2664 = vmatmul.bf16.gmra.mxu1 %v5549_v51  ;;  %3178 = vmatpush.bf16.msrb.mxu3 %v4676_v17 }
 0x28c   : > { %7019 = vst [vmem:[#allocation127_spill] sm:$0xff] %v6294_v48  ;;  %2753 = vmatmul.bf16.gmra.mxu2 %v5551_v55  ;;  %v7100_v48 = vld [vmem:[#allocation77_spill] sm:$0xff] }
 0x28d   : > { %2842 = vmatmul.bf16.gmra.mxu3 %v5553_v56 }
 0x28f   : > { %v2438_v13 = vpop.f32.mrf.mxu2  ;;  %v2262_v16 = vpop.f32.mrf.mxu0 }
 0x290   : > { %v2439_v14 = vadd.f32 %v2438_v13, %v2350_v5  ;;  %v2527_v52 = vpop.f32.mrf.mxu3  ;;  %v2263_v49 = vadd.f32 %v2262_v16, %v5968_v36  ;;  %v2351_v54 = vpop.f32.mrf.mxu1  ;;  %v7025_v36 = vld [vmem:[#allocation16_spill] sm:$0xff] }
 0x292   : > { %v6301_v12 = vadd.f32 %v2527_v52, %v2439_v14  ;;  %v2352_v2 = vadd.f32 %v2351_v54, %v2263_v49  ;;  %v4921_v14 = vld [vmem:[#allocation5 + $0x2c4] sm:$0xf]  ;;  %v4545_v52 = vld [vmem:[#allocation5 + $0x2c8] sm:$0xf0] }
 0x293   : > { %v4548_v16 = vor.u32 %v4921_v14, %v4545_v52  ;;  %v7038_v14 = vld [vmem:[#allocation21_spill] sm:$0xff]  ;;  %v7039_v52 = vld [vmem:[#allocation22_spill] sm:$0xff] }
 0x294   : > { %7020 = vst [vmem:[#allocation128_spill] sm:$0xff] %v6301_v12 }
 0x295   : > { %3000 = vmatpush.bf16.msrb.mxu1 %v4548_v16  ;;  %v7040_v16 = vld [vmem:[#allocation23_spill] sm:$0xff] }
 0x297   : > { %v2440_v46 = vpop.f32.mrf.mxu2  ;;  %v2265_v50 = vpop.f32.mrf.mxu0 }
 0x298   : > { %v2441_v11 = vadd.f32 %v2440_v46, %v2352_v2  ;;  %v2529_v58 = vpop.f32.mrf.mxu3  ;;  %v2266_v51 = vadd.f32 %v2265_v50, %v5975_v22  ;;  %v2354_v47 = vpop.f32.mrf.mxu1 }
 0x29a   : > { %v6304_v55 = vadd.f32 %v2529_v58, %v2441_v11  ;;  %v2355_v56 = vadd.f32 %v2354_v47, %v2266_v51  ;;  %2580 = vmatmul.bf16.gmra.mxu0 %v7022_v57  ;;  %v7028_v11 = vld [vmem:[#allocation86_spill] sm:$0xff] }
 0x29b   : > { %2669 = vmatmul.bf16.gmra.mxu1 %v7023_v24  ;;  %v7031_v57 = vld [vmem:[#allocation18_spill] sm:$0xff]  ;;  %v7032_v24 = vld [vmem:[#allocation19_spill] sm:$0xff] }
 0x29c   : > { %7021 = vst [vmem:[#allocation129_spill] sm:$0xff] %v6304_v55  ;;  %2758 = vmatmul.bf16.gmra.mxu2 %v7024_v7  ;;  %v7033_v7 = vld [vmem:[#allocation20_spill] sm:$0xff]  ;;  %v7094_v55 = vld [vmem:[#allocation73_spill] sm:$0xff] }
 0x29d   : > { %2847 = vmatmul.bf16.gmra.mxu3 %v7025_v36 }
 0x29f   : > { %v2443_v22 = vpop.f32.mrf.mxu2  ;;  %v2267_v29 = vpop.f32.mrf.mxu0 }
 0x2a0   : > { %v2444_v9 = vadd.f32 %v2443_v22, %v2355_v56  ;;  %v2532_v45 = vpop.f32.mrf.mxu3  ;;  %v2268_v60 = vadd.f32 %v2267_v29, %v7026_v10  ;;  %v2356_v6 = vpop.f32.mrf.mxu1  ;;  %v7030_v56 = vld [vmem:[#allocation17_spill] sm:$0xff]  ;;  %v7036_v29 = vld [vmem:[#allocation92_spill] sm:$0xff] }
 0x2a2   : > { %v6311_v5 = vadd.f32 %v2532_v45, %v2444_v9  ;;  %v2357_v13 = vadd.f32 %v2356_v6, %v2268_v60 }
 0x2a4   : > { %7027 = vst [vmem:[#allocation13_spill] sm:$0xff] %v6311_v5 }
 0x2a7   : > { %v2445_v49 = vpop.f32.mrf.mxu2  ;;  %v2270_v46 = vpop.f32.mrf.mxu0 }
 0x2a8   : > { %v2446_v54 = vadd.f32 %v2445_v49, %v2357_v13  ;;  %v2534_v2 = vpop.f32.mrf.mxu3  ;;  %v2271_v58 = vadd.f32 %v2270_v46, %v7028_v11  ;;  %v2359_v50 = vpop.f32.mrf.mxu1  ;;  %v7041_v49 = vld [vmem:[#allocation24_spill] sm:$0xff]  ;;  %v4903_v46 = vld [vmem:[#allocation5 + $0x234] sm:$0xf] }
 0x2aa   : > { %v6314_v51 = vadd.f32 %v2534_v2, %v2446_v54  ;;  %v2360_v47 = vadd.f32 %v2359_v50, %v2271_v58  ;;  %2585 = vmatmul.bf16.gmra.mxu0 %v7030_v56  ;;  %v4935_v54 = vld [vmem:[#allocation5 + $0x334] sm:$0xf]  ;;  %v4601_v2 = vld [vmem:[#allocation5 + $0x338] sm:$0xf0] }
 0x2ab   : > { %2674 = vmatmul.bf16.gmra.mxu1 %v7031_v57  ;;  %v4604_v11 = vor.u32 %v4935_v54, %v4601_v2  ;;  %v4473_v58 = vld [vmem:[#allocation5 + $0x238] sm:$0xf0]  ;;  %v4951_v50 = vld [vmem:[#allocation5 + $0x3b4] sm:$0xf] }
 0x2ac   : > { %7029 = vst [vmem:[#allocation14_spill] sm:$0xff] %v6314_v51  ;;  %2763 = vmatmul.bf16.gmra.mxu2 %v7032_v24  ;;  %v4476_v57 = vor.u32 %v4903_v46, %v4473_v58  ;;  %v7090_v51 = vld [vmem:[#allocation69_spill] sm:$0xff] }
 0x2ad   : > { %2852 = vmatmul.bf16.gmra.mxu3 %v7033_v7  ;;  %3090 = vmatpush.bf16.msrb.mxu2 %v4604_v11 }
 0x2ae   : > { %2912 = vmatpush.bf16.msrb.mxu0 %v4476_v57 }
 0x2af   : > { %v2448_v36 = vpop.f32.mrf.mxu2  ;;  %v2272_v8 = vpop.f32.mrf.mxu0 }
 0x2b0   : > { %v2449_v63 = vadd.f32 %v2448_v36, %v2360_v47  ;;  %v2537_v23 = vpop.f32.mrf.mxu3  ;;  %v2273_v26 = vadd.f32 %v2272_v8, %v7034_v25  ;;  %v2361_v28 = vpop.f32.mrf.mxu1  ;;  %v4665_v47 = vld [vmem:[#allocation5 + $0x3b8] sm:$0xf0] }
 0x2b1   : > { %v4668_v24 = vor.u32 %v4951_v50, %v4665_v47 }
 0x2b2   : > { %v6321_v32 = vadd.f32 %v2537_v23, %v2449_v63  ;;  %v2362_v22 = vadd.f32 %v2361_v28, %v2273_v26  ;;  %v4919_v26 = vld [vmem:[#allocation5 + $0x2b4] sm:$0xf]  ;;  %v4537_v28 = vld [vmem:[#allocation5 + $0x2b8] sm:$0xf0] }
 0x2b3   : > { %3179 = vmatpush.bf16.msrb.mxu3 %v4668_v24 }
 0x2b4   : > { %7035 = vst [vmem:[#allocation15_spill] sm:$0xff] %v6321_v32 }
 0x2b7   : > { %v2450_v61 = vpop.f32.mrf.mxu2  ;;  %v2275_v45 = vpop.f32.mrf.mxu0 }
 0x2b8   : > { %v2451_v17 = vadd.f32 %v2450_v61, %v2362_v22  ;;  %v2539_v9 = vpop.f32.mrf.mxu3  ;;  %v2276_v10 = vadd.f32 %v2275_v45, %v7036_v29  ;;  %v2364_v60 = vpop.f32.mrf.mxu1  ;;  %v4540_v61 = vor.u32 %v4919_v26, %v4537_v28 }
 0x2ba   : > { %v6324_v6 = vadd.f32 %v2539_v9, %v2451_v17  ;;  %v2365_v13 = vadd.f32 %v2364_v60, %v2276_v10  ;;  %2590 = vmatmul.bf16.gmra.mxu0 %v7038_v14  ;;  %3001 = vmatpush.bf16.msrb.mxu1 %v4540_v61  ;;  %v7044_v14 = vld [vmem:[#allocation25_spill] sm:$0xff]  ;;  %v7052_v61 = vld [vmem:[#allocation31_spill] sm:$0xff] }
 0x2bb   : > { %2679 = vmatmul.bf16.gmra.mxu1 %v7039_v52  ;;  %v7045_v52 = vld [vmem:[#allocation26_spill] sm:$0xff] }
 0x2bc   : > { %7037 = vst [vmem:[#allocation16_spill] sm:$0xff] %v6324_v6  ;;  %2768 = vmatmul.bf16.gmra.mxu2 %v7040_v16  ;;  %v7046_v16 = vld [vmem:[#allocation27_spill] sm:$0xff]  ;;  %v7086_v6 = vld [vmem:[#allocation65_spill] sm:$0xff] }
 0x2bd   : > { %2857 = vmatmul.bf16.gmra.mxu3 %v7041_v49  ;;  %v7047_v49 = vld [vmem:[#allocation28_spill] sm:$0xff] }
 0x2bf   : > { %v2453_v56 = vpop.f32.mrf.mxu2  ;;  %v2277_v63 = vpop.f32.mrf.mxu0 }
 0x2c0   : > { %v2454_v7 = vadd.f32 %v2453_v56, %v2365_v13  ;;  %v2542_v36 = vpop.f32.mrf.mxu3  ;;  %v2278_v23 = vadd.f32 %v2277_v63, %v6046_v3  ;;  %v2366_v8 = vpop.f32.mrf.mxu1  ;;  %v5164_v56 = vld [vmem:[#allocation7] sm:$0x3] }
 0x2c1   : > { %v6343_v57 = vperm.slane %v5164_v56, 1  ;;  %v4529_v56 = vld [vmem:[#allocation5 + $0x2a8] sm:$0xf0] }
 0x2c2   : > { %v6331_v25 = vadd.f32 %v2542_v36, %v2454_v7  ;;  %v2367_v22 = vadd.f32 %v2366_v8, %v2278_v23 }
 0x2c4   : > { %7042 = vst [vmem:[#allocation85_spill] sm:$0xff] %v6331_v25 }
 0x2c7   : > { %v2455_v17 = vpop.f32.mrf.mxu2  ;;  %v2280_v29 = vpop.f32.mrf.mxu0 }
 0x2c8   : > { %v2456_v9 = vadd.f32 %v2455_v17, %v2367_v22  ;;  %v2544_v45 = vpop.f32.mrf.mxu3  ;;  %v2281_v10 = vadd.f32 %v2280_v29, %v6053_v21  ;;  %v2369_v60 = vpop.f32.mrf.mxu1  ;;  %v7050_v22 = vld [vmem:[#allocation29_spill] sm:$0xff]  ;;  %v7053_v17 = vld [vmem:[#allocation32_spill] sm:$0xff] }
 0x2c9   : > { %v4901_v29 = vld [vmem:[#allocation5 + $0x224] sm:$0xf] }
 0x2ca   : > { %v6334_v13 = vadd.f32 %v2544_v45, %v2456_v9  ;;  %v2370_v3 = vadd.f32 %v2369_v60, %v2281_v10  ;;  %2595 = vmatmul.bf16.gmra.mxu0 %v7044_v14  ;;  %v4933_v9 = vld [vmem:[#allocation5 + $0x324] sm:$0xf]  ;;  %v4593_v45 = vld [vmem:[#allocation5 + $0x328] sm:$0xf0] }
 0x2cb   : > { %2684 = vmatmul.bf16.gmra.mxu1 %v7045_v52  ;;  %v4596_v10 = vor.u32 %v4933_v9, %v4593_v45  ;;  %v4465_v60 = vld [vmem:[#allocation5 + $0x228] sm:$0xf0]  ;;  %v7056_v45 = vld [vmem:[#allocation35_spill] sm:$0xff] }
 0x2cc   : > { %7043 = vst [vmem:[#allocation86_spill] sm:$0xff] %v6334_v13  ;;  %2773 = vmatmul.bf16.gmra.mxu2 %v7046_v16  ;;  %v4657_v14 = vld [vmem:[#allocation5 + $0x3a8] sm:$0xf0]  ;;  %v4468_v16 = vor.u32 %v4901_v29, %v4465_v60  ;;  %v7057_v29 = vld [vmem:[#allocation36_spill] sm:$0xff]  ;;  %v7082_v13 = vld [vmem:[#allocation61_spill] sm:$0xff] }
 0x2cd   : > { %2862 = vmatmul.bf16.gmra.mxu3 %v7047_v49  ;;  %3091 = vmatpush.bf16.msrb.mxu2 %v4596_v10  ;;  %v7055_v9 = vld [vmem:[#allocation34_spill] sm:$0xff] }
 0x2ce   : > { %2913 = vmatpush.bf16.msrb.mxu0 %v4468_v16 }
 0x2cf   : > { %v2458_v54 = vpop.f32.mrf.mxu2  ;;  %v2282_v11 = vpop.f32.mrf.mxu0 }
 0x2d0   : > { %v2459_v2 = vadd.f32 %v2458_v54, %v2370_v3  ;;  %v2547_v46 = vpop.f32.mrf.mxu3  ;;  %v2283_v58 = vadd.f32 %v2282_v11, %v6072_v34  ;;  %v2371_v50 = vpop.f32.mrf.mxu1  ;;  %v7051_v34 = vld [vmem:[#allocation30_spill] sm:$0xff]  ;;  %v4949_v3 = vld [vmem:[#allocation5 + $0x3a4] sm:$0xf] }
 0x2d1   : > { %v4660_v49 = vor.u32 %v4949_v3, %v4657_v14 }
 0x2d2   : > { %v6341_v21 = vadd.f32 %v2547_v46, %v2459_v2  ;;  %v2372_v47 = vadd.f32 %v2371_v50, %v2283_v58 }
 0x2d3   : > { %3180 = vmatpush.bf16.msrb.mxu3 %v4660_v49 }
 0x2d4   : > { %7048 = vst [vmem:[#allocation17_spill] sm:$0xff] %v6341_v21 }
 0x2d7   : > { %v2460_v24 = vpop.f32.mrf.mxu2  ;;  %v2561_v63 = vpop.f32.mrf.mxu0 }
 0x2d8   : > { %v2461_v7 = vadd.f32 %v2460_v24, %v2372_v47  ;;  %v2549_v36 = vpop.f32.mrf.mxu3  ;;  %v2562_v23 = vadd.f32 %v2561_v63, %v6343_v57  ;;  %v2650_v8 = vpop.f32.mrf.mxu1  ;;  %v4917_v47 = vld [vmem:[#allocation5 + $0x2a4] sm:$0xf] }
 0x2da   : > { %v6346_v26 = vadd.f32 %v2549_v36, %v2461_v7  ;;  %v2651_v28 = vadd.f32 %v2650_v8, %v2562_v23  ;;  %2600 = vmatmul.bf16.gmra.mxu0 %v7050_v22  ;;  %v4532_v7 = vor.u32 %v4917_v47, %v4529_v56 }
 0x2db   : > { %2689 = vmatmul.bf16.gmra.mxu1 %v7051_v34 }
 0x2dc   : > { %7049 = vst [vmem:[#allocation18_spill] sm:$0xff] %v6346_v26  ;;  %2778 = vmatmul.bf16.gmra.mxu2 %v7052_v61  ;;  %3002 = vmatpush.bf16.msrb.mxu1 %v4532_v7  ;;  %v7078_v26 = vld [vmem:[#allocation57_spill] sm:$0xff] }
 0x2dd   : > { %2867 = vmatmul.bf16.gmra.mxu3 %v7053_v17  ;;  %v7054_v17 = vld [vmem:[#allocation33_spill] sm:$0xff] }
 0x2df   : > { %v2739_v52 = vpop.f32.mrf.mxu2  ;;  %v2563_v46 = vpop.f32.mrf.mxu0 }
 0x2e0   : > { %v2740_v54 = vadd.f32 %v2739_v52, %v2651_v28  ;;  %v2828_v2 = vpop.f32.mrf.mxu3  ;;  %v2564_v11 = vadd.f32 %v2563_v46, %v6343_v57  ;;  %v2652_v58 = vpop.f32.mrf.mxu1 }
 0x2e2   : > { %v6353_v50 = vadd.f32 %v2828_v2, %v2740_v54  ;;  %v2653_v24 = vadd.f32 %v2652_v58, %v2564_v11 }
 0x2e7   : > { %v2741_v36 = vpop.f32.mrf.mxu2  ;;  %v2566_v8 = vpop.f32.mrf.mxu0 }
 0x2e8   : > { %v2742_v63 = vadd.f32 %v2741_v36, %v2653_v24  ;;  %v2830_v23 = vpop.f32.mrf.mxu3  ;;  %v2567_v28 = vadd.f32 %v2566_v8, %v6343_v57  ;;  %v2655_v22 = vpop.f32.mrf.mxu1  ;;  %v7058_v36 = vld [vmem:[#allocation37_spill] sm:$0xff]  ;;  %v7061_v8 = vld [vmem:[#allocation40_spill] sm:$0xff] }
 0x2ea   : > { %v6356_v34 = vadd.f32 %v2830_v23, %v2742_v63  ;;  %v2656_v61 = vadd.f32 %v2655_v22, %v2567_v28  ;;  %2605 = vmatmul.bf16.gmra.mxu0 %v7054_v17  ;;  %v7059_v63 = vld [vmem:[#allocation38_spill] sm:$0xff]  ;;  %v7060_v23 = vld [vmem:[#allocation39_spill] sm:$0xff]  ;;  %v4585_v22 = vld [vmem:[#allocation5 + $0x318] sm:$0xf0] }
 0x2eb   : > { %2694 = vmatmul.bf16.gmra.mxu1 %v7055_v9  ;;  %v4931_v28 = vld [vmem:[#allocation5 + $0x314] sm:$0xf]  ;;  %v4457_v9 = vld [vmem:[#allocation5 + $0x218] sm:$0xf0] }
 0x2ec   : > { %2783 = vmatmul.bf16.gmra.mxu2 %v7056_v45  ;;  %v4588_v17 = vor.u32 %v4931_v28, %v4585_v22  ;;  %v4947_v45 = vld [vmem:[#allocation5 + $0x394] sm:$0xf] }
 0x2ed   : > { %2872 = vmatmul.bf16.gmra.mxu3 %v7057_v29  ;;  %v4649_v29 = vld [vmem:[#allocation5 + $0x398] sm:$0xf0] }
 0x2ee   : > { %3092 = vmatpush.bf16.msrb.mxu2 %v4588_v17  ;;  %v7062_v17 = vld [vmem:[#allocation41_spill] sm:$0xff] }
 0x2ef   : > { %v2744_v10 = vpop.f32.mrf.mxu2  ;;  %v2568_v14 = vpop.f32.mrf.mxu0 }
 0x2f0   : > { %v2745_v60 = vadd.f32 %v2744_v10, %v2656_v61  ;;  %v2833_v3 = vpop.f32.mrf.mxu3  ;;  %v2569_v52 = vadd.f32 %v2568_v14, %v6343_v57  ;;  %v2657_v16 = vpop.f32.mrf.mxu1  ;;  %v4899_v61 = vld [vmem:[#allocation5 + $0x214] sm:$0xf] }
 0x2f2   : > { %v6363_v49 = vadd.f32 %v2833_v3, %v2745_v60  ;;  %v2658_v54 = vadd.f32 %v2657_v16, %v2569_v52  ;;  %v4460_v60 = vor.u32 %v4899_v61, %v4457_v9  ;;  %v4652_v3 = vor.u32 %v4947_v45, %v4649_v29  ;;  %v7063_v9 = vld [vmem:[#allocation42_spill] sm:$0xff]  ;;  %v7064_v45 = vld [vmem:[#allocation43_spill] sm:$0xff]  ;;  %v7065_v29 = vld [vmem:[#allocation44_spill] sm:$0xff] }
 0x2f4   : > { %2914 = vmatpush.bf16.msrb.mxu0 %v4460_v60  ;;  %3181 = vmatpush.bf16.msrb.mxu3 %v4652_v3 }
 0x2f7   : > { %v2746_v2 = vpop.f32.mrf.mxu2  ;;  %v2571_v58 = vpop.f32.mrf.mxu0 }
 0x2f8   : > { %v2747_v46 = vadd.f32 %v2746_v2, %v2658_v54  ;;  %v2835_v11 = vpop.f32.mrf.mxu3  ;;  %v2572_v47 = vadd.f32 %v2571_v58, %v6343_v57  ;;  %v2660_v56 = vpop.f32.mrf.mxu1  ;;  %v4521_v58 = vld [vmem:[#allocation5 + $0x298] sm:$0xf0] }
 0x2fa   : > { %v6366_v24 = vadd.f32 %v2835_v11, %v2747_v46  ;;  %v2661_v7 = vadd.f32 %v2660_v56, %v2572_v47  ;;  %2610 = vmatmul.bf16.gmra.mxu0 %v7058_v36  ;;  %v4915_v11 = vld [vmem:[#allocation5 + $0x294] sm:$0xf] }
 0x2fb   : > { %2699 = vmatmul.bf16.gmra.mxu1 %v7059_v63  ;;  %v4524_v56 = vor.u32 %v4915_v11, %v4521_v58 }
 0x2fc   : > { %2788 = vmatmul.bf16.gmra.mxu2 %v7060_v23 }
 0x2fd   : > { %2877 = vmatmul.bf16.gmra.mxu3 %v7061_v8  ;;  %3003 = vmatpush.bf16.msrb.mxu1 %v4524_v56 }
 0x2ff   : > { %v2749_v10 = vpop.f32.mrf.mxu2  ;;  %v2573_v16 = vpop.f32.mrf.mxu0 }
 0x300   : > { %v2750_v14 = vadd.f32 %v2749_v10, %v2661_v7  ;;  %v2838_v52 = vpop.f32.mrf.mxu3  ;;  %v2574_v54 = vadd.f32 %v2573_v16, %v6343_v57  ;;  %v2662_v2 = vpop.f32.mrf.mxu1 }
 0x302   : > { %v6373_v46 = vadd.f32 %v2838_v52, %v2750_v14  ;;  %v2663_v47 = vadd.f32 %v2662_v2, %v2574_v54 }
 0x307   : > { %v2751_v36 = vpop.f32.mrf.mxu2  ;;  %v2576_v8 = vpop.f32.mrf.mxu0 }
 0x308   : > { %v2752_v63 = vadd.f32 %v2751_v36, %v2663_v47  ;;  %v2840_v23 = vpop.f32.mrf.mxu3  ;;  %v2577_v7 = vadd.f32 %v2576_v8, %v6343_v57  ;;  %v2665_v28 = vpop.f32.mrf.mxu1 }
 0x30a   : > { %v6376_v22 = vadd.f32 %v2840_v23, %v2752_v63  ;;  %v2666_v61 = vadd.f32 %v2665_v28, %v2577_v7  ;;  %2615 = vmatmul.bf16.gmra.mxu0 %v7062_v17  ;;  %v7066_v7 = vld [vmem:[#allocation45_spill] sm:$0xff]  ;;  %v7067_v28 = vld [vmem:[#allocation46_spill] sm:$0xff]  ;;  %v7069_v17 = vld [vmem:[#allocation48_spill] sm:$0xff] }
 0x30b   : > { %2704 = vmatmul.bf16.gmra.mxu1 %v7063_v9  ;;  %v4929_v9 = vld [vmem:[#allocation5 + $0x304] sm:$0xf] }
 0x30c   : > { %2793 = vmatmul.bf16.gmra.mxu2 %v7064_v45  ;;  %v4577_v45 = vld [vmem:[#allocation5 + $0x308] sm:$0xf0] }
 0x30d   : > { %2882 = vmatmul.bf16.gmra.mxu3 %v7065_v29  ;;  %v4897_v29 = vld [vmem:[#allocation5 + $0x204] sm:$0xf] }
 0x30f   : > { %v2754_v10 = vpop.f32.mrf.mxu2  ;;  %v2578_v14 = vpop.f32.mrf.mxu0 }
 0x310   : > { %v2755_v60 = vadd.f32 %v2754_v10, %v2666_v61  ;;  %v2843_v3 = vpop.f32.mrf.mxu3  ;;  %v2579_v52 = vadd.f32 %v2578_v14, %v6343_v57  ;;  %v2667_v16 = vpop.f32.mrf.mxu1  ;;  %v7068_v61 = vld [vmem:[#allocation47_spill] sm:$0xff]  ;;  %v4580_v10 = vor.u32 %v4929_v9, %v4577_v45  ;;  %v4641_v14 = vld [vmem:[#allocation5 + $0x388] sm:$0xf0] }
 0x312   : > { %v6383_v54 = vadd.f32 %v2843_v3, %v2755_v60  ;;  %v2668_v2 = vadd.f32 %v2667_v16, %v2579_v52  ;;  %v4449_v60 = vld [vmem:[#allocation5 + $0x208] sm:$0xf0]  ;;  %v4945_v3 = vld [vmem:[#allocation5 + $0x384] sm:$0xf]  ;;  %3093 = vmatpush.bf16.msrb.mxu2 %v4580_v10 }
 0x313   : > { %v4452_v16 = vor.u32 %v4897_v29, %v4449_v60 }
 0x315   : > { %2915 = vmatpush.bf16.msrb.mxu0 %v4452_v16  ;;  %v7071_v16 = vld [vmem:[#allocation50_spill] sm:$0xff] }
 0x317   : > { %v2756_v11 = vpop.f32.mrf.mxu2  ;;  %v2581_v56 = vpop.f32.mrf.mxu0 }
 0x318   : > { %v2757_v58 = vadd.f32 %v2756_v11, %v2668_v2  ;;  %v2845_v47 = vpop.f32.mrf.mxu3  ;;  %v2582_v36 = vadd.f32 %v2581_v56, %v6343_v57  ;;  %v2670_v63 = vpop.f32.mrf.mxu1  ;;  %v4644_v2 = vor.u32 %v4945_v3, %v4641_v14 }
 0x31a   : > { %v6386_v23 = vadd.f32 %v2845_v47, %v2757_v58  ;;  %v2671_v8 = vadd.f32 %v2670_v63, %v2582_v36  ;;  %2620 = vmatmul.bf16.gmra.mxu0 %v7066_v7  ;;  %3182 = vmatpush.bf16.msrb.mxu3 %v4644_v2  ;;  %v4913_v7 = vld [vmem:[#allocation5 + $0x284] sm:$0xf]  ;;  %v7072_v2 = vld [vmem:[#allocation51_spill] sm:$0xff] }
 0x31b   : > { %2709 = vmatmul.bf16.gmra.mxu1 %v7067_v28  ;;  %v4513_v28 = vld [vmem:[#allocation5 + $0x288] sm:$0xf0] }
 0x31c   : > { %2798 = vmatmul.bf16.gmra.mxu2 %v7068_v61 }
 0x31d   : > { %2887 = vmatmul.bf16.gmra.mxu3 %v7069_v17  ;;  %v4516_v17 = vor.u32 %v4913_v7, %v4513_v28 }
 0x31f   : > { %v2759_v52 = vpop.f32.mrf.mxu2  ;;  %v2583_v47 = vpop.f32.mrf.mxu0  ;;  %3004 = vmatpush.bf16.msrb.mxu1 %v4516_v17 }
 0x320   : > { %v2760_v11 = vadd.f32 %v2759_v52, %v2671_v8  ;;  %v2848_v58 = vpop.f32.mrf.mxu3  ;;  %v2584_v56 = vadd.f32 %v2583_v47, %v6343_v57  ;;  %v2672_v36 = vpop.f32.mrf.mxu1  ;;  %v7070_v52 = vld [vmem:[#allocation49_spill] sm:$0xff] }
 0x322   : > { %v6393_v63 = vadd.f32 %v2848_v58, %v2760_v11  ;;  %v2673_v61 = vadd.f32 %v2672_v36, %v2584_v56  ;;  %v7073_v11 = vld [vmem:[#allocation52_spill] sm:$0xff] }
 0x327   : > { %v2761_v9 = vpop.f32.mrf.mxu2  ;;  %v2586_v60 = vpop.f32.mrf.mxu0 }
 0x328   : > { %v2762_v45 = vadd.f32 %v2761_v9, %v2673_v61  ;;  %v2850_v29 = vpop.f32.mrf.mxu3  ;;  %v2587_v8 = vadd.f32 %v2586_v60, %v6343_v57  ;;  %v2675_v3 = vpop.f32.mrf.mxu1 }
 0x32a   : > { %v6396_v10 = vadd.f32 %v2850_v29, %v2762_v45  ;;  %v2676_v14 = vadd.f32 %v2675_v3, %v2587_v8  ;;  %2625 = vmatmul.bf16.gmra.mxu0 %v7070_v52 }
 0x32b   : > { %2714 = vmatmul.bf16.gmra.mxu1 %v7071_v16 }
 0x32c   : > { %2803 = vmatmul.bf16.gmra.mxu2 %v7072_v2  ;;  %v7074_v2 = vld [vmem:[#allocation53_spill] sm:$0xff] }
 0x32d   : > { %2892 = vmatmul.bf16.gmra.mxu3 %v7073_v11  ;;  %v7076_v11 = vld [vmem:[#allocation55_spill] sm:$0xff] }
 0x32f   : > { %v2764_v58 = vpop.f32.mrf.mxu2  ;;  %v2588_v36 = vpop.f32.mrf.mxu0 }
 0x330   : > { %v2765_v47 = vadd.f32 %v2764_v58, %v2676_v14  ;;  %v2853_v56 = vpop.f32.mrf.mxu3  ;;  %v2589_v7 = vadd.f32 %v2588_v36, %v6343_v57  ;;  %v2677_v28 = vpop.f32.mrf.mxu1  ;;  %v7075_v14 = vld [vmem:[#allocation54_spill] sm:$0xff]  ;;  %v7077_v58 = vld [vmem:[#allocation56_spill] sm:$0xff] }
 0x332   : > { %v6403_v61 = vadd.f32 %v2853_v56, %v2765_v47  ;;  %v2678_v17 = vadd.f32 %v2677_v28, %v2589_v7 }
 0x337   : > { %v2766_v9 = vpop.f32.mrf.mxu2  ;;  %v2591_v60 = vpop.f32.mrf.mxu0 }
 0x338   : > { %v2767_v45 = vadd.f32 %v2766_v9, %v2678_v17  ;;  %v2855_v29 = vpop.f32.mrf.mxu3  ;;  %v2592_v8 = vadd.f32 %v2591_v60, %v6343_v57  ;;  %v2680_v3 = vpop.f32.mrf.mxu1 }
 0x33a   : > { %v6406_v52 = vadd.f32 %v2855_v29, %v2767_v45  ;;  %v2681_v16 = vadd.f32 %v2680_v3, %v2592_v8  ;;  %2630 = vmatmul.bf16.gmra.mxu0 %v7074_v2 }
 0x33b   : > { %2719 = vmatmul.bf16.gmra.mxu1 %v7075_v14 }
 0x33c   : > { %2808 = vmatmul.bf16.gmra.mxu2 %v7076_v11 }
 0x33d   : > { %2897 = vmatmul.bf16.gmra.mxu3 %v7077_v58 }
 0x33f   : > { %v2769_v47 = vpop.f32.mrf.mxu2  ;;  %v2593_v7 = vpop.f32.mrf.mxu0 }
 0x340   : > { %v2770_v56 = vadd.f32 %v2769_v47, %v2681_v16  ;;  %v2858_v36 = vpop.f32.mrf.mxu3  ;;  %v2594_v28 = vadd.f32 %v2593_v7, %v6343_v57  ;;  %v2682_v17 = vpop.f32.mrf.mxu1  ;;  %v7079_v16 = vld [vmem:[#allocation58_spill] sm:$0xff]  ;;  %v7080_v47 = vld [vmem:[#allocation59_spill] sm:$0xff]  ;;  %v7081_v7 = vld [vmem:[#allocation60_spill] sm:$0xff] }
 0x342   : > { %v6413_v9 = vadd.f32 %v2858_v36, %v2770_v56  ;;  %v2683_v45 = vadd.f32 %v2682_v17, %v2594_v28 }
 0x347   : > { %v2771_v29 = vpop.f32.mrf.mxu2  ;;  %v2596_v3 = vpop.f32.mrf.mxu0 }
 0x348   : > { %v2772_v60 = vadd.f32 %v2771_v29, %v2683_v45  ;;  %v2860_v8 = vpop.f32.mrf.mxu3  ;;  %v2597_v2 = vadd.f32 %v2596_v3, %v6343_v57  ;;  %v2685_v14 = vpop.f32.mrf.mxu1 }
 0x34a   : > { %v6416_v11 = vadd.f32 %v2860_v8, %v2772_v60  ;;  %v2686_v58 = vadd.f32 %v2685_v14, %v2597_v2  ;;  %2635 = vmatmul.bf16.gmra.mxu0 %v7078_v26 }
 0x34b   : > { %2724 = vmatmul.bf16.gmra.mxu1 %v7079_v16 }
 0x34c   : > { %2813 = vmatmul.bf16.gmra.mxu2 %v7080_v47 }
 0x34d   : > { %2902 = vmatmul.bf16.gmra.mxu3 %v7081_v7 }
 0x34f   : > { %v2774_v56 = vpop.f32.mrf.mxu2  ;;  %v2598_v17 = vpop.f32.mrf.mxu0 }
 0x350   : > { %v2775_v36 = vadd.f32 %v2774_v56, %v2686_v58  ;;  %v2863_v28 = vpop.f32.mrf.mxu3  ;;  %v2599_v45 = vadd.f32 %v2598_v17, %v6343_v57  ;;  %v2687_v29 = vpop.f32.mrf.mxu1  ;;  %v7083_v58 = vld [vmem:[#allocation62_spill] sm:$0xff]  ;;  %v7084_v56 = vld [vmem:[#allocation63_spill] sm:$0xff]  ;;  %v7085_v17 = vld [vmem:[#allocation64_spill] sm:$0xff] }
 0x352   : > { %v6423_v3 = vadd.f32 %v2863_v28, %v2775_v36  ;;  %v2688_v60 = vadd.f32 %v2687_v29, %v2599_v45 }
 0x357   : > { %v2776_v8 = vpop.f32.mrf.mxu2  ;;  %v2601_v26 = vpop.f32.mrf.mxu0 }
 0x358   : > { %v2777_v2 = vadd.f32 %v2776_v8, %v2688_v60  ;;  %v2865_v14 = vpop.f32.mrf.mxu3  ;;  %v2602_v16 = vadd.f32 %v2601_v26, %v6343_v57  ;;  %v2690_v21 = vpop.f32.mrf.mxu1 }
 0x35a   : > { %v6426_v47 = vadd.f32 %v2865_v14, %v2777_v2  ;;  %v2691_v7 = vadd.f32 %v2690_v21, %v2602_v16  ;;  %2916 = vmatmul.bf16.vlgmr.msrb.gmra.mxu0 %v7082_v13 }
 0x35b   : > { %3005 = vmatmul.bf16.vlgmr.msrb.gmra.mxu1 %v7083_v58 }
 0x35c   : > { %3094 = vmatmul.bf16.vlgmr.msrb.gmra.mxu2 %v7084_v56 }
 0x35d   : > { %3183 = vmatmul.bf16.vlgmr.msrb.gmra.mxu3 %v7085_v17 }
 0x35f   : > { %v2779_v36 = vpop.f32.mrf.mxu2  ;;  %v2603_v29 = vpop.f32.mrf.mxu0 }
 0x360   : > { %v2780_v28 = vadd.f32 %v2779_v36, %v2691_v7  ;;  %v2868_v45 = vpop.f32.mrf.mxu3  ;;  %v2604_v60 = vadd.f32 %v2603_v29, %v6343_v57  ;;  %v2692_v8 = vpop.f32.mrf.mxu1  ;;  %v7087_v7 = vld [vmem:[#allocation66_spill] sm:$0xff]  ;;  %v7088_v36 = vld [vmem:[#allocation67_spill] sm:$0xff]  ;;  %v7089_v29 = vld [vmem:[#allocation68_spill] sm:$0xff] }
 0x362   : > { %v6433_v26 = vadd.f32 %v2868_v45, %v2780_v28  ;;  %v2693_v2 = vadd.f32 %v2692_v8, %v2604_v60 }
 0x367   : > { %v2781_v14 = vpop.f32.mrf.mxu2  ;;  %v2606_v13 = vpop.f32.mrf.mxu0 }
 0x368   : > { %v2782_v21 = vadd.f32 %v2781_v14, %v2693_v2  ;;  %v2870_v16 = vpop.f32.mrf.mxu3  ;;  %v2607_v58 = vadd.f32 %v2606_v13, %v6343_v57  ;;  %v2695_v25 = vpop.f32.mrf.mxu1 }
 0x36a   : > { %v6436_v56 = vadd.f32 %v2870_v16, %v2782_v21  ;;  %v2696_v17 = vadd.f32 %v2695_v25, %v2607_v58  ;;  %2921 = vmatmul.bf16.gmra.mxu0 %v7086_v6 }
 0x36b   : > { %3010 = vmatmul.bf16.gmra.mxu1 %v7087_v7 }
 0x36c   : > { %3099 = vmatmul.bf16.gmra.mxu2 %v7088_v36 }
 0x36d   : > { %3188 = vmatmul.bf16.gmra.mxu3 %v7089_v29 }
 0x36f   : > { %v2784_v28 = vpop.f32.mrf.mxu2  ;;  %v2608_v8 = vpop.f32.mrf.mxu0 }
 0x370   : > { %v2785_v45 = vadd.f32 %v2784_v28, %v2696_v17  ;;  %v2873_v60 = vpop.f32.mrf.mxu3  ;;  %v2609_v2 = vadd.f32 %v2608_v8, %v6343_v57  ;;  %v2697_v14 = vpop.f32.mrf.mxu1  ;;  %v7091_v17 = vld [vmem:[#allocation70_spill] sm:$0xff]  ;;  %v7092_v28 = vld [vmem:[#allocation71_spill] sm:$0xff]  ;;  %v7093_v8 = vld [vmem:[#allocation72_spill] sm:$0xff] }
 0x372   : > { %v6443_v13 = vadd.f32 %v2873_v60, %v2785_v45  ;;  %v2698_v21 = vadd.f32 %v2697_v14, %v2609_v2 }
 0x377   : > { %v2786_v16 = vpop.f32.mrf.mxu2  ;;  %v2611_v6 = vpop.f32.mrf.mxu0 }
 0x378   : > { %v2787_v25 = vadd.f32 %v2786_v16, %v2698_v21  ;;  %v2875_v58 = vpop.f32.mrf.mxu3  ;;  %v2612_v7 = vadd.f32 %v2611_v6, %v6343_v57  ;;  %v2700_v32 = vpop.f32.mrf.mxu1 }
 0x37a   : > { %v6446_v36 = vadd.f32 %v2875_v58, %v2787_v25  ;;  %v2701_v29 = vadd.f32 %v2700_v32, %v2612_v7  ;;  %2926 = vmatmul.bf16.gmra.mxu0 %v7090_v51 }
 0x37b   : > { %3015 = vmatmul.bf16.gmra.mxu1 %v7091_v17 }
 0x37c   : > { %3104 = vmatmul.bf16.gmra.mxu2 %v7092_v28 }
 0x37d   : > { %3193 = vmatmul.bf16.gmra.mxu3 %v7093_v8 }
 0x37f   : > { %v2789_v45 = vpop.f32.mrf.mxu2  ;;  %v2613_v14 = vpop.f32.mrf.mxu0 }
 0x380   : > { %v2790_v60 = vadd.f32 %v2789_v45, %v2701_v29  ;;  %v2878_v2 = vpop.f32.mrf.mxu3  ;;  %v2614_v21 = vadd.f32 %v2613_v14, %v6343_v57  ;;  %v2702_v16 = vpop.f32.mrf.mxu1  ;;  %v7095_v29 = vld [vmem:[#allocation74_spill] sm:$0xff]  ;;  %v7096_v45 = vld [vmem:[#allocation75_spill] sm:$0xff]  ;;  %v7097_v14 = vld [vmem:[#allocation76_spill] sm:$0xff] }
 0x382   : > { %v6453_v6 = vadd.f32 %v2878_v2, %v2790_v60  ;;  %v2703_v25 = vadd.f32 %v2702_v16, %v2614_v21 }
 0x387   : > { %v2791_v58 = vpop.f32.mrf.mxu2  ;;  %v2616_v51 = vpop.f32.mrf.mxu0 }
 0x388   : > { %v2792_v32 = vadd.f32 %v2791_v58, %v2703_v25  ;;  %v2880_v7 = vpop.f32.mrf.mxu3  ;;  %v2617_v17 = vadd.f32 %v2616_v51, %v6343_v57  ;;  %v2705_v5 = vpop.f32.mrf.mxu1 }
 0x38a   : > { %v6456_v28 = vadd.f32 %v2880_v7, %v2792_v32  ;;  %v2706_v8 = vadd.f32 %v2705_v5, %v2617_v17  ;;  %2931 = vmatmul.bf16.gmra.mxu0 %v7094_v55 }
 0x38b   : > { %3020 = vmatmul.bf16.gmra.mxu1 %v7095_v29 }
 0x38c   : > { %3109 = vmatmul.bf16.gmra.mxu2 %v7096_v45 }
 0x38d   : > { %3198 = vmatmul.bf16.gmra.mxu3 %v7097_v14 }
 0x38f   : > { %v2794_v60 = vpop.f32.mrf.mxu2  ;;  %v2618_v16 = vpop.f32.mrf.mxu0 }
 0x390   : > { %v2795_v2 = vadd.f32 %v2794_v60, %v2706_v8  ;;  %v2883_v21 = vpop.f32.mrf.mxu3  ;;  %v2619_v25 = vadd.f32 %v2618_v16, %v6343_v57  ;;  %v2707_v58 = vpop.f32.mrf.mxu1  ;;  %v7101_v8 = vld [vmem:[#allocation78_spill] sm:$0xff]  ;;  %v7102_v60 = vld [vmem:[#allocation79_spill] sm:$0xff]  ;;  %v7103_v16 = vld [vmem:[#allocation80_spill] sm:$0xff] }
 0x392   : > { %v6463_v51 = vadd.f32 %v2883_v21, %v2795_v2  ;;  %v2708_v32 = vadd.f32 %v2707_v58, %v2619_v25 }
 0x394   : > { %7098 = vst [vmem:[#allocation19_spill] sm:$0xff] %v6463_v51  ;;  %v7106_v51 = vld [vmem:[#allocation81_spill] sm:$0xff] }
 0x397   : > { %v2796_v7 = vpop.f32.mrf.mxu2  ;;  %v2621_v55 = vpop.f32.mrf.mxu0 }
 0x398   : > { %v2797_v5 = vadd.f32 %v2796_v7, %v2708_v32  ;;  %v2885_v17 = vpop.f32.mrf.mxu3  ;;  %v2622_v29 = vadd.f32 %v2621_v55, %v6343_v57  ;;  %v2710_v12 = vpop.f32.mrf.mxu1 }
 0x39a   : > { %v6466_v45 = vadd.f32 %v2885_v17, %v2797_v5  ;;  %v2711_v14 = vadd.f32 %v2710_v12, %v2622_v29  ;;  %2936 = vmatmul.bf16.gmra.mxu0 %v7100_v48 }
 0x39b   : > { %3025 = vmatmul.bf16.gmra.mxu1 %v7101_v8 }
 0x39c   : > { %7099 = vst [vmem:[#allocation20_spill] sm:$0xff] %v6466_v45  ;;  %3114 = vmatmul.bf16.gmra.mxu2 %v7102_v60 }
 0x39d   : > { %3203 = vmatmul.bf16.gmra.mxu3 %v7103_v16 }
 0x39f   : > { %v2799_v2 = vpop.f32.mrf.mxu2  ;;  %v2623_v58 = vpop.f32.mrf.mxu0 }
 0x3a0   : > { %v2800_v21 = vadd.f32 %v2799_v2, %v2711_v14  ;;  %v2888_v25 = vpop.f32.mrf.mxu3  ;;  %v2624_v32 = vadd.f32 %v2623_v58, %v6343_v57  ;;  %v2712_v7 = vpop.f32.mrf.mxu1  ;;  %v7107_v14 = vld [vmem:[#allocation82_spill] sm:$0xff]  ;;  %v7108_v2 = vld [vmem:[#allocation83_spill] sm:$0xff]  ;;  %v7109_v58 = vld [vmem:[#allocation84_spill] sm:$0xff] }
 0x3a2   : > { %v6473_v55 = vadd.f32 %v2888_v25, %v2800_v21  ;;  %v2713_v5 = vadd.f32 %v2712_v7, %v2624_v32 }
 0x3a4   : > { %7104 = vst [vmem:[#allocation91_spill] sm:$0xff] %v6473_v55  ;;  %v7112_v55 = vld [vmem:[#allocation87_spill] sm:$0xff] }
 0x3a7   : > { %v2801_v17 = vpop.f32.mrf.mxu2  ;;  %v2626_v48 = vpop.f32.mrf.mxu0 }
 0x3a8   : > { %v2802_v12 = vadd.f32 %v2801_v17, %v2713_v5  ;;  %v2890_v29 = vpop.f32.mrf.mxu3  ;;  %v2627_v8 = vadd.f32 %v2626_v48, %v6343_v57  ;;  %v2715_v45 = vpop.f32.mrf.mxu1 }
 0x3aa   : > { %v6476_v60 = vadd.f32 %v2890_v29, %v2802_v12  ;;  %v2716_v16 = vadd.f32 %v2715_v45, %v2627_v8  ;;  %2941 = vmatmul.bf16.gmra.mxu0 %v7106_v51 }
 0x3ab   : > { %3030 = vmatmul.bf16.gmra.mxu1 %v7107_v14 }
 0x3ac   : > { %7105 = vst [vmem:[#allocation92_spill] sm:$0xff] %v6476_v60  ;;  %3119 = vmatmul.bf16.gmra.mxu2 %v7108_v2 }
 0x3ad   : > { %3208 = vmatmul.bf16.gmra.mxu3 %v7109_v58 }
 0x3af   : > { %v2804_v21 = vpop.f32.mrf.mxu2  ;;  %v2628_v7 = vpop.f32.mrf.mxu0 }
 0x3b0   : > { %v2805_v25 = vadd.f32 %v2804_v21, %v2716_v16  ;;  %v2893_v32 = vpop.f32.mrf.mxu3  ;;  %v2629_v5 = vadd.f32 %v2628_v7, %v6343_v57  ;;  %v2717_v17 = vpop.f32.mrf.mxu1  ;;  %v7113_v16 = vld [vmem:[#allocation88_spill] sm:$0xff]  ;;  %v7114_v21 = vld [vmem:[#allocation89_spill] sm:$0xff]  ;;  %v7115_v7 = vld [vmem:[#allocation90_spill] sm:$0xff] }
 0x3b2   : > { %v6483_v48 = vadd.f32 %v2893_v32, %v2805_v25  ;;  %v2718_v12 = vadd.f32 %v2717_v17, %v2629_v5 }
 0x3b4   : > { %7110 = vst [vmem:[#allocation21_spill] sm:$0xff] %v6483_v48  ;;  %v7117_v48 = vld [vmem:[#allocation93_spill] sm:$0xff] }
 0x3b7   : > { %v2806_v29 = vpop.f32.mrf.mxu2  ;;  %v2631_v51 = vpop.f32.mrf.mxu0 }
 0x3b8   : > { %v2807_v45 = vadd.f32 %v2806_v29, %v2718_v12  ;;  %v2895_v8 = vpop.f32.mrf.mxu3  ;;  %v2632_v14 = vadd.f32 %v2631_v51, %v6343_v57  ;;  %v2720_v60 = vpop.f32.mrf.mxu1 }
 0x3ba   : > { %v6486_v2 = vadd.f32 %v2895_v8, %v2807_v45  ;;  %v2721_v58 = vadd.f32 %v2720_v60, %v2632_v14  ;;  %2946 = vmatmul.bf16.gmra.mxu0 %v7112_v55 }
 0x3bb   : > { %3035 = vmatmul.bf16.gmra.mxu1 %v7113_v16 }
 0x3bc   : > { %7111 = vst [vmem:[#allocation22_spill] sm:$0xff] %v6486_v2  ;;  %3124 = vmatmul.bf16.gmra.mxu2 %v7114_v21 }
 0x3bd   : > { %3213 = vmatmul.bf16.gmra.mxu3 %v7115_v7 }
 0x3bf   : > { %v2809_v25 = vpop.f32.mrf.mxu2  ;;  %v2633_v17 = vpop.f32.mrf.mxu0 }
 0x3c0   : > { %v2810_v32 = vadd.f32 %v2809_v25, %v2721_v58  ;;  %v2898_v5 = vpop.f32.mrf.mxu3  ;;  %v2634_v12 = vadd.f32 %v2633_v17, %v6343_v57  ;;  %v2722_v29 = vpop.f32.mrf.mxu1  ;;  %v7118_v58 = vld [vmem:[#allocation94_spill] sm:$0xff]  ;;  %v7119_v25 = vld [vmem:[#allocation95_spill] sm:$0xff]  ;;  %v7120_v17 = vld [vmem:[#allocation96_spill] sm:$0xff] }
 0x3c2   : > { %v6493_v51 = vadd.f32 %v2898_v5, %v2810_v32  ;;  %v2723_v45 = vadd.f32 %v2722_v29, %v2634_v12 }
 0x3c7   : > { %v2811_v8 = vpop.f32.mrf.mxu2  ;;  %v2636_v55 = vpop.f32.mrf.mxu0 }
 0x3c8   : > { %v2812_v60 = vadd.f32 %v2811_v8, %v2723_v45  ;;  %v2900_v14 = vpop.f32.mrf.mxu3  ;;  %v2637_v16 = vadd.f32 %v2636_v55, %v6343_v57  ;;  %v2725_v2 = vpop.f32.mrf.mxu1 }
 0x3ca   : > { %v6496_v21 = vadd.f32 %v2900_v14, %v2812_v60  ;;  %v2726_v7 = vadd.f32 %v2725_v2, %v2637_v16  ;;  %2951 = vmatmul.bf16.gmra.mxu0 %v7117_v48 }
 0x3cb   : > { %3040 = vmatmul.bf16.gmra.mxu1 %v7118_v58 }
 0x3cc   : > { %7116 = vst [vmem:[#allocation23_spill] sm:$0xff] %v6496_v21  ;;  %3129 = vmatmul.bf16.gmra.mxu2 %v7119_v25 }
 0x3cd   : > { %3218 = vmatmul.bf16.gmra.mxu3 %v7120_v17  ;;  %v7122_v17 = vld [vmem:[#allocation97_spill] sm:$0xff] }
 0x3cf   : > { %v2814_v32 = vpop.f32.mrf.mxu2  ;;  %v2638_v29 = vpop.f32.mrf.mxu0 }
 0x3d0   : > { %v2815_v5 = vadd.f32 %v2814_v32, %v2726_v7  ;;  %v2903_v12 = vpop.f32.mrf.mxu3  ;;  %v2639_v45 = vadd.f32 %v2638_v29, %v6343_v57  ;;  %v2727_v8 = vpop.f32.mrf.mxu1  ;;  %v7123_v7 = vld [vmem:[#allocation98_spill] sm:$0xff]  ;;  %v7124_v32 = vld [vmem:[#allocation99_spill] sm:$0xff]  ;;  %v7125_v57 = vld [vmem:[#allocation100_spill] sm:$0xff] }
 0x3d2   : > { %v6503_v55 = vadd.f32 %v2903_v12, %v2815_v5  ;;  %v2728_v60 = vadd.f32 %v2727_v8, %v2639_v45 }
 0x3d7   : > { %v2816_v14 = vpop.f32.mrf.mxu2  ;;  %v2917_v48 = vpop.f32.mrf.mxu0 }
 0x3d8   : > { %v2817_v2 = vadd.f32 %v2816_v14, %v2728_v60  ;;  %v2905_v16 = vpop.f32.mrf.mxu3  ;;  %v3006_v21 = vpop.f32.mrf.mxu1  ;;  %v2918_v25 = vadd.f32 %v2917_v48, %v6353_v50  ;;  %v7126_v14 = vld [vmem:[#allocation101_spill] sm:$0xff]  ;;  %v3328_v50 = vld [vmem:[#allocation8] sm:$0x3] }
 0x3d9   : > { %5036 = vtanh.f32 %v7126_v14 }
 0x3da   : > { %v6505_v58 = vadd.f32 %v2905_v16, %v2817_v2  ;;  %2956 = vmatmul.bf16.gmra.mxu0 %v7122_v17  ;;  %v3007_v5 = vadd.f32 %v3006_v21, %v2918_v25 }
 0x3db   : > { %3045 = vmatmul.bf16.gmra.mxu1 %v7123_v7  ;;  %v6514_v7 = vperm.slane %v3328_v50, 0 }
 0x3dc   : > { %7121 = vst [vmem:[#allocation24_spill] sm:$0xff] %v6505_v58  ;;  %3134 = vmatmul.bf16.gmra.mxu2 %v7124_v32  ;;  %v6516_v32 = vperm.slane %v3328_v50, 1 }
 0x3dd   : > { %3223 = vmatmul.bf16.gmra.mxu3 %v7125_v57 }
 0x3df   : > { %v3095_v12 = vpop.f32.mrf.mxu2  ;;  %v2919_v8 = vpop.f32.mrf.mxu0 }
 0x3e0   : > { %v3096_v29 = vadd.f32 %v3095_v12, %v3007_v5  ;;  %v3184_v45 = vpop.f32.mrf.mxu3  ;;  %v3008_v60 = vpop.f32.mrf.mxu1  ;;  %v2920_v16 = vadd.f32 %v2919_v8, %v6356_v34  ;;  %v7127_v8 = vld [vmem:[#allocation102_spill] sm:$0xff] }
 0x3e1   : > { %v5037_v57 = vpop.eup %5036 }
 0x3e2   : > { %v3185_v2 = vadd.f32 %v3184_v45, %v3096_v29  ;;  %v3009_v48 = vadd.f32 %v3008_v60, %v2920_v16  ;;  %v3334_v34 = vmul.f32 %v5037_v57, %v6514_v7  ;;  %v7128_v60 = vld [vmem:[#allocation103_spill] sm:$0xff] }
 0x3e4   : > { %5038 = vtanh.f32 %v3185_v2  ;;  %v7129_v2 = vld [vmem:[#allocation104_spill] sm:$0xff] }
 0x3e5   : > { %5040 = vtanh.f32 %v6098_v31 }
 0x3e7   : > { %v3097_v17 = vpop.f32.mrf.mxu2  ;;  %v2922_v5 = vpop.f32.mrf.mxu0 }
 0x3e8   : > { %v3098_v21 = vadd.f32 %v3097_v17, %v3009_v48  ;;  %v3186_v25 = vpop.f32.mrf.mxu3  ;;  %v3011_v12 = vpop.f32.mrf.mxu1  ;;  %v2923_v29 = vadd.f32 %v2922_v5, %v6363_v49 }
 0x3ea   : > { %v5039_v58 = vpop.eup %5038  ;;  %v3187_v14 = vadd.f32 %v3186_v25, %v3098_v21  ;;  %2961 = vmatmul.bf16.gmra.mxu0 %v6089_v18  ;;  %v3012_v50 = vadd.f32 %v3011_v12, %v2923_v29 }
 0x3eb   : > { %v3335_v45 = vmul.f32 %v5039_v58, %v6516_v32  ;;  %3050 = vmatmul.bf16.gmra.mxu1 %v7127_v8  ;;  %v5041_v31 = vpop.eup %5040 }
 0x3ec   : > { %5042 = vtanh.f32 %v3187_v14  ;;  %3139 = vmatmul.bf16.gmra.mxu2 %v7128_v60  ;;  %v3336_v5 = vmul.f32 %v5041_v31, %v6514_v7 }
 0x3ed   : > { %3228 = vmatmul.bf16.gmra.mxu3 %v7129_v2  ;;  %v3398_v16 = vadd.f32 %v3335_v45, %v3334_v34  ;;  %5044 = vtanh.f32 %v6105_v62 }
 0x3ef   : > { %v3100_v48 = vpop.f32.mrf.mxu2  ;;  %3399 = vadd.xlane.f32.xlu0 %v3398_v16  ;;  %v2924_v21 = vpop.f32.mrf.mxu0 }
 0x3f0   : > { %v3101_v17 = vadd.f32 %v3100_v48, %v3012_v50  ;;  %v3189_v49 = vpop.f32.mrf.mxu3  ;;  %v3013_v18 = vpop.f32.mrf.mxu1  ;;  %v2925_v57 = vadd.f32 %v2924_v21, %v6366_v24  ;;  %v7130_v48 = vld [vmem:[#allocation105_spill] sm:$0xff]  ;;  %v7132_v21 = vld [vmem:[#allocation107_spill] sm:$0xff] }
 0x3f2   : > { %v5043_v25 = vpop.eup %5042  ;;  %v3190_v58 = vadd.f32 %v3189_v49, %v3101_v17  ;;  %v3014_v12 = vadd.f32 %v3013_v18, %v2925_v57  ;;  %v7131_v49 = vld [vmem:[#allocation106_spill] sm:$0xff]  ;;  %v7133_v18 = vld [vmem:[#allocation108_spill] sm:$0xff] }
 0x3f3   : > { %v3337_v14 = vmul.f32 %v5043_v25, %v6516_v32  ;;  %v5045_v45 = vpop.eup %5044 }
 0x3f4   : > { %5046 = vtanh.f32 %v3190_v58  ;;  %v3338_v31 = vmul.f32 %v5045_v45, %v6514_v7 }
 0x3f5   : > { %v3401_v34 = vadd.f32 %v3337_v14, %v3336_v5  ;;  %5048 = vtanh.f32 %v6124_v4 }
 0x3f7   : > { %v3102_v29 = vpop.f32.mrf.mxu2  ;;  %3402 = vadd.xlane.f32.xlu0 %v3401_v34  ;;  %v2927_v2 = vpop.f32.mrf.mxu0 }
 0x3f8   : > { %v3103_v8 = vadd.f32 %v3102_v29, %v3014_v12  ;;  %v3191_v60 = vpop.f32.mrf.mxu3  ;;  %v3016_v16 = vpop.f32.mrf.mxu1  ;;  %v2928_v24 = vadd.f32 %v2927_v2, %v6373_v46  ;;  %v7134_v29 = vld [vmem:[#allocation109_spill] sm:$0xff] }
 0x3fa   : > { %v5047_v50 = vpop.eup %5046  ;;  %v3192_v62 = vadd.f32 %v3191_v60, %v3103_v8  ;;  %2966 = vmatmul.bf16.gmra.mxu0 %v7130_v48  ;;  %v3017_v58 = vadd.f32 %v3016_v16, %v2928_v24 }
 0x3fb   : > { %v3339_v17 = vmul.f32 %v5047_v50, %v6516_v32  ;;  %3055 = vmatmul.bf16.gmra.mxu1 %v7131_v49  ;;  %v5049_v4 = vpop.eup %5048 }
 0x3fc   : > { %5050 = vtanh.f32 %v3192_v62  ;;  %3144 = vmatmul.bf16.gmra.mxu2 %v7132_v21  ;;  %v3340_v60 = vmul.f32 %v5049_v4, %v6514_v7  ;;  %v7136_v4 = vld [vmem:[#allocation111_spill] sm:$0xff] }
 0x3fd   : > { %3233 = vmatmul.bf16.gmra.mxu3 %v7133_v18  ;;  %v3404_v25 = vadd.f32 %v3339_v17, %v3338_v31  ;;  %5052 = vtanh.f32 %v7134_v29 }
 0x3ff   : > { %v3105_v57 = vpop.f32.mrf.mxu2  ;;  %3405 = vadd.xlane.f32.xlu1 %v3404_v25  ;;  %v2929_v14 = vpop.f32.mrf.mxu0 }
 0x400   : > { %v3106_v5 = vadd.f32 %v3105_v57, %v3017_v58  ;;  %v3194_v46 = vpop.f32.mrf.mxu3  ;;  %v3018_v34 = vpop.f32.mrf.mxu1  ;;  %v2930_v8 = vadd.f32 %v2929_v14, %v6376_v22  ;;  %v7135_v57 = vld [vmem:[#allocation110_spill] sm:$0xff] }
 0x402   : > { %v5051_v12 = vpop.eup %5050  ;;  %v3195_v45 = vadd.f32 %v3194_v46, %v3106_v5  ;;  %v3019_v16 = vadd.f32 %v3018_v34, %v2930_v8  ;;  %v7137_v5 = vld [vmem:[#allocation112_spill] sm:$0xff] }
 0x403   : > { %v3341_v2 = vmul.f32 %v5051_v12, %v6516_v32  ;;  %v5053_v24 = vpop.eup %5052 }
 0x404   : > { %5054 = vtanh.f32 %v3195_v45  ;;  %v3342_v25 = vmul.f32 %v5053_v24, %v6514_v7 }
 0x405   : > { %v3407_v50 = vadd.f32 %v3341_v2, %v3340_v60  ;;  %5056 = vtanh.f32 %v6150_v41 }
 0x407   : > { %v3107_v62 = vpop.f32.mrf.mxu2  ;;  %3408 = vadd.xlane.f32.xlu1 %v3407_v50  ;;  %v2932_v17 = vpop.f32.mrf.mxu0 }
 0x408   : > { %v3108_v48 = vadd.f32 %v3107_v62, %v3019_v16  ;;  %v3196_v31 = vpop.f32.mrf.mxu3  ;;  %v3021_v49 = vpop.f32.mrf.mxu1  ;;  %v2933_v22 = vadd.f32 %v2932_v17, %v6383_v54 }
 0x40a   : > { %v5055_v21 = vpop.eup %5054  ;;  %v3197_v18 = vadd.f32 %v3196_v31, %v3108_v48  ;;  %2971 = vmatmul.bf16.gmra.mxu0 %v6141_v44  ;;  %v3022_v14 = vadd.f32 %v3021_v49, %v2933_v22  ;;  %v7138_v22 = vld [vmem:[#allocation113_spill] sm:$0xff] }
 0x40b   : > { %v3343_v58 = vmul.f32 %v5055_v21, %v6516_v32  ;;  %3060 = vmatmul.bf16.gmra.mxu1 %v7135_v57  ;;  %v5057_v41 = vpop.eup %5056  ;;  %v7139_v57 = vld [vmem:[#allocation114_spill] sm:$0xff] }
 0x40c   : > { %5058 = vtanh.f32 %v3197_v18  ;;  %3149 = vmatmul.bf16.gmra.mxu2 %v7136_v4  ;;  %v3344_v2 = vmul.f32 %v5057_v41, %v6514_v7  ;;  %v7140_v4 = vld [vmem:[#allocation115_spill] sm:$0xff] }
 0x40d   : > { %3238 = vmatmul.bf16.gmra.mxu3 %v7137_v5  ;;  %v3410_v46 = vadd.f32 %v3343_v58, %v3342_v25  ;;  %5060 = vtanh.f32 %v6157_v35  ;;  %v7141_v5 = vld [vmem:[#allocation116_spill] sm:$0xff] }
 0x40f   : > { %v3110_v34 = vpop.f32.mrf.mxu2  ;;  %3411 = vadd.xlane.f32.xlu2 %v3410_v46  ;;  %v2934_v29 = vpop.f32.mrf.mxu0 }
 0x410   : > { %v3111_v12 = vadd.f32 %v3110_v34, %v3022_v14  ;;  %v3199_v54 = vpop.f32.mrf.mxu3  ;;  %v3023_v44 = vpop.f32.mrf.mxu1  ;;  %v2935_v60 = vadd.f32 %v2934_v29, %v6386_v23 }
 0x412   : > { %v5059_v45 = vpop.eup %5058  ;;  %v3200_v8 = vadd.f32 %v3199_v54, %v3111_v12  ;;  %v3024_v62 = vadd.f32 %v3023_v44, %v2935_v60  ;;  %v7142_v44 = vld [vmem:[#allocation117_spill] sm:$0xff] }
 0x413   : > { %v3345_v50 = vmul.f32 %v5059_v45, %v6516_v32  ;;  %v5061_v48 = vpop.eup %5060 }
 0x414   : > { %5062 = vtanh.f32 %v3200_v8  ;;  %v3346_v25 = vmul.f32 %v5061_v48, %v6514_v7 }
 0x415   : > { %v3413_v16 = vadd.f32 %v3345_v50, %v3344_v2  ;;  %5064 = vtanh.f32 %v6176_v30 }
 0x417   : > { %v3112_v24 = vpop.f32.mrf.mxu2  ;;  %3414 = vadd.xlane.f32.xlu2 %v3413_v16  ;;  %v2937_v49 = vpop.f32.mrf.mxu0 }
 0x418   : > { %v3113_v31 = vadd.f32 %v3112_v24, %v3024_v62  ;;  %v3201_v17 = vpop.f32.mrf.mxu3  ;;  %v3026_v21 = vpop.f32.mrf.mxu1  ;;  %v2938_v23 = vadd.f32 %v2937_v49, %v6393_v63 }
 0x41a   : > { %v5063_v18 = vpop.eup %5062  ;;  %v3202_v35 = vadd.f32 %v3201_v17, %v3113_v31  ;;  %2976 = vmatmul.bf16.gmra.mxu0 %v7138_v22  ;;  %v3027_v14 = vadd.f32 %v3026_v21, %v2938_v23  ;;  %v7143_v22 = vld [vmem:[#allocation118_spill] sm:$0xff] }
 0x41b   : > { %v3347_v58 = vmul.f32 %v5063_v18, %v6516_v32  ;;  %3065 = vmatmul.bf16.gmra.mxu1 %v7139_v57  ;;  %v5065_v30 = vpop.eup %5064 }
 0x41c   : > { %5066 = vtanh.f32 %v3202_v35  ;;  %3154 = vmatmul.bf16.gmra.mxu2 %v7140_v4  ;;  %v3348_v60 = vmul.f32 %v5065_v30, %v6514_v7 }
 0x41d   : > { %3243 = vmatmul.bf16.gmra.mxu3 %v7141_v5  ;;  %v3416_v46 = vadd.f32 %v3347_v58, %v3346_v25  ;;  %5068 = vtanh.f32 %v7142_v44  ;;  %v7144_v25 = vld [vmem:[#allocation119_spill] sm:$0xff]  ;;  %v7145_v58 = vld [vmem:[#allocation120_spill] sm:$0xff] }
 0x41f   : > { %v3115_v34 = vpop.f32.mrf.mxu2  ;;  %3417 = vadd.xlane.f32.xlu0 %v3416_v46  ;;  %v2939_v12 = vpop.f32.mrf.mxu0 }
 0x420   : > { %v3116_v41 = vadd.f32 %v3115_v34, %v3027_v14  ;;  %v3204_v63 = vpop.f32.mrf.mxu3  ;;  %v3028_v54 = vpop.f32.mrf.mxu1  ;;  %v2940_v8 = vadd.f32 %v2939_v12, %v6396_v10 }
 0x422   : > { %v5067_v29 = vpop.eup %5066  ;;  %v3205_v45 = vadd.f32 %v3204_v63, %v3116_v41  ;;  %v3029_v16 = vadd.f32 %v3028_v54, %v2940_v8 }
 0x423   : > { %v3349_v2 = vmul.f32 %v5067_v29, %v6516_v32  ;;  %v5069_v24 = vpop.eup %5068 }
 0x424   : > { %5070 = vtanh.f32 %v3205_v45  ;;  %v3350_v35 = vmul.f32 %v5069_v24, %v6514_v7  ;;  %v7147_v24 = vld [vmem:[#allocation121_spill] sm:$0xff] }
 0x425   : > { %v3419_v50 = vadd.f32 %v3349_v2, %v3348_v60  ;;  %5072 = vtanh.f32 %v6202_v42 }
 0x427   : > { %v3117_v62 = vpop.f32.mrf.mxu2  ;;  %3420 = vadd.xlane.f32.xlu1 %v3419_v50  ;;  %v2942_v17 = vpop.f32.mrf.mxu0 }
 0x428   : > { %v3118_v48 = vadd.f32 %v3117_v62, %v3029_v16  ;;  %v3206_v31 = vpop.f32.mrf.mxu3  ;;  %v3031_v49 = vpop.f32.mrf.mxu1  ;;  %v2943_v10 = vadd.f32 %v2942_v17, %v6403_v61  ;;  %v7146_v62 = vld [vmem:[#allocation125_spill] sm:$0xff]  ;;  %v7148_v17 = vld [vmem:[#allocation122_spill] sm:$0xff] }
 0x42a   : > { %v5071_v21 = vpop.eup %5070  ;;  %v3207_v18 = vadd.f32 %v3206_v31, %v3118_v48  ;;  %2981 = vmatmul.bf16.gmra.mxu0 %v6193_v59  ;;  %v3032_v4 = vadd.f32 %v3031_v49, %v2943_v10  ;;  %v7149_v49 = vld [vmem:[#allocation123_spill] sm:$0xff] }
 0x42b   : > { %v3351_v23 = vmul.f32 %v5071_v21, %v6516_v32  ;;  %3070 = vmatmul.bf16.gmra.mxu1 %v7143_v22  ;;  %v5073_v42 = vpop.eup %5072  ;;  %v7150_v21 = vld [vmem:[#allocation124_spill] sm:$0xff] }
 0x42c   : > { %5074 = vtanh.f32 %v3207_v18  ;;  %3159 = vmatmul.bf16.gmra.mxu2 %v7144_v25  ;;  %v3352_v63 = vmul.f32 %v5073_v42, %v6514_v7 }
 0x42d   : > { %3248 = vmatmul.bf16.gmra.mxu3 %v7145_v58  ;;  %v3422_v57 = vadd.f32 %v3351_v23, %v3350_v35  ;;  %5076 = vtanh.f32 %v6209_v38 }
 0x42f   : > { %v3120_v5 = vpop.f32.mrf.mxu2  ;;  %3423 = vadd.xlane.f32.xlu2 %v3422_v57  ;;  %v2944_v14 = vpop.f32.mrf.mxu0 }
 0x430   : > { %v3121_v46 = vadd.f32 %v3120_v5, %v3032_v4  ;;  %v3209_v61 = vpop.f32.mrf.mxu3  ;;  %v3033_v59 = vpop.f32.mrf.mxu1  ;;  %v2945_v41 = vadd.f32 %v2944_v14, %v6406_v52  ;;  %v7151_v4 = vld [vmem:[#allocation126_spill] sm:$0xff] }
 0x432   : > { %v5075_v34 = vpop.eup %5074  ;;  %v3210_v30 = vadd.f32 %v3209_v61, %v3121_v46  ;;  %v3034_v29 = vadd.f32 %v3033_v59, %v2945_v41 }
 0x433   : > { %v3353_v12 = vmul.f32 %v5075_v34, %v6516_v32  ;;  %v5077_v45 = vpop.eup %5076 }
 0x434   : > { %5078 = vtanh.f32 %v3210_v30  ;;  %v3354_v48 = vmul.f32 %v5077_v45, %v6514_v7 }
 0x435   : > { %v3425_v54 = vadd.f32 %v3353_v12, %v3352_v63  ;;  %5080 = vtanh.f32 %v7146_v62 }
 0x437   : > { %v3122_v44 = vpop.f32.mrf.mxu2  ;;  %3426 = vadd.xlane.f32.xlu0 %v3425_v54  ;;  %v2947_v2 = vpop.f32.mrf.mxu0 }
 0x438   : > { %v3123_v8 = vadd.f32 %v3122_v44, %v3034_v29  ;;  %v3211_v60 = vpop.f32.mrf.mxu3  ;;  %v3036_v50 = vpop.f32.mrf.mxu1  ;;  %v2948_v52 = vadd.f32 %v2947_v2, %v6413_v9 }
 0x43a   : > { %v5079_v16 = vpop.eup %5078  ;;  %v3212_v38 = vadd.f32 %v3211_v60, %v3123_v8  ;;  %2986 = vmatmul.bf16.gmra.mxu0 %v7147_v24  ;;  %v3037_v10 = vadd.f32 %v3036_v50, %v2948_v52 }
 0x43b   : > { %v3355_v31 = vmul.f32 %v5079_v16, %v6516_v32  ;;  %3075 = vmatmul.bf16.gmra.mxu1 %v7148_v17  ;;  %v5081_v23 = vpop.eup %5080 }
 0x43c   : > { %5082 = vtanh.f32 %v3212_v38  ;;  %3164 = vmatmul.bf16.gmra.mxu2 %v7149_v49  ;;  %v3356_v46 = vmul.f32 %v5081_v23, %v6514_v7 }
 0x43d   : > { %3253 = vmatmul.bf16.gmra.mxu3 %v7150_v21  ;;  %v3428_v18 = vadd.f32 %v3355_v31, %v3354_v48  ;;  %5084 = vtanh.f32 %v7151_v4 }
 0x43f   : > { %v3125_v35 = vpop.f32.mrf.mxu2  ;;  %3429 = vadd.xlane.f32.xlu1 %v3428_v18  ;;  %v2949_v25 = vpop.f32.mrf.mxu0 }
 0x440   : > { %v3126_v22 = vadd.f32 %v3125_v35, %v3037_v10  ;;  %v3214_v9 = vpop.f32.mrf.mxu3  ;;  %v3038_v58 = vpop.f32.mrf.mxu1  ;;  %v2950_v42 = vadd.f32 %v2949_v25, %v6416_v11 }
 0x442   : > { %v5083_v57 = vpop.eup %5082  ;;  %v3215_v5 = vadd.f32 %v3214_v9, %v3126_v22  ;;  %v3039_v59 = vadd.f32 %v3038_v58, %v2950_v42 }
 0x443   : > { %v3357_v61 = vmul.f32 %v5083_v57, %v6516_v32  ;;  %v5085_v30 = vpop.eup %5084  ;;  %v6608_v57 = vld [vmem:[#allocation2] ss:$0 sm:$0xff] }
 0x444   : > { %5086 = vtanh.f32 %v3215_v5  ;;  %v3358_v45 = vmul.f32 %v5085_v30, %v6514_v7 }
 0x445   : > { %v3431_v14 = vadd.f32 %v3357_v61, %v3356_v46  ;;  %5088 = vtanh.f32 %v6254_v39 }
 0x447   : > { %v3127_v34 = vpop.f32.mrf.mxu2  ;;  %3432 = vadd.xlane.f32.xlu2 %v3431_v14  ;;  %v2952_v12 = vpop.f32.mrf.mxu0 }
 0x448   : > { %v3128_v41 = vadd.f32 %v3127_v34, %v3039_v59  ;;  %v3216_v63 = vpop.f32.mrf.mxu3  ;;  %v3041_v54 = vpop.f32.mrf.mxu1  ;;  %v2953_v11 = vadd.f32 %v2952_v12, %v6423_v3 }
 0x44a   : > { %v5087_v29 = vpop.eup %5086  ;;  %v3217_v44 = vadd.f32 %v3216_v63, %v3128_v41  ;;  %2991 = vmatmul.bf16.gmra.mxu0 %v6245_v19  ;;  %v3042_v2 = vadd.f32 %v3041_v54, %v2953_v11 }
 0x44b   : > { %v3359_v8 = vmul.f32 %v5087_v29, %v6516_v32  ;;  %3080 = vmatmul.bf16.gmra.mxu1 %v6247_v37  ;;  %v5089_v50 = vpop.eup %5088 }
 0x44c   : > { %5090 = vtanh.f32 %v3217_v44  ;;  %3169 = vmatmul.bf16.gmra.mxu2 %v6249_v1  ;;  %v3360_v1 = vmul.f32 %v5089_v50, %v6514_v7 }
 0x44d   : > { %3258 = vmatmul.bf16.gmra.mxu3 %v6252_v43  ;;  %v3434_v60 = vadd.f32 %v3359_v8, %v3358_v45  ;;  %5092 = vtanh.f32 %v6261_v33 }
 0x44f   : > { %v3130_v39 = vpop.f32.mrf.mxu2  ;;  %3435 = vadd.xlane.f32.xlu0 %v3434_v60  ;;  %v2954_v19 = vpop.f32.mrf.mxu0 }
 0x450   : > { %v3131_v3 = vadd.f32 %v3130_v39, %v3042_v2  ;;  %v3219_v16 = vpop.f32.mrf.mxu3  ;;  %v3043_v62 = vpop.f32.mrf.mxu1  ;;  %v2955_v37 = vadd.f32 %v2954_v19, %v6426_v47 }
 0x452   : > { %v5091_v38 = vpop.eup %5090  ;;  %v3220_v52 = vadd.f32 %v3219_v16, %v3131_v3  ;;  %v3044_v48 = vadd.f32 %v3043_v62, %v2955_v37 }
 0x453   : > { %v3361_v43 = vmul.f32 %v5091_v38, %v6516_v32  ;;  %v5093_v17 = vpop.eup %5092 }
 0x454   : > { %5094 = vtanh.f32 %v3220_v52  ;;  %v3362_v23 = vmul.f32 %v5093_v17, %v6514_v7 }
 0x455   : > { %v3437_v24 = vadd.f32 %v3361_v43, %v3360_v1  ;;  %5096 = vtanh.f32 %v6264_v40 }
 0x457   : > { %v3132_v31 = vpop.f32.mrf.mxu2  ;;  %3438 = vadd.xlane.f32.xlu1 %v3437_v24  ;;  %v2957_v18 = vpop.f32.mrf.mxu0 }
 0x458   : > { %v3133_v49 = vadd.f32 %v3132_v31, %v3044_v48  ;;  %v3221_v21 = vpop.f32.mrf.mxu3  ;;  %v3046_v33 = vpop.f32.mrf.mxu1  ;;  %v2958_v35 = vadd.f32 %v2957_v18, %v6433_v26 }
 0x45a   : > { %v5095_v10 = vpop.eup %5094  ;;  %v3222_v47 = vadd.f32 %v3221_v21, %v3133_v49  ;;  %v3047_v25 = vadd.f32 %v3046_v33, %v2958_v35 }
 0x45b   : > { %v3363_v22 = vmul.f32 %v5095_v10, %v6516_v32  ;;  %v5097_v4 = vpop.eup %5096 }
 0x45c   : > { %5098 = vtanh.f32 %v3222_v47  ;;  %v3364_v30 = vmul.f32 %v5097_v4, %v6514_v7 }
 0x45d   : > { %v3440_v9 = vadd.f32 %v3363_v22, %v3362_v23  ;;  %5100 = vtanh.f32 %v6271_v53 }
 0x45f   : > { %v3135_v58 = vpop.f32.mrf.mxu2  ;;  %3441 = vadd.xlane.f32.xlu2 %v3440_v9  ;;  %v2959_v40 = vpop.f32.mrf.mxu0 }
 0x460   : > { %v3136_v5 = vadd.f32 %v3135_v58, %v3047_v25  ;;  %v3224_v42 = vpop.f32.mrf.mxu3  ;;  %v3048_v46 = vpop.f32.mrf.mxu1  ;;  %v2960_v14 = vadd.f32 %v2959_v40, %v6436_v56 }
 0x462   : > { %v5099_v61 = vpop.eup %5098  ;;  %v3225_v26 = vadd.f32 %v3224_v42, %v3136_v5  ;;  %v3400_v59 = vpop.xlane.xlu0 %3399  ;;  %v3049_v63 = vadd.f32 %v3048_v46, %v2960_v14 }
 0x463   : > { %v3498_v34 = vadd.f32 %v6608_v57, %v3400_v59  ;;  %v3365_v41 = vmul.f32 %v5099_v61, %v6516_v32  ;;  %v5101_v12 = vpop.eup %5100 }
 0x464   : > { %5102 = vtanh.f32 %v3225_v26  ;;  %v3366_v50 = vmul.f32 %v5101_v12, %v6514_v7 }
 0x465   : > { %3531 = vst.msk [vmem:[%s6615_s29] sm:$0xff] %vm3530_vm0, %v3498_v34  ;;  %v3443_v53 = vadd.f32 %v3365_v41, %v3364_v30  ;;  %5104 = vtanh.f32 %v6274_v0 }
 0x467   : > { %v3137_v56 = vpop.f32.mrf.mxu2  ;;  %3444 = vadd.xlane.f32.xlu0 %v3443_v53  ;;  %v2962_v44 = vpop.f32.mrf.mxu0 }
 0x468   : > { %v3138_v54 = vadd.f32 %v3137_v56, %v3049_v63  ;;  %v3226_v29 = vpop.f32.mrf.mxu3  ;;  %v3051_v11 = vpop.f32.mrf.mxu1  ;;  %v2963_v60 = vadd.f32 %v2962_v44, %v6443_v13 }
 0x46a   : > { %v5103_v45 = vpop.eup %5102  ;;  %v3227_v8 = vadd.f32 %v3226_v29, %v3138_v54  ;;  %v3403_v2 = vpop.xlane.xlu0 %3402  ;;  %v3052_v19 = vadd.f32 %v3051_v11, %v2963_v60  ;;  %v7152_v60 = vld [vmem:[#allocation127_spill] sm:$0xff] }
 0x46b   : > { %v3499_v39 = vadd.f32 %v6608_v57, %v3403_v2  ;;  %v3367_v3 = vmul.f32 %v5103_v45, %v6516_v32  ;;  %v5105_v38 = vpop.eup %5104 }
 0x46c   : > { %5106 = vtanh.f32 %v3227_v8  ;;  %v3368_v17 = vmul.f32 %v5105_v38, %v6514_v7 }
 0x46d   : > { %3532 = vst.msk [vmem:[%s6615_s29 + $0x8] sm:$0xff] %vm3530_vm0, %v3499_v39  ;;  %v3446_v16 = vadd.f32 %v3367_v3, %v3366_v50  ;;  %5108 = vtanh.f32 %v6281_v20  ;;  %v7153_v39 = vld [vmem:[#allocation19_spill] sm:$0xff] }
 0x46f   : > { %v3140_v62 = vpop.f32.mrf.mxu2  ;;  %3447 = vadd.xlane.f32.xlu1 %v3446_v16  ;;  %v2964_v37 = vpop.f32.mrf.mxu0 }
 0x470   : > { %v3141_v0 = vadd.f32 %v3140_v62, %v3052_v19  ;;  %v3229_v52 = vpop.f32.mrf.mxu3  ;;  %v3053_v13 = vpop.f32.mrf.mxu1  ;;  %v2965_v24 = vadd.f32 %v2964_v37, %v6446_v36 }
 0x472   : > { %v5107_v1 = vpop.eup %5106  ;;  %v3230_v43 = vadd.f32 %v3229_v52, %v3141_v0  ;;  %v3406_v48 = vpop.xlane.xlu1 %3405  ;;  %v3054_v18 = vadd.f32 %v3053_v13, %v2965_v24 }
 0x473   : > { %v3500_v31 = vadd.f32 %v6608_v57, %v3406_v48  ;;  %v3369_v49 = vmul.f32 %v5107_v1, %v6516_v32  ;;  %v5109_v10 = vpop.eup %5108 }
 0x474   : > { %5110 = vtanh.f32 %v3230_v43  ;;  %v3370_v4 = vmul.f32 %v5109_v10, %v6514_v7 }
 0x475   : > { %3533 = vst.msk [vmem:[%s6615_s29 + $0x10] sm:$0xff] %vm3530_vm0, %v3500_v31  ;;  %v3449_v21 = vadd.f32 %v3369_v49, %v3368_v17  ;;  %5112 = vtanh.f32 %v6284_v15  ;;  %v7154_v31 = vld [vmem:[#allocation128_spill] sm:$0xff] }
 0x476   : > { %v7155_v49 = vld [vmem:[#allocation20_spill] sm:$0xff] }
 0x477   : > { %v3142_v33 = vpop.f32.mrf.mxu2  ;;  %3450 = vadd.xlane.f32.xlu2 %v3449_v21  ;;  %v2967_v35 = vpop.f32.mrf.mxu0 }
 0x478   : > { %v3143_v20 = vadd.f32 %v3142_v33, %v3054_v18  ;;  %v3231_v47 = vpop.f32.mrf.mxu3  ;;  %v3056_v36 = vpop.f32.mrf.mxu1  ;;  %v2968_v9 = vadd.f32 %v2967_v35, %v6453_v6 }
 0x47a   : > { %v5111_v23 = vpop.eup %5110  ;;  %v3232_v22 = vadd.f32 %v3231_v47, %v3143_v20  ;;  %v3409_v25 = vpop.xlane.xlu1 %3408  ;;  %v3057_v40 = vadd.f32 %v3056_v36, %v2968_v9 }
 0x47b   : > { %v3501_v58 = vadd.f32 %v6608_v57, %v3409_v25  ;;  %v3371_v5 = vmul.f32 %v5111_v23, %v6516_v32  ;;  %v5113_v61 = vpop.eup %5112 }
 0x47c   : > { %5114 = vtanh.f32 %v3232_v22  ;;  %v3372_v63 = vmul.f32 %v5113_v61, %v6514_v7 }
 0x47d   : > { %3534 = vst.msk [vmem:[%s6615_s29 + $0x18] sm:$0xff] %vm3530_vm0, %v3501_v58  ;;  %v3452_v42 = vadd.f32 %v3371_v5, %v3370_v4  ;;  %5116 = vtanh.f32 %v6291_v27  ;;  %v7156_v5 = vld [vmem:[#allocation129_spill] sm:$0xff] }
 0x47f   : > { %v3145_v46 = vpop.f32.mrf.mxu2  ;;  %3453 = vadd.xlane.f32.xlu0 %v3452_v42  ;;  %v2969_v14 = vpop.f32.mrf.mxu0 }
 0x480   : > { %v3146_v15 = vadd.f32 %v3145_v46, %v3057_v40  ;;  %v3234_v26 = vpop.f32.mrf.mxu3  ;;  %v3058_v6 = vpop.f32.mrf.mxu1  ;;  %v2970_v30 = vadd.f32 %v2969_v14, %v6456_v28  ;;  %v7157_v40 = vld [vmem:[#allocation91_spill] sm:$0xff] }
 0x482   : > { %v5115_v59 = vpop.eup %5114  ;;  %v3235_v34 = vadd.f32 %v3234_v26, %v3146_v15  ;;  %v3412_v41 = vpop.xlane.xlu2 %3411  ;;  %v3059_v54 = vadd.f32 %v3058_v6, %v2970_v30 }
 0x483   : > { %v3502_v53 = vadd.f32 %v6608_v57, %v3412_v41  ;;  %v3373_v56 = vmul.f32 %v5115_v59, %v6516_v32  ;;  %v5117_v44 = vpop.eup %5116 }
 0x484   : > { %5118 = vtanh.f32 %v3235_v34  ;;  %v3374_v19 = vmul.f32 %v5117_v44, %v6514_v7  ;;  %v7159_v44 = vld [vmem:[#allocation92_spill] sm:$0xff] }
 0x485   : > { %3535 = vst.msk [vmem:[%s6615_s29 + $0x20] sm:$0xff] %vm3530_vm0, %v3502_v53  ;;  %v3455_v12 = vadd.f32 %v3373_v56, %v3372_v63  ;;  %5120 = vtanh.f32 %v7152_v60 }
 0x487   : > { %v3147_v29 = vpop.f32.mrf.mxu2  ;;  %3456 = vadd.xlane.f32.xlu1 %v3455_v12  ;;  %v2972_v45 = vpop.f32.mrf.mxu0 }
 0x488   : > { %v3148_v27 = vadd.f32 %v3147_v29, %v3059_v54  ;;  %v3236_v11 = vpop.f32.mrf.mxu3  ;;  %v3061_v28 = vpop.f32.mrf.mxu1  ;;  %v2973_v50 = vadd.f32 %v2972_v45, %v7153_v39  ;;  %v7158_v54 = vld [vmem:[#allocation13_spill] sm:$0xff] }
 0x48a   : > { %v5119_v8 = vpop.eup %5118  ;;  %v3237_v2 = vadd.f32 %v3236_v11, %v3148_v27  ;;  %v3415_v3 = vpop.xlane.xlu2 %3414  ;;  %v3062_v0 = vadd.f32 %v3061_v28, %v2973_v50 }
 0x48b   : > { %v3503_v16 = vadd.f32 %v6608_v57, %v3415_v3  ;;  %v3375_v62 = vmul.f32 %v5119_v8, %v6516_v32  ;;  %v5121_v37 = vpop.eup %5120 }
 0x48c   : > { %5122 = vtanh.f32 %v3237_v2  ;;  %v3376_v10 = vmul.f32 %v5121_v37, %v6514_v7  ;;  %v7161_v37 = vld [vmem:[#allocation21_spill] sm:$0xff] }
 0x48d   : > { %3536 = vst.msk [vmem:[%s6615_s29 + $0x28] sm:$0xff] %vm3530_vm0, %v3503_v16  ;;  %v3458_v38 = vadd.f32 %v3375_v62, %v3374_v19  ;;  %5124 = vtanh.f32 %v7154_v31 }
 0x48f   : > { %v3150_v52 = vpop.f32.mrf.mxu2  ;;  %3459 = vadd.xlane.f32.xlu2 %v3458_v38  ;;  %v2974_v43 = vpop.f32.mrf.mxu0 }
 0x490   : > { %v3151_v13 = vadd.f32 %v3150_v52, %v3062_v0  ;;  %v3239_v1 = vpop.f32.mrf.mxu3  ;;  %v3063_v24 = vpop.f32.mrf.mxu1  ;;  %v2975_v21 = vadd.f32 %v2974_v43, %v7155_v49  ;;  %v7160_v0 = vld [vmem:[#allocation14_spill] sm:$0xff] }
 0x492   : > { %v5123_v48 = vpop.eup %5122  ;;  %v3240_v17 = vadd.f32 %v3239_v1, %v3151_v13  ;;  %v3418_v18 = vpop.xlane.xlu0 %3417  ;;  %v3064_v35 = vadd.f32 %v3063_v24, %v2975_v21 }
 0x493   : > { %v3504_v33 = vadd.f32 %v6608_v57, %v3418_v18  ;;  %v3377_v20 = vmul.f32 %v5123_v48, %v6516_v32  ;;  %v5125_v23 = vpop.eup %5124 }
 0x494   : > { %5126 = vtanh.f32 %v3240_v17  ;;  %v3378_v26 = vmul.f32 %v5125_v23, %v6514_v7  ;;  %v7163_v23 = vld [vmem:[#allocation22_spill] sm:$0xff] }
 0x495   : > { %3537 = vst.msk [vmem:[%s6615_s29 + $0x30] sm:$0xff] %vm3530_vm0, %v3504_v33  ;;  %v3461_v47 = vadd.f32 %v3377_v20, %v3376_v10  ;;  %5128 = vtanh.f32 %v7156_v5 }
 0x497   : > { %v3152_v36 = vpop.f32.mrf.mxu2  ;;  %3462 = vadd.xlane.f32.xlu0 %v3461_v47  ;;  %v2977_v25 = vpop.f32.mrf.mxu0 }
 0x498   : > { %v3153_v22 = vadd.f32 %v3152_v36, %v3064_v35  ;;  %v3241_v9 = vpop.f32.mrf.mxu3  ;;  %v3066_v58 = vpop.f32.mrf.mxu1  ;;  %v2978_v46 = vadd.f32 %v2977_v25, %v7157_v40  ;;  %v7162_v35 = vld [vmem:[#allocation15_spill] sm:$0xff] }
 0x49a   : > { %v5127_v4 = vpop.eup %5126  ;;  %v3242_v42 = vadd.f32 %v3241_v9, %v3153_v22  ;;  %v3421_v61 = vpop.xlane.xlu1 %3420  ;;  %v3067_v59 = vadd.f32 %v3066_v58, %v2978_v46 }
 0x49b   : > { %v3505_v15 = vadd.f32 %v6608_v57, %v3421_v61  ;;  %v3379_v14 = vmul.f32 %v5127_v4, %v6516_v32  ;;  %v5129_v30 = vpop.eup %5128 }
 0x49c   : > { %5130 = vtanh.f32 %v3242_v42  ;;  %v3380_v28 = vmul.f32 %v5129_v30, %v6514_v7 }
 0x49d   : > { %3538 = vst.msk [vmem:[%s6615_s29 + $0x38] sm:$0xff] %vm3530_vm0, %v3505_v15  ;;  %v3464_v6 = vadd.f32 %v3379_v14, %v3378_v26  ;;  %5132 = vtanh.f32 %v7158_v54 }
 0x49f   : > { %v3155_v34 = vpop.f32.mrf.mxu2  ;;  %3465 = vadd.xlane.f32.xlu1 %v3464_v6  ;;  %v2979_v63 = vpop.f32.mrf.mxu0 }
 0x4a0   : > { %v3156_v41 = vadd.f32 %v3155_v34, %v3067_v59  ;;  %v3244_v53 = vpop.f32.mrf.mxu3  ;;  %v3068_v56 = vpop.f32.mrf.mxu1  ;;  %v2980_v27 = vadd.f32 %v2979_v63, %v7159_v44  ;;  %v7164_v59 = vld [vmem:[#allocation16_spill] sm:$0xff] }
 0x4a2   : > { %v5131_v12 = vpop.eup %5130  ;;  %v3245_v29 = vadd.f32 %v3244_v53, %v3156_v41  ;;  %v3424_v11 = vpop.xlane.xlu2 %3423  ;;  %v3069_v2 = vadd.f32 %v3068_v56, %v2980_v27 }
 0x4a3   : > { %v3506_v45 = vadd.f32 %v6608_v57, %v3424_v11  ;;  %v3381_v8 = vmul.f32 %v5131_v12, %v6516_v32  ;;  %v5133_v50 = vpop.eup %5132 }
 0x4a4   : > { %5134 = vtanh.f32 %v3245_v29  ;;  %v3382_v24 = vmul.f32 %v5133_v50, %v6514_v7 }
 0x4a5   : > { %3539 = vst.msk [vmem:[%s6615_s29 + $0x40] sm:$0xff] %vm3530_vm0, %v3506_v45  ;;  %v3467_v60 = vadd.f32 %v3381_v8, %v3380_v28  ;;  %5136 = vtanh.f32 %v7160_v0  ;;  %v7165_v8 = vld [vmem:[#allocation85_spill] sm:$0xff] }
 0x4a7   : > { %v3157_v39 = vpop.f32.mrf.mxu2  ;;  %3468 = vadd.xlane.f32.xlu2 %v3467_v60  ;;  %v2982_v19 = vpop.f32.mrf.mxu0 }
 0x4a8   : > { %v3158_v3 = vadd.f32 %v3157_v39, %v3069_v2  ;;  %v3246_v16 = vpop.f32.mrf.mxu3  ;;  %v3071_v62 = vpop.f32.mrf.mxu1  ;;  %v2983_v13 = vadd.f32 %v2982_v19, %v7161_v37  ;;  %v7166_v2 = vld [vmem:[#allocation23_spill] sm:$0xff] }
 0x4aa   : > { %v5135_v38 = vpop.eup %5134  ;;  %v3247_v52 = vadd.f32 %v3246_v16, %v3158_v3  ;;  %v3427_v1 = vpop.xlane.xlu0 %3426  ;;  %v3072_v17 = vadd.f32 %v3071_v62, %v2983_v13 }
 0x4ab   : > { %v3507_v43 = vadd.f32 %v6608_v57, %v3427_v1  ;;  %v3383_v48 = vmul.f32 %v5135_v38, %v6516_v32  ;;  %v5137_v21 = vpop.eup %5136 }
 0x4ac   : > { %5138 = vtanh.f32 %v3247_v52  ;;  %v3384_v58 = vmul.f32 %v5137_v21, %v6514_v7 }
 0x4ad   : > { %3540 = vst.msk [vmem:[%s6615_s29 + $0x48] sm:$0xff] %vm3530_vm0, %v3507_v43  ;;  %v3470_v31 = vadd.f32 %v3383_v48, %v3382_v24  ;;  %5140 = vtanh.f32 %v7162_v35  ;;  %v7167_v24 = vld [vmem:[#allocation86_spill] sm:$0xff] }
 0x4af   : > { %v3160_v49 = vpop.f32.mrf.mxu2  ;;  %3471 = vadd.xlane.f32.xlu0 %v3470_v31  ;;  %v2984_v10 = vpop.f32.mrf.mxu0 }
 0x4b0   : > { %v3161_v18 = vadd.f32 %v3160_v49, %v3072_v17  ;;  %v3249_v33 = vpop.f32.mrf.mxu3  ;;  %v3073_v20 = vpop.f32.mrf.mxu1  ;;  %v2985_v22 = vadd.f32 %v2984_v10, %v7163_v23 }
 0x4b2   : > { %v5139_v47 = vpop.eup %5138  ;;  %v3250_v36 = vadd.f32 %v3249_v33, %v3161_v18  ;;  %v3430_v9 = vpop.xlane.xlu1 %3429  ;;  %v3074_v42 = vadd.f32 %v3073_v20, %v2985_v22 }
 0x4b3   : > { %v3508_v25 = vadd.f32 %v6608_v57, %v3430_v9  ;;  %v3385_v4 = vmul.f32 %v5139_v47, %v6516_v32  ;;  %v5141_v46 = vpop.eup %5140  ;;  %v7168_v9 = vld [vmem:[#allocation17_spill] sm:$0xff] }
 0x4b4   : > { %5142 = vtanh.f32 %v3250_v36  ;;  %v3386_v63 = vmul.f32 %v5141_v46, %v6514_v7 }
 0x4b5   : > { %3541 = vst.msk [vmem:[%s6615_s29 + $0x50] sm:$0xff] %vm3530_vm0, %v3508_v25  ;;  %v3473_v5 = vadd.f32 %v3385_v4, %v3384_v58  ;;  %5144 = vtanh.f32 %v7164_v59  ;;  %v7169_v58 = vld [vmem:[#allocation24_spill] sm:$0xff] }
 0x4b7   : > { %v3162_v40 = vpop.f32.mrf.mxu2  ;;  %3474 = vadd.xlane.f32.xlu1 %v3473_v5  ;;  %v2987_v26 = vpop.f32.mrf.mxu0 }
 0x4b8   : > { %v3163_v61 = vadd.f32 %v3162_v40, %v3074_v42  ;;  %v3251_v15 = vpop.f32.mrf.mxu3  ;;  %v3076_v14 = vpop.f32.mrf.mxu1  ;;  %v2988_v30 = vadd.f32 %v2987_v26, %v6493_v51 }
 0x4ba   : > { %v5143_v6 = vpop.eup %5142  ;;  %v3252_v34 = vadd.f32 %v3251_v15, %v3163_v61  ;;  %v3433_v41 = vpop.xlane.xlu2 %3432  ;;  %v3077_v54 = vadd.f32 %v3076_v14, %v2988_v30 }
 0x4bb   : > { %v3509_v53 = vadd.f32 %v6608_v57, %v3433_v41  ;;  %v3387_v56 = vmul.f32 %v5143_v6, %v6516_v32  ;;  %v5145_v44 = vpop.eup %5144  ;;  %v7170_v41 = vld [vmem:[#allocation18_spill] sm:$0xff] }
 0x4bc   : > { %5146 = vtanh.f32 %v3252_v34  ;;  %v3388_v16 = vmul.f32 %v5145_v44, %v6514_v7 }
 0x4bd   : > { %3542 = vst.msk [vmem:[%s6615_s29 + $0x58] sm:$0xff] %vm3530_vm0, %v3509_v53  ;;  %v3476_v12 = vadd.f32 %v3387_v56, %v3386_v63  ;;  %5148 = vtanh.f32 %v7165_v8 }
 0x4bf   : > { %v3165_v29 = vpop.f32.mrf.mxu2  ;;  %3477 = vadd.xlane.f32.xlu2 %v3476_v12  ;;  %v2989_v45 = vpop.f32.mrf.mxu0 }
 0x4c0   : > { %v3166_v27 = vadd.f32 %v3165_v29, %v3077_v54  ;;  %v3254_v11 = vpop.f32.mrf.mxu3  ;;  %v3078_v51 = vpop.f32.mrf.mxu1  ;;  %v2990_v39 = vadd.f32 %v2989_v45, %v7166_v2 }
 0x4c2   : > { %v5147_v28 = vpop.eup %5146  ;;  %v3255_v60 = vadd.f32 %v3254_v11, %v3166_v27  ;;  %v3436_v50 = vpop.xlane.xlu0 %3435  ;;  %v3079_v38 = vadd.f32 %v3078_v51, %v2990_v39 }
 0x4c3   : > { %v3510_v3 = vadd.f32 %v6608_v57, %v3436_v50  ;;  %v3389_v19 = vmul.f32 %v5147_v28, %v6516_v32  ;;  %v5149_v52 = vpop.eup %5148 }
 0x4c4   : > { %5150 = vtanh.f32 %v3255_v60  ;;  %v3390_v18 = vmul.f32 %v5149_v52, %v6514_v7 }
 0x4c5   : > { %3543 = vst.msk [vmem:[%s6615_s29 + $0x60] sm:$0xff] %vm3530_vm0, %v3510_v3  ;;  %v3479_v62 = vadd.f32 %v3389_v19, %v3388_v16  ;;  %5152 = vtanh.f32 %v7167_v24 }
 0x4c7   : > { %v3167_v0 = vpop.f32.mrf.mxu2  ;;  %3480 = vadd.xlane.f32.xlu0 %v3479_v62  ;;  %v2992_v1 = vpop.f32.mrf.mxu0 }
 0x4c8   : > { %v3168_v37 = vadd.f32 %v3167_v0, %v3079_v38  ;;  %v3256_v13 = vpop.f32.mrf.mxu3  ;;  %v2993_v31 = vadd.f32 %v2992_v1, %v6503_v55  ;;  %v3081_v49 = vpop.f32.mrf.mxu1 }
 0x4ca   : > { %v5151_v43 = vpop.eup %5150  ;;  %v3257_v48 = vadd.f32 %v3256_v13, %v3168_v37  ;;  %v3439_v17 = vpop.xlane.xlu1 %3438  ;;  %v3082_v20 = vadd.f32 %v3081_v49, %v2993_v31 }
 0x4cb   : > { %v3511_v21 = vadd.f32 %v6608_v57, %v3439_v17  ;;  %v3391_v33 = vmul.f32 %v5151_v43, %v6516_v32  ;;  %v5153_v35 = vpop.eup %5152 }
 0x4cc   : > { %5154 = vtanh.f32 %v3257_v48  ;;  %v3392_v40 = vmul.f32 %v5153_v35, %v6514_v7 }
 0x4cd   : > { %3544 = vst.msk [vmem:[%s6615_s29 + $0x68] sm:$0xff] %vm3530_vm0, %v3511_v21  ;;  %v3482_v10 = vadd.f32 %v3391_v33, %v3390_v18  ;;  %5156 = vtanh.f32 %v7168_v9 }
 0x4cf   : > { %v3170_v47 = vpop.f32.mrf.mxu2  ;;  %3483 = vadd.xlane.f32.xlu1 %v3482_v10  ;;  %v2994_v55 = vpop.f32.mrf.mxu0 }
 0x4d0   : > { %v3171_v36 = vadd.f32 %v3170_v47, %v3082_v20  ;;  %v3259_v23 = vpop.f32.mrf.mxu3  ;;  %v2995_v4 = vadd.f32 %v2994_v55, %v7169_v58  ;;  %v3083_v61 = vpop.f32.mrf.mxu1 }
 0x4d2   : > { %v5155_v22 = vpop.eup %5154  ;;  %v3260_v25 = vadd.f32 %v3259_v23, %v3171_v36  ;;  %v3442_v5 = vpop.xlane.xlu2 %3441  ;;  %v3084_v26 = vadd.f32 %v3083_v61, %v2995_v4 }
 0x4d3   : > { %v3512_v42 = vadd.f32 %v6608_v57, %v3442_v5  ;;  %v3393_v46 = vmul.f32 %v5155_v22, %v6516_v32  ;;  %v5157_v6 = vpop.eup %5156 }
 0x4d4   : > { %5158 = vtanh.f32 %v3260_v25  ;;  %v3394_v12 = vmul.f32 %v5157_v6, %v6514_v7 }
 0x4d5   : > { %3545 = vst.msk [vmem:[%s6615_s29 + $0x70] sm:$0xff] %vm3530_vm0, %v3512_v42  ;;  %v3485_v15 = vadd.f32 %v3393_v46, %v3392_v40  ;;  %5160 = vtanh.f32 %v7170_v41 }
 0x4d7   : > { %v3172_v14 = vpop.f32.mrf.mxu2  ;;  %3486 = vadd.xlane.f32.xlu2 %v3485_v15 }
 0x4d8   : > { %v3173_v59 = vadd.f32 %v3172_v14, %v3084_v26  ;;  %v3261_v34 = vpop.f32.mrf.mxu3 }
 0x4da   : > { %v5159_v30 = vpop.eup %5158  ;;  %v3262_v53 = vadd.f32 %v3261_v34, %v3173_v59  ;;  %v3445_v63 = vpop.xlane.xlu0 %3444 }
 0x4db   : > { %v3513_v56 = vadd.f32 %v6608_v57, %v3445_v63  ;;  %v3395_v54 = vmul.f32 %v5159_v30, %v6516_v32  ;;  %v5161_v44 = vpop.eup %5160 }
 0x4dc   : > { %5162 = vtanh.f32 %v3262_v53  ;;  %v3396_v51 = vmul.f32 %v5161_v44, %v6514_v7 }
 0x4dd   : > { %3546 = vst.msk [vmem:[%s6615_s29 + $0x78] sm:$0xff] %vm3530_vm0, %v3513_v56  ;;  %v3488_v29 = vadd.f32 %v3395_v54, %v3394_v12 }
 0x4df   : > { %3489 = vadd.xlane.f32.xlu0 %v3488_v29 }
 0x4e2   : > { %v5163_v27 = vpop.eup %5162  ;;  %v3448_v11 = vpop.xlane.xlu1 %3447 }
 0x4e3   : > { %v3514_v45 = vadd.f32 %v6608_v57, %v3448_v11  ;;  %v3397_v28 = vmul.f32 %v5163_v27, %v6516_v32 }
 0x4e5   : > { %3547 = vst.msk [vmem:[%s6615_s29 + $0x80] sm:$0xff] %vm3530_vm0, %v3514_v45  ;;  %v3491_v8 = vadd.f32 %v3397_v28, %v3396_v51 }
 0x4e7   : > { %3492 = vadd.xlane.f32.xlu1 %v3491_v8 }
 0x4ea   : > { %v3451_v60 = vpop.xlane.xlu2 %3450 }
 0x4eb   : > { %v3515_v2 = vadd.f32 %v6608_v57, %v3451_v60 }
 0x4ed   : > { %3548 = vst.msk [vmem:[%s6615_s29 + $0x88] sm:$0xff] %vm3530_vm0, %v3515_v2 }
 0x4f2   : > { %v3454_v39 = vpop.xlane.xlu0 %3453 }
 0x4f3   : > { %v3516_v50 = vadd.f32 %v6608_v57, %v3454_v39 }
 0x4f5   : > { %3549 = vst.msk [vmem:[%s6615_s29 + $0x90] sm:$0xff] %vm3530_vm0, %v3516_v50 }
 0x4fa   : > { %v3457_v7 = vpop.xlane.xlu1 %3456 }
 0x4fb   : > { %v3517_v32 = vadd.f32 %v6608_v57, %v3457_v7 }
 0x4fd   : > { %3550 = vst.msk [vmem:[%s6615_s29 + $0x98] sm:$0xff] %vm3530_vm0, %v3517_v32 }
 0x502   : > { %v3460_v3 = vpop.xlane.xlu2 %3459 }
 0x503   : > { %v3518_v16 = vadd.f32 %v6608_v57, %v3460_v3 }
 0x505   : > { %3551 = vst.msk [vmem:[%s6615_s29 + $0xa0] sm:$0xff] %vm3530_vm0, %v3518_v16 }
 0x50a   : > { %v3463_v19 = vpop.xlane.xlu0 %3462 }
 0x50b   : > { %v3519_v62 = vadd.f32 %v6608_v57, %v3463_v19 }
 0x50d   : > { %3552 = vst.msk [vmem:[%s6615_s29 + $0xa8] sm:$0xff] %vm3530_vm0, %v3519_v62 }
 0x512   : > { %v3466_v38 = vpop.xlane.xlu1 %3465 }
 0x513   : > { %v3520_v0 = vadd.f32 %v6608_v57, %v3466_v38 }
 0x515   : > { %3553 = vst.msk [vmem:[%s6615_s29 + $0xb0] sm:$0xff] %vm3530_vm0, %v3520_v0 }
 0x51a   : > { %v3469_v52 = vpop.xlane.xlu2 %3468 }
 0x51b   : > { %v3521_v37 = vadd.f32 %v6608_v57, %v3469_v52 }
 0x51d   : > { %3554 = vst.msk [vmem:[%s6615_s29 + $0xb8] sm:$0xff] %vm3530_vm0, %v3521_v37 }
 0x522   : > { %v3472_v13 = vpop.xlane.xlu0 %3471 }
 0x523   : > { %v3522_v1 = vadd.f32 %v6608_v57, %v3472_v13 }
 0x525   : > { %3555 = vst.msk [vmem:[%s6615_s29 + $0xc0] sm:$0xff] %vm3530_vm0, %v3522_v1 }
 0x52a   : > { %v3475_v43 = vpop.xlane.xlu1 %3474 }
 0x52b   : > { %v3523_v24 = vadd.f32 %v6608_v57, %v3475_v43 }
 0x52d   : > { %3556 = vst.msk [vmem:[%s6615_s29 + $0xc8] sm:$0xff] %vm3530_vm0, %v3523_v24 }
 0x532   : > { %v3478_v48 = vpop.xlane.xlu2 %3477 }
 0x533   : > { %v3524_v31 = vadd.f32 %v6608_v57, %v3478_v48 }
 0x535   : > { %3557 = vst.msk [vmem:[%s6615_s29 + $0xd0] sm:$0xff] %vm3530_vm0, %v3524_v31 }
 0x53a   : > { %v3481_v17 = vpop.xlane.xlu0 %3480 }
 0x53b   : > { %v3525_v49 = vadd.f32 %v6608_v57, %v3481_v17 }
 0x53d   : > { %3558 = vst.msk [vmem:[%s6615_s29 + $0xd8] sm:$0xff] %vm3530_vm0, %v3525_v49 }
 0x542   : > { %v3484_v21 = vpop.xlane.xlu1 %3483 }
 0x543   : > { %v3526_v18 = vadd.f32 %v6608_v57, %v3484_v21 }
 0x545   : > { %3559 = vst.msk [vmem:[%s6615_s29 + $0xe0] sm:$0xff] %vm3530_vm0, %v3526_v18 }
 0x54a   : > { %v3487_v33 = vpop.xlane.xlu2 %3486 }
 0x54b   : > { %v3527_v10 = vadd.f32 %v6608_v57, %v3487_v33 }
 0x54d   : > { %3560 = vst.msk [vmem:[%s6615_s29 + $0xe8] sm:$0xff] %vm3530_vm0, %v3527_v10 }
 0x552   : > { %v3490_v20 = vpop.xlane.xlu0 %3489 }
 0x553   : > { %v3528_v47 = vadd.f32 %v6608_v57, %v3490_v20 }
 0x555   : > { %3561 = vst.msk [vmem:[%s6615_s29 + $0xf0] sm:$0xff] %vm3530_vm0, %v3528_v47 }
 0x55a   : > { %v3493_v35 = vpop.xlane.xlu1 %3492 }
 0x55b   : > { %v3529_v36 = vadd.f32 %v6608_v57, %v3493_v35 }
 0x55d   : > { %3562 = vst.msk [vmem:[%s6615_s29 + $0xf8] sm:$0xff] %vm3530_vm0, %v3529_v36 }
 0x55e PF: > { %s7171_s7 = smov %s5429_s20  ;;  %p19_p4 = scmp.ge.s32.totalorder %s5429_s20, 6  }
 0x55f   : > { %s7172_s20 = smov %s5319_s21  ;;  %s7173_s21 = smov %s5323_s22 }
 0x560   : > { %s7174_s22 = smov %s5441_s28  ;;  %s7175_s23 = smov %s7171_s7 }
 0x561   :  { %21 = sbr.rel (!%p19_p4) target bundleno = 8 (0x8), region = 92 }
 0x566   :  { %3585 = vsyncpa [#allocation4], 1 }
 0x567   :  { %3587 = vsyncpa [#allocation4 + $0x1], 1 }
 0x568   :  { %3588 = vsyncpa [#allocation6], 1 }
 0x569   :  { %3589 = vsyncpa [#allocation9], 1 }

</bundles_post_ra>
